<compile_context>
chip_gen: v7x
topology: tpu7x:2x2x1
jax: 0.10.0
libtpu: 0.0.40
codegen_flags: <defaults>
</compile_context>

<pallas_src>
import functools
import math

import jax
import jax.numpy as jnp
from jax.experimental import pallas as pl
from jax.experimental.pallas import tpu as pltpu

EPS = 1e-5
# <= 48 MiB so the same blocks also fit v7x's 64 MiB VMEM; blocks here are tiny anyway.
_VMEM_LIMIT = 48 * 1024 * 1024


def _cparams(*sems):
    return pltpu.CompilerParams(dimension_semantics=tuple(sems),
                                vmem_limit_bytes=_VMEM_LIMIT)


def _hw_tile(hw):
    """Lane-dim tile over H*W: a multiple of 128 (lane-dense stores) or the full extent."""
    for t in (2048, 1024, 512, 256, 128):
        if hw % t == 0:
            return t
    return hw


def _shift_flat(x, s, n):
    """t[:, i] = x[:, (i + s) % n] for a static shift s (channel-major flat H*W layout)."""
    s = s % n
    if s == 0:
        return x
    return jnp.concatenate([x[:, s:], x[:, :s]], axis=1)


# ---------------------------------------------------------------------------
# Kernel 1: MaxPool2d(3,1,1) + the four 1x1 convs (raw bf16 outputs + f32 stats).
# grid = (B,), fully "parallel" (no resident accumulators).
# ---------------------------------------------------------------------------
def _branch_a_kernel(x_ref, row_ref, col_ref, w1_ref, w4_ref, w2a_ref, w3a_ref,
                     y1_ref, y4_ref, yr2_ref, yr3_ref, s1_ref, s2_ref, *, H, W):
    HW = H * W
    x = x_ref[0]                                   # (Cin, HW) bf16
    r = row_ref[...]                               # (1, HW) int32
    c = col_ref[...]

    # MaxPool2d(3, stride=1, padding=1) on the flat layout via lane shifts + validity masks.
    x32 = x.astype(jnp.float32)
    m = x32
    for dy in (-1, 0, 1):
        for dx in (-1, 0, 1):
            if dy == 0 and dx == 0:
                continue
            t = _shift_flat(x32, dy * W + dx, HW)
            valid = (r + dy >= 0) & (r + dy < H) & (c + dx >= 0) & (c + dx < W)
            m = jnp.maximum(m, jnp.where(valid, t, m))
    mp = m.astype(jnp.bfloat16)

    y1 = jnp.dot(w1_ref[...], x, preferred_element_type=jnp.float32)    # (out1, HW)
    y4 = jnp.dot(w4_ref[...], mp, preferred_element_type=jnp.float32)   # (outp, HW)
    yr2 = jnp.dot(w2a_ref[...], x, preferred_element_type=jnp.float32)  # (red3, HW)
    yr3 = jnp.dot(w3a_ref[...], x, preferred_element_type=jnp.float32)  # (red5, HW)

    y1_ref[0] = y1.astype(y1_ref.dtype)
    y4_ref[0] = y4.astype(y4_ref.dtype)
    yr2_ref[0] = yr2.astype(yr2_ref.dtype)
    yr3_ref[0] = yr3.astype(yr3_ref.dtype)

    # Per-image channel stats, order [b1, b4, b2a, b3a].
    s1_ref[0] = jnp.concatenate(
        [jnp.sum(y, axis=1, keepdims=True) for y in (y1, y4, yr2, yr3)], axis=0)
    s2_ref[0] = jnp.concatenate(
        [jnp.sum(y * y, axis=1, keepdims=True) for y in (y1, y4, yr2, yr3)], axis=0)


def branch_a(x, row, col, w1, w4, w2a, w3a, *, H, W):
    B, Cin, HW = x.shape
    out1, outp, red3, red5 = w1.shape[0], w4.shape[0], w2a.shape[0], w3a.shape[0]
    N1 = out1 + outp + red3 + red5
    kern = functools.partial(_branch_a_kernel, H=H, W=W)
    img = lambda n: pl.BlockSpec((1, n, HW), lambda b: (b, 0, 0))
    cst = lambda shp: pl.BlockSpec(shp, lambda b: (0, 0))
    return pl.pallas_call(
        kern,
        grid=(B,),
        in_specs=[
            img(Cin),
            cst((1, HW)), cst((1, HW)),
            cst((out1, Cin)), cst((outp, Cin)), cst((red3, Cin)), cst((red5, Cin)),
        ],
        out_specs=[
            img(out1), img(outp), img(red3), img(red5),
            pl.BlockSpec((1, N1, 1), lambda b: (b, 0, 0)),
            pl.BlockSpec((1, N1, 1), lambda b: (b, 0, 0)),
        ],
        out_shape=[
            jax.ShapeDtypeStruct((B, out1, HW), jnp.bfloat16),
            jax.ShapeDtypeStruct((B, outp, HW), jnp.bfloat16),
            jax.ShapeDtypeStruct((B, red3, HW), jnp.bfloat16),
            jax.ShapeDtypeStruct((B, red5, HW), jnp.bfloat16),
            jax.ShapeDtypeStruct((B, N1, 1), jnp.float32),
            jax.ShapeDtypeStruct((B, N1, 1), jnp.float32),
        ],
        compiler_params=_cparams("parallel"),
    )(x, row, col, w1, w4, w2a, w3a)


# ---------------------------------------------------------------------------
# Kernel 2: BN+ReLU of the reduce slab fused with the kxk conv (pad = k//2):
# the im2col tile is built in VMEM (lane shifts + masks) and consumed by ONE matmul.
# grid = (B,), "parallel"; emits raw bf16 output + per-image f32 stats.
# ---------------------------------------------------------------------------
def _convk_kernel(yraw_ref, row_ref, col_ref, w_ref, sc_ref, sh_ref,
                  y_ref, s1_ref, s2_ref, *, k, H, W):
    HW = H * W
    p = k // 2
    # BatchNorm (batch stats) + ReLU of the reduce activation, then back to bf16.
    z = jnp.maximum(yraw_ref[0].astype(jnp.float32) * sc_ref[...] + sh_ref[...], 0.0)
    r = row_ref[...]
    c = col_ref[...]
    taps = []
    for dy in range(-p, p + 1):
        for dx in range(-p, p + 1):
            t = _shift_flat(z, dy * W + dx, HW)
            valid = (r + dy >= 0) & (r + dy < H) & (c + dx >= 0) & (c + dx < W)
            taps.append(jnp.where(valid, t, 0.0))
    col_mat = jnp.concatenate(taps, axis=0).astype(jnp.bfloat16)      # (k*k*Cred, HW)
    y = jnp.dot(w_ref[...], col_mat, preferred_element_type=jnp.float32)  # (Cout, HW)
    y_ref[0] = y.astype(y_ref.dtype)
    s1_ref[0] = jnp.sum(y, axis=1, keepdims=True)
    s2_ref[0] = jnp.sum(y * y, axis=1, keepdims=True)


def convk(yraw, row, col, w, scale, shift, *, k, H, W):
    B, Cred, HW = yraw.shape
    Cout = w.shape[0]
    kern = functools.partial(_convk_kernel, k=k, H=H, W=W)
    cst = lambda shp: pl.BlockSpec(shp, lambda b: (0, 0))
    return pl.pallas_call(
        kern,
        grid=(B,),
        in_specs=[
            pl.BlockSpec((1, Cred, HW), lambda b: (b, 0, 0)),
            cst((1, HW)), cst((1, HW)),
            cst((Cout, k * k * Cred)),
            cst((Cred, 1)), cst((Cred, 1)),
        ],
        out_specs=[
            pl.BlockSpec((1, Cout, HW), lambda b: (b, 0, 0)),
            pl.BlockSpec((1, Cout, 1), lambda b: (b, 0, 0)),
            pl.BlockSpec((1, Cout, 1), lambda b: (b, 0, 0)),
        ],
        out_shape=[
            jax.ShapeDtypeStruct((B, Cout, HW), jnp.bfloat16),
            jax.ShapeDtypeStruct((B, Cout, 1), jnp.float32),
            jax.ShapeDtypeStruct((B, Cout, 1), jnp.float32),
        ],
        compiler_params=_cparams("parallel"),
    )(yraw, row, col, w, scale, shift)


# ---------------------------------------------------------------------------
# Kernel 3: BN+ReLU of the four branches, one concatenated lane-dense bf16 store,
# plus the SE squeeze (per-image per-channel spatial sums, resident over the HW tiles).
# grid = (B, HW // tj), semantics ("parallel", "arbitrary").
# ---------------------------------------------------------------------------
def _finalize_kernel(y1_ref, y2_ref, y3_ref, y4_ref, sc_ref, sh_ref,
                     cat_ref, sesum_ref):
    @pl.when(pl.program_id(1) == 0)
    def _init():
        sesum_ref[...] = jnp.zeros_like(sesum_ref)

    ycat = jnp.concatenate(
        [y1_ref[0], y2_ref[0], y3_ref[0], y4_ref[0]], axis=0).astype(jnp.float32)
    z = jnp.maximum(ycat * sc_ref[...] + sh_ref[...], 0.0)        # (C, tj) f32
    cat_ref[0] = z.astype(cat_ref.dtype)
    sesum_ref[0] += jnp.sum(z, axis=1, keepdims=True)


def finalize(y1, y2, y3, y4, sc_cat, sh_cat, *, tj):
    B, n1, HW = y1.shape
    n2, n3, n4 = y2.shape[1], y3.shape[1], y4.shape[1]
    C = sc_cat.shape[0]
    nj = HW // tj
    blk = lambda n: pl.BlockSpec((1, n, tj), lambda b, j: (b, 0, j))
    cst = pl.BlockSpec((C, 1), lambda b, j: (0, 0))
    return pl.pallas_call(
        _finalize_kernel,
        grid=(B, nj),
        in_specs=[blk(n1), blk(n2), blk(n3), blk(n4), cst, cst],
        out_specs=[
            pl.BlockSpec((1, C, tj), lambda b, j: (b, 0, j)),
            pl.BlockSpec((1, C, 1), lambda b, j: (b, 0, 0)),
        ],
        out_shape=[
            jax.ShapeDtypeStruct((B, C, HW), jnp.bfloat16),
            jax.ShapeDtypeStruct((B, C, 1), jnp.float32),
        ],
        compiler_params=_cparams("parallel", "arbitrary"),
    )(y1, y2, y3, y4, sc_cat, sh_cat)


# ---------------------------------------------------------------------------
# Kernel 4: SE excitation (avg-pool -> fc1 -> ReLU -> fc2 -> sigmoid) computed once per
# image under pl.when(j==0) into a VMEM scratch, then channel re-scale of the tiles.
# grid = (B, HW // tj), semantics ("parallel", "arbitrary").
# ---------------------------------------------------------------------------
def _se_kernel(sesum_ref, w1_ref, b1_ref, w2_ref, b2_ref, cat_ref, o_ref, s_ref, *, hw):
    @pl.when(pl.program_id(1) == 0)
    def _excite():
        pooled = sesum_ref[0] * (1.0 / hw)                                     # (C, 1)
        h = jnp.dot(w1_ref[...], pooled, preferred_element_type=jnp.float32) + b1_ref[...]
        h = jnp.maximum(h, 0.0)                                                # (Cred, 1)
        s = jnp.dot(w2_ref[...], h, preferred_element_type=jnp.float32) + b2_ref[...]
        s_ref[...] = jax.nn.sigmoid(s)                                         # (C, 1)

    o_ref[0] = cat_ref[0].astype(jnp.float32) * s_ref[...]


def se_block(sesum, fc1_w, fc1_b, fc2_w, fc2_b, cat, *, hw, tj):
    B, C, HW = cat.shape
    Cred = fc1_w.shape[0]
    nj = HW // tj
    kern = functools.partial(_se_kernel, hw=float(hw))
    cst = lambda shp: pl.BlockSpec(shp, lambda b, j: (0, 0))
    return pl.pallas_call(
        kern,
        grid=(B, nj),
        in_specs=[
            pl.BlockSpec((1, C, 1), lambda b, j: (b, 0, 0)),
            cst((Cred, C)), cst((Cred, 1)), cst((C, Cred)), cst((C, 1)),
            pl.BlockSpec((1, C, tj), lambda b, j: (b, 0, j)),
        ],
        out_specs=pl.BlockSpec((1, C, tj), lambda b, j: (b, 0, j)),
        out_shape=jax.ShapeDtypeStruct((B, C, HW), jnp.float32),
        scratch_shapes=[pltpu.VMEM((C, 1), jnp.float32)],
        compiler_params=_cparams("parallel", "arbitrary"),
    )(sesum, fc1_w, fc1_b, fc2_w, fc2_b, cat)


# ---------------------------------------------------------------------------
# JAX glue: weight-layout conversion, tiny BN-statistics math, forward pass.
# ---------------------------------------------------------------------------
def _w1x1(w):
    # (cout, cin, 1, 1) -> (cout, cin) matmul form.
    return w[:, :, 0, 0].astype(jnp.bfloat16)


def _wkxk(w):
    # (cout, cin, k, k) -> (cout, k*k*cin), column index = (ky*k + kx)*cin + ci
    cout, cin, k, _ = w.shape
    return jnp.transpose(w, (0, 2, 3, 1)).reshape(cout, k * k * cin).astype(jnp.bfloat16)


def _bn_scale_shift(s1, s2, count, gamma, beta):
    gamma = gamma.reshape(-1, 1)
    beta = beta.reshape(-1, 1)
    mean = s1 / count
    var = jnp.maximum(s2 / count - mean * mean, 0.0)      # clamp (review correctness note)
    scale = gamma * jax.lax.rsqrt(var + EPS)
    shift = beta - mean * scale
    return scale, shift


def se_inception_forward(x_nchw, params, *, cfg):
    out1, red3, out3, red5, out5, outp = cfg
    B, Cin, H, W = x_nchw.shape
    HW = H * W
    C = out1 + out3 + out5 + outp
    count = float(B * HW)
    tj = _hw_tile(HW)

    # Channel-major (B, C, H*W): lane dim = H*W, natively NCHW -> no boundary transposes.
    x = x_nchw.reshape(B, Cin, HW).astype(jnp.bfloat16)
    row = (jnp.arange(HW, dtype=jnp.int32) // W).reshape(1, HW)
    col = (jnp.arange(HW, dtype=jnp.int32) % W).reshape(1, HW)

    w_b1, w_b4 = _w1x1(params["w_b1"]), _w1x1(params["w_b4"])
    w_b2a, w_b3a = _w1x1(params["w_b2a"]), _w1x1(params["w_b3a"])
    w_b2b, w_b3b = _wkxk(params["w_b2b"]), _wkxk(params["w_b3b"])

    # Stage 1: MaxPool + all four 1x1 convs (raw bf16 outputs + f32 per-image stats).
    y1, y4, yr2, yr3, s1a, s2a = branch_a(x, row, col, w_b1, w_b4, w_b2a, w_b3a, H=H, W=W)

    s1a = jnp.sum(s1a, axis=0)                             # (N1, 1) over the batch
    s2a = jnp.sum(s2a, axis=0)
    i1, i2, i3 = out1, out1 + outp, out1 + outp + red3     # stats order [b1, b4, b2a, b3a]
    sc_b1, sh_b1 = _bn_scale_shift(s1a[:i1], s2a[:i1], count,
                                   params["gamma_b1"], params["beta_b1"])
    sc_b4, sh_b4 = _bn_scale_shift(s1a[i1:i2], s2a[i1:i2], count,
                                   params["gamma_b4"], params["beta_b4"])
    sc_2a, sh_2a = _bn_scale_shift(s1a[i2:i3], s2a[i2:i3], count,
                                   params["gamma_b2a"], params["beta_b2a"])
    sc_3a, sh_3a = _bn_scale_shift(s1a[i3:], s2a[i3:], count,
                                   params["gamma_b3a"], params["beta_b3a"])

    # Stage 2: BN+ReLU of the reduce slabs fused into the 3x3 / 5x5 convs.
    y2, s1_2, s2_2 = convk(yr2, row, col, w_b2b, sc_2a, sh_2a, k=3, H=H, W=W)
    y3, s1_3, s2_3 = convk(yr3, row, col, w_b3b, sc_3a, sh_3a, k=5, H=H, W=W)

    sc_2b, sh_2b = _bn_scale_shift(jnp.sum(s1_2, 0), jnp.sum(s2_2, 0), count,
                                   params["gamma_b2b"], params["beta_b2b"])
    sc_3b, sh_3b = _bn_scale_shift(jnp.sum(s1_3, 0), jnp.sum(s2_3, 0), count,
                                   params["gamma_b3b"], params["beta_b3b"])

    sc_cat = jnp.concatenate([sc_b1, sc_2b, sc_3b, sc_b4], axis=0)     # torch.cat order
    sh_cat = jnp.concatenate([sh_b1, sh_2b, sh_3b, sh_b4], axis=0)

    # Stage 3: BN+ReLU of all branches, fused concat store + SE squeeze sums.
    cat, sesum = finalize(y1, y2, y3, y4, sc_cat, sh_cat, tj=tj)

    # Stage 4: SE excitation + channel re-scale.
    out = se_block(sesum, params["fc1_w"], params["fc1_b"].reshape(-1, 1),
                   params["fc2_w"], params["fc2_b"].reshape(-1, 1), cat, hw=HW, tj=tj)
    return out.reshape(B, C, H, W)


def init_params(key, in_channels, out_1x1, red_3x3, out_3x3, red_5x5, out_5x5, out_1x1pool):
    C = out_1x1 + out_3x3 + out_5x5 + out_1x1pool
    cred = math.floor(C / 3)
    ks = jax.random.split(key, 10)

    def conv_w(k, cout, cin, ksz):
        # PyTorch layout (cout, cin, kH, kW). Conv biases are omitted: train-mode BN
        # subtracts the per-channel batch mean, cancelling any per-channel constant.
        return jax.random.normal(k, (cout, cin, ksz, ksz), jnp.float32) * 0.1

    p = {
        "w_b1": conv_w(ks[0], out_1x1, in_channels, 1),
        "w_b2a": conv_w(ks[1], red_3x3, in_channels, 1),
        "w_b2b": conv_w(ks[2], out_3x3, red_3x3, 3),
        "w_b3a": conv_w(ks[3], red_5x5, in_channels, 1),
        "w_b3b": conv_w(ks[4], out_5x5, red_5x5, 5),
        "w_b4": conv_w(ks[5], out_1x1pool, in_channels, 1),
        "fc1_w": jax.random.normal(ks[6], (cred, C), jnp.float32) * 0.1,   # nn.Linear layout
        "fc1_b": jax.random.normal(ks[7], (cred,), jnp.float32) * 0.1,
        "fc2_w": jax.random.normal(ks[8], (C, cred), jnp.float32) * 0.1,
        "fc2_b": jax.random.normal(ks[9], (C,), jnp.float32) * 0.1,
    }
    for name, n in (("b1", out_1x1), ("b2a", red_3x3), ("b2b", out_3x3),
                    ("b3a", red_5x5), ("b3b", out_5x5), ("b4", out_1x1pool)):
        p[f"gamma_{name}"] = jnp.ones((n,), jnp.float32)
        p[f"beta_{name}"] = jnp.zeros((n,), jnp.float32)
    return p


# ---------------------------------------------------------------------------
# Pure-JAX f32 reference (for numerical cross-check of the Pallas pipeline).
# ---------------------------------------------------------------------------
def _conv_ref(x, w, pad):
    return jax.lax.conv_general_dilated(
        x, w, window_strides=(1, 1), padding=[(pad, pad), (pad, pad)],
        dimension_numbers=("NCHW", "OIHW", "NCHW"))


def _bn_relu_ref(y, gamma, beta):
    mean = jnp.mean(y, axis=(0, 2, 3), keepdims=True)
    var = jnp.mean((y - mean) ** 2, axis=(0, 2, 3), keepdims=True)
    z = (y - mean) * jax.lax.rsqrt(var + EPS)
    z = z * gamma.reshape(1, -1, 1, 1) + beta.reshape(1, -1, 1, 1)
    return jnp.maximum(z, 0.0)


def se_inception_ref(x, p, *, cfg):
    b1 = _bn_relu_ref(_conv_ref(x, p["w_b1"], 0), p["gamma_b1"], p["beta_b1"])
    r2 = _bn_relu_ref(_conv_ref(x, p["w_b2a"], 0), p["gamma_b2a"], p["beta_b2a"])
    b2 = _bn_relu_ref(_conv_ref(r2, p["w_b2b"], 1), p["gamma_b2b"], p["beta_b2b"])
    r3 = _bn_relu_ref(_conv_ref(x, p["w_b3a"], 0), p["gamma_b3a"], p["beta_b3a"])
    b3 = _bn_relu_ref(_conv_ref(r3, p["w_b3b"], 2), p["gamma_b3b"], p["beta_b3b"])
    mp = jax.lax.reduce_window(x, -jnp.inf, jax.lax.max, (1, 1, 3, 3), (1, 1, 1, 1),
                               padding=((0, 0), (0, 0), (1, 1), (1, 1)))
    b4 = _bn_relu_ref(_conv_ref(mp, p["w_b4"], 0), p["gamma_b4"], p["beta_b4"])
    cat = jnp.concatenate([b1, b2, b3, b4], axis=1)
    pooled = jnp.mean(cat, axis=(2, 3))
    h = jnp.maximum(pooled @ p["fc1_w"].T + p["fc1_b"], 0.0)
    s = jax.nn.sigmoid(h @ p["fc2_w"].T + p["fc2_b"])
    return cat * s[:, :, None, None]


if __name__ == "__main__":
    # Config: in_channels=4, out_1x1=8, red_3x3=4, out_3x3=8, red_5x5=4, out_5x5=8,
    #         out_1x1pool=8 -> concat channels = 32, SE reduce = 10.
    in_channels, out_1x1, red_3x3, out_3x3, red_5x5, out_5x5, out_1x1pool = 4, 8, 4, 8, 4, 8, 8
    cfg = (out_1x1, red_3x3, out_3x3, red_5x5, out_5x5, out_1x1pool)

    key = jax.random.PRNGKey(0)
    k_x, k_p = jax.random.split(key)
    x = jax.random.normal(k_x, (2, in_channels, 16, 16), jnp.float32)   # NCHW like PyTorch
    params = init_params(k_p, in_channels, *cfg)

    fwd = jax.jit(functools.partial(se_inception_forward, cfg=cfg))
    y = fwd(x, params)
    jax.block_until_ready(y)

    C = out_1x1 + out_3x3 + out_5x5 + out_1x1pool
    assert y.shape == (2, C, 16, 16) and y.dtype == jnp.float32

    # Cross-check against the pure-JAX f32 reference (bf16 intermediates -> loose tolerance).
    ref = jax.jit(functools.partial(se_inception_ref, cfg=cfg))(x, params)
    err = float(jnp.max(jnp.abs(y - ref)))
    assert err < 0.2, f"max abs error vs reference: {err}"

    print("KERNEL_OK")
</pallas_src>

<mosaic_0001>
module attributes {stable_mosaic.version = 11 : i64} {
  func.func @_branch_a_kernel(%arg0: i32, %arg1: memref<1x4x256xbf16, #tpu.memory_space<vmem>>, %arg2: memref<1x256xi32, #tpu.memory_space<vmem>>, %arg3: memref<1x256xi32, #tpu.memory_space<vmem>>, %arg4: memref<8x4xbf16, #tpu.memory_space<vmem>>, %arg5: memref<8x4xbf16, #tpu.memory_space<vmem>>, %arg6: memref<4x4xbf16, #tpu.memory_space<vmem>>, %arg7: memref<4x4xbf16, #tpu.memory_space<vmem>>, %arg8: memref<1x8x256xbf16, #tpu.memory_space<vmem>>, %arg9: memref<1x8x256xbf16, #tpu.memory_space<vmem>>, %arg10: memref<1x4x256xbf16, #tpu.memory_space<vmem>>, %arg11: memref<1x4x256xbf16, #tpu.memory_space<vmem>>, %arg12: memref<1x24x1xf32, #tpu.memory_space<vmem>>, %arg13: memref<1x24x1xf32, #tpu.memory_space<vmem>>) attributes {dimension_semantics = [#tpu.dimension_semantics<parallel>], iteration_bounds = array<i64: 2>, scalar_prefetch = 0 : i64, scratch_operands = 0 : i64, tpu.core_type = #tpu.core_type<tc>, window_params = [{transform_indices = @transform_0, window_bounds = array<i64: 1, 4, 256>}, {pipeline_mode = #tpu.pipeline_mode<synchronous>, transform_indices = @transform_1, window_bounds = array<i64: 1, 256>}, {pipeline_mode = #tpu.pipeline_mode<synchronous>, transform_indices = @transform_2, window_bounds = array<i64: 1, 256>}, {pipeline_mode = #tpu.pipeline_mode<synchronous>, transform_indices = @transform_3, window_bounds = array<i64: 8, 4>}, {pipeline_mode = #tpu.pipeline_mode<synchronous>, transform_indices = @transform_4, window_bounds = array<i64: 8, 4>}, {pipeline_mode = #tpu.pipeline_mode<synchronous>, transform_indices = @transform_5, window_bounds = array<i64: 4, 4>}, {pipeline_mode = #tpu.pipeline_mode<synchronous>, transform_indices = @transform_6, window_bounds = array<i64: 4, 4>}, {transform_indices = @transform_7, window_bounds = array<i64: 1, 8, 256>}, {transform_indices = @transform_8, window_bounds = array<i64: 1, 8, 256>}, {transform_indices = @transform_9, window_bounds = array<i64: 1, 4, 256>}, {transform_indices = @transform_10, window_bounds = array<i64: 1, 4, 256>}, {transform_indices = @transform_11, window_bounds = array<i64: 1, 24, 1>}, {transform_indices = @transform_12, window_bounds = array<i64: 1, 24, 1>}]} {
    %c0 = arith.constant 0 : index
    %c0_0 = arith.constant 0 : index
    %c0_1 = arith.constant 0 : index
    %0 = vector.load %arg1[%c0, %c0_0, %c0_1] : memref<1x4x256xbf16, #tpu.memory_space<vmem>>, vector<1x4x256xbf16>
    %1 = vector.shape_cast %0 : vector<1x4x256xbf16> to vector<4x256xbf16>
    %c0_2 = arith.constant 0 : index
    %c0_3 = arith.constant 0 : index
    %2 = vector.load %arg2[%c0_2, %c0_3] : memref<1x256xi32, #tpu.memory_space<vmem>>, vector<1x256xi32>
    %c0_4 = arith.constant 0 : index
    %c0_5 = arith.constant 0 : index
    %3 = vector.load %arg3[%c0_4, %c0_5] : memref<1x256xi32, #tpu.memory_space<vmem>>, vector<1x256xi32>
    %4 = arith.extf %1 : vector<4x256xbf16> to vector<4x256xf32>
    %5 = vector.extract_strided_slice %4 {offsets = [0, 239], sizes = [4, 17], strides = [1, 1]} : vector<4x256xf32> to vector<4x17xf32>
    %6 = vector.extract_strided_slice %4 {offsets = [0, 0], sizes = [4, 239], strides = [1, 1]} : vector<4x256xf32> to vector<4x239xf32>
    %7 = tpu.concatenate %5, %6 in 1 : vector<4x17xf32>, vector<4x239xf32> -> vector<4x256xf32>
    %c-1_i32 = arith.constant -1 : i32
    %8 = vector.broadcast %c-1_i32 : i32 to vector<1x256xi32>
    %9 = arith.addi %2, %8 : vector<1x256xi32>
    %c0_i32 = arith.constant 0 : i32
    %10 = vector.broadcast %c0_i32 : i32 to vector<1x256xi32>
    %11 = arith.cmpi sge, %9, %10 : vector<1x256xi32>
    %c-1_i32_6 = arith.constant -1 : i32
    %12 = vector.broadcast %c-1_i32_6 : i32 to vector<1x256xi32>
    %13 = arith.addi %2, %12 : vector<1x256xi32>
    %c16_i32 = arith.constant 16 : i32
    %14 = vector.broadcast %c16_i32 : i32 to vector<1x256xi32>
    %15 = arith.cmpi slt, %13, %14 : vector<1x256xi32>
    %16 = arith.andi %11, %15 : vector<1x256xi1>
    %c-1_i32_7 = arith.constant -1 : i32
    %17 = vector.broadcast %c-1_i32_7 : i32 to vector<1x256xi32>
    %18 = arith.addi %3, %17 : vector<1x256xi32>
    %c0_i32_8 = arith.constant 0 : i32
    %19 = vector.broadcast %c0_i32_8 : i32 to vector<1x256xi32>
    %20 = arith.cmpi sge, %18, %19 : vector<1x256xi32>
    %21 = arith.andi %16, %20 : vector<1x256xi1>
    %c-1_i32_9 = arith.constant -1 : i32
    %22 = vector.broadcast %c-1_i32_9 : i32 to vector<1x256xi32>
    %23 = arith.addi %3, %22 : vector<1x256xi32>
    %c16_i32_10 = arith.constant 16 : i32
    %24 = vector.broadcast %c16_i32_10 : i32 to vector<1x256xi32>
    %25 = arith.cmpi slt, %23, %24 : vector<1x256xi32>
    %26 = arith.andi %21, %25 : vector<1x256xi1>
    %27 = vector.shape_cast %26 : vector<1x256xi1> to vector<1x256xi1>
    %28 = vector.broadcast %27 : vector<1x256xi1> to vector<4x256xi1>
    %29 = arith.select %28, %7, %4 : vector<4x256xi1>, vector<4x256xf32>
    %30 = arith.maximumf %4, %29 : vector<4x256xf32>
    %31 = vector.extract_strided_slice %4 {offsets = [0, 240], sizes = [4, 16], strides = [1, 1]} : vector<4x256xf32> to vector<4x16xf32>
    %32 = vector.extract_strided_slice %4 {offsets = [0, 0], sizes = [4, 240], strides = [1, 1]} : vector<4x256xf32> to vector<4x240xf32>
    %33 = tpu.concatenate %31, %32 in 1 : vector<4x16xf32>, vector<4x240xf32> -> vector<4x256xf32>
    %c-1_i32_11 = arith.constant -1 : i32
    %34 = vector.broadcast %c-1_i32_11 : i32 to vector<1x256xi32>
    %35 = arith.addi %2, %34 : vector<1x256xi32>
    %c0_i32_12 = arith.constant 0 : i32
    %36 = vector.broadcast %c0_i32_12 : i32 to vector<1x256xi32>
    %37 = arith.cmpi sge, %35, %36 : vector<1x256xi32>
    %c-1_i32_13 = arith.constant -1 : i32
    %38 = vector.broadcast %c-1_i32_13 : i32 to vector<1x256xi32>
    %39 = arith.addi %2, %38 : vector<1x256xi32>
    %c16_i32_14 = arith.constant 16 : i32
    %40 = vector.broadcast %c16_i32_14 : i32 to vector<1x256xi32>
    %41 = arith.cmpi slt, %39, %40 : vector<1x256xi32>
    %42 = arith.andi %37, %41 : vector<1x256xi1>
    %c0_i32_15 = arith.constant 0 : i32
    %43 = vector.broadcast %c0_i32_15 : i32 to vector<1x256xi32>
    %44 = arith.addi %3, %43 : vector<1x256xi32>
    %c0_i32_16 = arith.constant 0 : i32
    %45 = vector.broadcast %c0_i32_16 : i32 to vector<1x256xi32>
    %46 = arith.cmpi sge, %44, %45 : vector<1x256xi32>
    %47 = arith.andi %42, %46 : vector<1x256xi1>
    %c0_i32_17 = arith.constant 0 : i32
    %48 = vector.broadcast %c0_i32_17 : i32 to vector<1x256xi32>
    %49 = arith.addi %3, %48 : vector<1x256xi32>
    %c16_i32_18 = arith.constant 16 : i32
    %50 = vector.broadcast %c16_i32_18 : i32 to vector<1x256xi32>
    %51 = arith.cmpi slt, %49, %50 : vector<1x256xi32>
    %52 = arith.andi %47, %51 : vector<1x256xi1>
    %53 = vector.shape_cast %52 : vector<1x256xi1> to vector<1x256xi1>
    %54 = vector.broadcast %53 : vector<1x256xi1> to vector<4x256xi1>
    %55 = arith.select %54, %33, %30 : vector<4x256xi1>, vector<4x256xf32>
    %56 = arith.maximumf %30, %55 : vector<4x256xf32>
    %57 = vector.extract_strided_slice %4 {offsets = [0, 241], sizes = [4, 15], strides = [1, 1]} : vector<4x256xf32> to vector<4x15xf32>
    %58 = vector.extract_strided_slice %4 {offsets = [0, 0], sizes = [4, 241], strides = [1, 1]} : vector<4x256xf32> to vector<4x241xf32>
    %59 = tpu.concatenate %57, %58 in 1 : vector<4x15xf32>, vector<4x241xf32> -> vector<4x256xf32>
    %c-1_i32_19 = arith.constant -1 : i32
    %60 = vector.broadcast %c-1_i32_19 : i32 to vector<1x256xi32>
    %61 = arith.addi %2, %60 : vector<1x256xi32>
    %c0_i32_20 = arith.constant 0 : i32
    %62 = vector.broadcast %c0_i32_20 : i32 to vector<1x256xi32>
    %63 = arith.cmpi sge, %61, %62 : vector<1x256xi32>
    %c-1_i32_21 = arith.constant -1 : i32
    %64 = vector.broadcast %c-1_i32_21 : i32 to vector<1x256xi32>
    %65 = arith.addi %2, %64 : vector<1x256xi32>
    %c16_i32_22 = arith.constant 16 : i32
    %66 = vector.broadcast %c16_i32_22 : i32 to vector<1x256xi32>
    %67 = arith.cmpi slt, %65, %66 : vector<1x256xi32>
    %68 = arith.andi %63, %67 : vector<1x256xi1>
    %c1_i32 = arith.constant 1 : i32
    %69 = vector.broadcast %c1_i32 : i32 to vector<1x256xi32>
    %70 = arith.addi %3, %69 : vector<1x256xi32>
    %c0_i32_23 = arith.constant 0 : i32
    %71 = vector.broadcast %c0_i32_23 : i32 to vector<1x256xi32>
    %72 = arith.cmpi sge, %70, %71 : vector<1x256xi32>
    %73 = arith.andi %68, %72 : vector<1x256xi1>
    %c1_i32_24 = arith.constant 1 : i32
    %74 = vector.broadcast %c1_i32_24 : i32 to vector<1x256xi32>
    %75 = arith.addi %3, %74 : vector<1x256xi32>
    %c16_i32_25 = arith.constant 16 : i32
    %76 = vector.broadcast %c16_i32_25 : i32 to vector<1x256xi32>
    %77 = arith.cmpi slt, %75, %76 : vector<1x256xi32>
    %78 = arith.andi %73, %77 : vector<1x256xi1>
    %79 = vector.shape_cast %78 : vector<1x256xi1> to vector<1x256xi1>
    %80 = vector.broadcast %79 : vector<1x256xi1> to vector<4x256xi1>
    %81 = arith.select %80, %59, %56 : vector<4x256xi1>, vector<4x256xf32>
    %82 = arith.maximumf %56, %81 : vector<4x256xf32>
    %83 = vector.extract_strided_slice %4 {offsets = [0, 255], sizes = [4, 1], strides = [1, 1]} : vector<4x256xf32> to vector<4x1xf32>
    %84 = vector.extract_strided_slice %4 {offsets = [0, 0], sizes = [4, 255], strides = [1, 1]} : vector<4x256xf32> to vector<4x255xf32>
    %85 = tpu.concatenate %83, %84 in 1 : vector<4x1xf32>, vector<4x255xf32> -> vector<4x256xf32>
    %c0_i32_26 = arith.constant 0 : i32
    %86 = vector.broadcast %c0_i32_26 : i32 to vector<1x256xi32>
    %87 = arith.addi %2, %86 : vector<1x256xi32>
    %c0_i32_27 = arith.constant 0 : i32
    %88 = vector.broadcast %c0_i32_27 : i32 to vector<1x256xi32>
    %89 = arith.cmpi sge, %87, %88 : vector<1x256xi32>
    %c0_i32_28 = arith.constant 0 : i32
    %90 = vector.broadcast %c0_i32_28 : i32 to vector<1x256xi32>
    %91 = arith.addi %2, %90 : vector<1x256xi32>
    %c16_i32_29 = arith.constant 16 : i32
    %92 = vector.broadcast %c16_i32_29 : i32 to vector<1x256xi32>
    %93 = arith.cmpi slt, %91, %92 : vector<1x256xi32>
    %94 = arith.andi %89, %93 : vector<1x256xi1>
    %c-1_i32_30 = arith.constant -1 : i32
    %95 = vector.broadcast %c-1_i32_30 : i32 to vector<1x256xi32>
    %96 = arith.addi %3, %95 : vector<1x256xi32>
    %c0_i32_31 = arith.constant 0 : i32
    %97 = vector.broadcast %c0_i32_31 : i32 to vector<1x256xi32>
    %98 = arith.cmpi sge, %96, %97 : vector<1x256xi32>
    %99 = arith.andi %94, %98 : vector<1x256xi1>
    %c-1_i32_32 = arith.constant -1 : i32
    %100 = vector.broadcast %c-1_i32_32 : i32 to vector<1x256xi32>
    %101 = arith.addi %3, %100 : vector<1x256xi32>
    %c16_i32_33 = arith.constant 16 : i32
    %102 = vector.broadcast %c16_i32_33 : i32 to vector<1x256xi32>
    %103 = arith.cmpi slt, %101, %102 : vector<1x256xi32>
    %104 = arith.andi %99, %103 : vector<1x256xi1>
    %105 = vector.shape_cast %104 : vector<1x256xi1> to vector<1x256xi1>
    %106 = vector.broadcast %105 : vector<1x256xi1> to vector<4x256xi1>
    %107 = arith.select %106, %85, %82 : vector<4x256xi1>, vector<4x256xf32>
    %108 = arith.maximumf %82, %107 : vector<4x256xf32>
    %109 = vector.extract_strided_slice %4 {offsets = [0, 1], sizes = [4, 255], strides = [1, 1]} : vector<4x256xf32> to vector<4x255xf32>
    %110 = vector.extract_strided_slice %4 {offsets = [0, 0], sizes = [4, 1], strides = [1, 1]} : vector<4x256xf32> to vector<4x1xf32>
    %111 = tpu.concatenate %109, %110 in 1 : vector<4x255xf32>, vector<4x1xf32> -> vector<4x256xf32>
    %c0_i32_34 = arith.constant 0 : i32
    %112 = vector.broadcast %c0_i32_34 : i32 to vector<1x256xi32>
    %113 = arith.addi %2, %112 : vector<1x256xi32>
    %c0_i32_35 = arith.constant 0 : i32
    %114 = vector.broadcast %c0_i32_35 : i32 to vector<1x256xi32>
    %115 = arith.cmpi sge, %113, %114 : vector<1x256xi32>
    %c0_i32_36 = arith.constant 0 : i32
    %116 = vector.broadcast %c0_i32_36 : i32 to vector<1x256xi32>
    %117 = arith.addi %2, %116 : vector<1x256xi32>
    %c16_i32_37 = arith.constant 16 : i32
    %118 = vector.broadcast %c16_i32_37 : i32 to vector<1x256xi32>
    %119 = arith.cmpi slt, %117, %118 : vector<1x256xi32>
    %120 = arith.andi %115, %119 : vector<1x256xi1>
    %c1_i32_38 = arith.constant 1 : i32
    %121 = vector.broadcast %c1_i32_38 : i32 to vector<1x256xi32>
    %122 = arith.addi %3, %121 : vector<1x256xi32>
    %c0_i32_39 = arith.constant 0 : i32
    %123 = vector.broadcast %c0_i32_39 : i32 to vector<1x256xi32>
    %124 = arith.cmpi sge, %122, %123 : vector<1x256xi32>
    %125 = arith.andi %120, %124 : vector<1x256xi1>
    %c1_i32_40 = arith.constant 1 : i32
    %126 = vector.broadcast %c1_i32_40 : i32 to vector<1x256xi32>
    %127 = arith.addi %3, %126 : vector<1x256xi32>
    %c16_i32_41 = arith.constant 16 : i32
    %128 = vector.broadcast %c16_i32_41 : i32 to vector<1x256xi32>
    %129 = arith.cmpi slt, %127, %128 : vector<1x256xi32>
    %130 = arith.andi %125, %129 : vector<1x256xi1>
    %131 = vector.shape_cast %130 : vector<1x256xi1> to vector<1x256xi1>
    %132 = vector.broadcast %131 : vector<1x256xi1> to vector<4x256xi1>
    %133 = arith.select %132, %111, %108 : vector<4x256xi1>, vector<4x256xf32>
    %134 = arith.maximumf %108, %133 : vector<4x256xf32>
    %135 = vector.extract_strided_slice %4 {offsets = [0, 15], sizes = [4, 241], strides = [1, 1]} : vector<4x256xf32> to vector<4x241xf32>
    %136 = vector.extract_strided_slice %4 {offsets = [0, 0], sizes = [4, 15], strides = [1, 1]} : vector<4x256xf32> to vector<4x15xf32>
    %137 = tpu.concatenate %135, %136 in 1 : vector<4x241xf32>, vector<4x15xf32> -> vector<4x256xf32>
    %c1_i32_42 = arith.constant 1 : i32
    %138 = vector.broadcast %c1_i32_42 : i32 to vector<1x256xi32>
    %139 = arith.addi %2, %138 : vector<1x256xi32>
    %c0_i32_43 = arith.constant 0 : i32
    %140 = vector.broadcast %c0_i32_43 : i32 to vector<1x256xi32>
    %141 = arith.cmpi sge, %139, %140 : vector<1x256xi32>
    %c1_i32_44 = arith.constant 1 : i32
    %142 = vector.broadcast %c1_i32_44 : i32 to vector<1x256xi32>
    %143 = arith.addi %2, %142 : vector<1x256xi32>
    %c16_i32_45 = arith.constant 16 : i32
    %144 = vector.broadcast %c16_i32_45 : i32 to vector<1x256xi32>
    %145 = arith.cmpi slt, %143, %144 : vector<1x256xi32>
    %146 = arith.andi %141, %145 : vector<1x256xi1>
    %c-1_i32_46 = arith.constant -1 : i32
    %147 = vector.broadcast %c-1_i32_46 : i32 to vector<1x256xi32>
    %148 = arith.addi %3, %147 : vector<1x256xi32>
    %c0_i32_47 = arith.constant 0 : i32
    %149 = vector.broadcast %c0_i32_47 : i32 to vector<1x256xi32>
    %150 = arith.cmpi sge, %148, %149 : vector<1x256xi32>
    %151 = arith.andi %146, %150 : vector<1x256xi1>
    %c-1_i32_48 = arith.constant -1 : i32
    %152 = vector.broadcast %c-1_i32_48 : i32 to vector<1x256xi32>
    %153 = arith.addi %3, %152 : vector<1x256xi32>
    %c16_i32_49 = arith.constant 16 : i32
    %154 = vector.broadcast %c16_i32_49 : i32 to vector<1x256xi32>
    %155 = arith.cmpi slt, %153, %154 : vector<1x256xi32>
    %156 = arith.andi %151, %155 : vector<1x256xi1>
    %157 = vector.shape_cast %156 : vector<1x256xi1> to vector<1x256xi1>
    %158 = vector.broadcast %157 : vector<1x256xi1> to vector<4x256xi1>
    %159 = arith.select %158, %137, %134 : vector<4x256xi1>, vector<4x256xf32>
    %160 = arith.maximumf %134, %159 : vector<4x256xf32>
    %161 = vector.extract_strided_slice %4 {offsets = [0, 16], sizes = [4, 240], strides = [1, 1]} : vector<4x256xf32> to vector<4x240xf32>
    %162 = vector.extract_strided_slice %4 {offsets = [0, 0], sizes = [4, 16], strides = [1, 1]} : vector<4x256xf32> to vector<4x16xf32>
    %163 = tpu.concatenate %161, %162 in 1 : vector<4x240xf32>, vector<4x16xf32> -> vector<4x256xf32>
    %c1_i32_50 = arith.constant 1 : i32
    %164 = vector.broadcast %c1_i32_50 : i32 to vector<1x256xi32>
    %165 = arith.addi %2, %164 : vector<1x256xi32>
    %c0_i32_51 = arith.constant 0 : i32
    %166 = vector.broadcast %c0_i32_51 : i32 to vector<1x256xi32>
    %167 = arith.cmpi sge, %165, %166 : vector<1x256xi32>
    %c1_i32_52 = arith.constant 1 : i32
    %168 = vector.broadcast %c1_i32_52 : i32 to vector<1x256xi32>
    %169 = arith.addi %2, %168 : vector<1x256xi32>
    %c16_i32_53 = arith.constant 16 : i32
    %170 = vector.broadcast %c16_i32_53 : i32 to vector<1x256xi32>
    %171 = arith.cmpi slt, %169, %170 : vector<1x256xi32>
    %172 = arith.andi %167, %171 : vector<1x256xi1>
    %c0_i32_54 = arith.constant 0 : i32
    %173 = vector.broadcast %c0_i32_54 : i32 to vector<1x256xi32>
    %174 = arith.addi %3, %173 : vector<1x256xi32>
    %c0_i32_55 = arith.constant 0 : i32
    %175 = vector.broadcast %c0_i32_55 : i32 to vector<1x256xi32>
    %176 = arith.cmpi sge, %174, %175 : vector<1x256xi32>
    %177 = arith.andi %172, %176 : vector<1x256xi1>
    %c0_i32_56 = arith.constant 0 : i32
    %178 = vector.broadcast %c0_i32_56 : i32 to vector<1x256xi32>
    %179 = arith.addi %3, %178 : vector<1x256xi32>
    %c16_i32_57 = arith.constant 16 : i32
    %180 = vector.broadcast %c16_i32_57 : i32 to vector<1x256xi32>
    %181 = arith.cmpi slt, %179, %180 : vector<1x256xi32>
    %182 = arith.andi %177, %181 : vector<1x256xi1>
    %183 = vector.shape_cast %182 : vector<1x256xi1> to vector<1x256xi1>
    %184 = vector.broadcast %183 : vector<1x256xi1> to vector<4x256xi1>
    %185 = arith.select %184, %163, %160 : vector<4x256xi1>, vector<4x256xf32>
    %186 = arith.maximumf %160, %185 : vector<4x256xf32>
    %187 = vector.extract_strided_slice %4 {offsets = [0, 17], sizes = [4, 239], strides = [1, 1]} : vector<4x256xf32> to vector<4x239xf32>
    %188 = vector.extract_strided_slice %4 {offsets = [0, 0], sizes = [4, 17], strides = [1, 1]} : vector<4x256xf32> to vector<4x17xf32>
    %189 = tpu.concatenate %187, %188 in 1 : vector<4x239xf32>, vector<4x17xf32> -> vector<4x256xf32>
    %c1_i32_58 = arith.constant 1 : i32
    %190 = vector.broadcast %c1_i32_58 : i32 to vector<1x256xi32>
    %191 = arith.addi %2, %190 : vector<1x256xi32>
    %c0_i32_59 = arith.constant 0 : i32
    %192 = vector.broadcast %c0_i32_59 : i32 to vector<1x256xi32>
    %193 = arith.cmpi sge, %191, %192 : vector<1x256xi32>
    %c1_i32_60 = arith.constant 1 : i32
    %194 = vector.broadcast %c1_i32_60 : i32 to vector<1x256xi32>
    %195 = arith.addi %2, %194 : vector<1x256xi32>
    %c16_i32_61 = arith.constant 16 : i32
    %196 = vector.broadcast %c16_i32_61 : i32 to vector<1x256xi32>
    %197 = arith.cmpi slt, %195, %196 : vector<1x256xi32>
    %198 = arith.andi %193, %197 : vector<1x256xi1>
    %c1_i32_62 = arith.constant 1 : i32
    %199 = vector.broadcast %c1_i32_62 : i32 to vector<1x256xi32>
    %200 = arith.addi %3, %199 : vector<1x256xi32>
    %c0_i32_63 = arith.constant 0 : i32
    %201 = vector.broadcast %c0_i32_63 : i32 to vector<1x256xi32>
    %202 = arith.cmpi sge, %200, %201 : vector<1x256xi32>
    %203 = arith.andi %198, %202 : vector<1x256xi1>
    %c1_i32_64 = arith.constant 1 : i32
    %204 = vector.broadcast %c1_i32_64 : i32 to vector<1x256xi32>
    %205 = arith.addi %3, %204 : vector<1x256xi32>
    %c16_i32_65 = arith.constant 16 : i32
    %206 = vector.broadcast %c16_i32_65 : i32 to vector<1x256xi32>
    %207 = arith.cmpi slt, %205, %206 : vector<1x256xi32>
    %208 = arith.andi %203, %207 : vector<1x256xi1>
    %209 = vector.shape_cast %208 : vector<1x256xi1> to vector<1x256xi1>
    %210 = vector.broadcast %209 : vector<1x256xi1> to vector<4x256xi1>
    %211 = arith.select %210, %189, %186 : vector<4x256xi1>, vector<4x256xf32>
    %212 = arith.maximumf %186, %211 : vector<4x256xf32>
    %213 = arith.truncf %212 : vector<4x256xf32> to vector<4x256xbf16>
    %c0_66 = arith.constant 0 : index
    %c0_67 = arith.constant 0 : index
    %214 = vector.load %arg4[%c0_66, %c0_67] : memref<8x4xbf16, #tpu.memory_space<vmem>>, vector<8x4xbf16>
    %cst = arith.constant dense<0.000000e+00> : vector<8x256xf32>
    %215 = tpu.matmul %214, %1, %cst {dimension_numbers = #tpu.dot_dimension_numbers<[1], [0], [0], [1], [0, 0, 1, 1], [], []>} : vector<8x4xbf16>, vector<4x256xbf16>, vector<8x256xf32> -> vector<8x256xf32>
    %c0_68 = arith.constant 0 : index
    %c0_69 = arith.constant 0 : index
    %216 = vector.load %arg5[%c0_68, %c0_69] : memref<8x4xbf16, #tpu.memory_space<vmem>>, vector<8x4xbf16>
    %cst_70 = arith.constant dense<0.000000e+00> : vector<8x256xf32>
    %217 = tpu.matmul %216, %213, %cst_70 {dimension_numbers = #tpu.dot_dimension_numbers<[1], [0], [0], [1], [0, 0, 1, 1], [], []>} : vector<8x4xbf16>, vector<4x256xbf16>, vector<8x256xf32> -> vector<8x256xf32>
    %c0_71 = arith.constant 0 : index
    %c0_72 = arith.constant 0 : index
    %218 = vector.load %arg6[%c0_71, %c0_72] : memref<4x4xbf16, #tpu.memory_space<vmem>>, vector<4x4xbf16>
    %cst_73 = arith.constant dense<0.000000e+00> : vector<4x256xf32>
    %219 = tpu.matmul %218, %1, %cst_73 {dimension_numbers = #tpu.dot_dimension_numbers<[1], [0], [0], [1], [0, 0, 1, 1], [], []>} : vector<4x4xbf16>, vector<4x256xbf16>, vector<4x256xf32> -> vector<4x256xf32>
    %c0_74 = arith.constant 0 : index
    %c0_75 = arith.constant 0 : index
    %220 = vector.load %arg7[%c0_74, %c0_75] : memref<4x4xbf16, #tpu.memory_space<vmem>>, vector<4x4xbf16>
    %cst_76 = arith.constant dense<0.000000e+00> : vector<4x256xf32>
    %221 = tpu.matmul %220, %1, %cst_76 {dimension_numbers = #tpu.dot_dimension_numbers<[1], [0], [0], [1], [0, 0, 1, 1], [], []>} : vector<4x4xbf16>, vector<4x256xbf16>, vector<4x256xf32> -> vector<4x256xf32>
    %222 = arith.truncf %215 : vector<8x256xf32> to vector<8x256xbf16>
    %c0_77 = arith.constant 0 : index
    %c0_78 = arith.constant 0 : index
    %c0_79 = arith.constant 0 : index
    %223 = vector.load %arg8[%c0_77, %c0_78, %c0_79] : memref<1x8x256xbf16, #tpu.memory_space<vmem>>, vector<1x8x256xbf16>
    %224 = vector.shape_cast %223 : vector<1x8x256xbf16> to vector<8x256xbf16>
    %225 = vector.shape_cast %222 : vector<8x256xbf16> to vector<1x8x256xbf16>
    tpu.vector_store %arg8[%c0_77, %c0_78, %c0_79], %225 {strides = array<i32>} : memref<1x8x256xbf16, #tpu.memory_space<vmem>>, vector<1x8x256xbf16>,
    %226 = arith.truncf %217 : vector<8x256xf32> to vector<8x256xbf16>
    %c0_80 = arith.constant 0 : index
    %c0_81 = arith.constant 0 : index
    %c0_82 = arith.constant 0 : index
    %227 = vector.load %arg9[%c0_80, %c0_81, %c0_82] : memref<1x8x256xbf16, #tpu.memory_space<vmem>>, vector<1x8x256xbf16>
    %228 = vector.shape_cast %227 : vector<1x8x256xbf16> to vector<8x256xbf16>
    %229 = vector.shape_cast %226 : vector<8x256xbf16> to vector<1x8x256xbf16>
    tpu.vector_store %arg9[%c0_80, %c0_81, %c0_82], %229 {strides = array<i32>} : memref<1x8x256xbf16, #tpu.memory_space<vmem>>, vector<1x8x256xbf16>,
    %230 = arith.truncf %219 : vector<4x256xf32> to vector<4x256xbf16>
    %c0_83 = arith.constant 0 : index
    %c0_84 = arith.constant 0 : index
    %c0_85 = arith.constant 0 : index
    %231 = vector.load %arg10[%c0_83, %c0_84, %c0_85] : memref<1x4x256xbf16, #tpu.memory_space<vmem>>, vector<1x4x256xbf16>
    %232 = vector.shape_cast %231 : vector<1x4x256xbf16> to vector<4x256xbf16>
    %233 = vector.shape_cast %230 : vector<4x256xbf16> to vector<1x4x256xbf16>
    tpu.vector_store %arg10[%c0_83, %c0_84, %c0_85], %233 {strides = array<i32>} : memref<1x4x256xbf16, #tpu.memory_space<vmem>>, vector<1x4x256xbf16>,
    %234 = arith.truncf %221 : vector<4x256xf32> to vector<4x256xbf16>
    %c0_86 = arith.constant 0 : index
    %c0_87 = arith.constant 0 : index
    %c0_88 = arith.constant 0 : index
    %235 = vector.load %arg11[%c0_86, %c0_87, %c0_88] : memref<1x4x256xbf16, #tpu.memory_space<vmem>>, vector<1x4x256xbf16>
    %236 = vector.shape_cast %235 : vector<1x4x256xbf16> to vector<4x256xbf16>
    %237 = vector.shape_cast %234 : vector<4x256xbf16> to vector<1x4x256xbf16>
    tpu.vector_store %arg11[%c0_86, %c0_87, %c0_88], %237 {strides = array<i32>} : memref<1x4x256xbf16, #tpu.memory_space<vmem>>, vector<1x4x256xbf16>,
    %cst_89 = arith.constant dense<0.000000e+00> : vector<8xf32>
    %238 = vector.multi_reduction <add>, %215, %cst_89 [1] : vector<8x256xf32> to vector<8xf32>
    %239 = vector.shape_cast %238 : vector<8xf32> to vector<8x1xf32>
    %cst_90 = arith.constant dense<0.000000e+00> : vector<8xf32>
    %240 = vector.multi_reduction <add>, %217, %cst_90 [1] : vector<8x256xf32> to vector<8xf32>
    %241 = vector.shape_cast %240 : vector<8xf32> to vector<8x1xf32>
    %cst_91 = arith.constant dense<0.000000e+00> : vector<4xf32>
    %242 = vector.multi_reduction <add>, %219, %cst_91 [1] : vector<4x256xf32> to vector<4xf32>
    %243 = vector.shape_cast %242 : vector<4xf32> to vector<4x1xf32>
    %cst_92 = arith.constant dense<0.000000e+00> : vector<4xf32>
    %244 = vector.multi_reduction <add>, %221, %cst_92 [1] : vector<4x256xf32> to vector<4xf32>
    %245 = vector.shape_cast %244 : vector<4xf32> to vector<4x1xf32>
    %246 = tpu.concatenate %239, %241, %243, %245 in 0 : vector<8x1xf32>, vector<8x1xf32>, vector<4x1xf32>, vector<4x1xf32> -> vector<24x1xf32>
    %c0_93 = arith.constant 0 : index
    %c0_94 = arith.constant 0 : index
    %c0_95 = arith.constant 0 : index
    %247 = vector.load %arg12[%c0_93, %c0_94, %c0_95] : memref<1x24x1xf32, #tpu.memory_space<vmem>>, vector<1x24x1xf32>
    %248 = vector.shape_cast %247 : vector<1x24x1xf32> to vector<24x1xf32>
    %249 = vector.shape_cast %246 : vector<24x1xf32> to vector<1x24x1xf32>
    tpu.vector_store %arg12[%c0_93, %c0_94, %c0_95], %249 {strides = array<i32>} : memref<1x24x1xf32, #tpu.memory_space<vmem>>, vector<1x24x1xf32>,
    %250 = arith.mulf %215, %215 : vector<8x256xf32>
    %cst_96 = arith.constant dense<0.000000e+00> : vector<8xf32>
    %251 = vector.multi_reduction <add>, %250, %cst_96 [1] : vector<8x256xf32> to vector<8xf32>
    %252 = vector.shape_cast %251 : vector<8xf32> to vector<8x1xf32>
    %253 = arith.mulf %217, %217 : vector<8x256xf32>
    %cst_97 = arith.constant dense<0.000000e+00> : vector<8xf32>
    %254 = vector.multi_reduction <add>, %253, %cst_97 [1] : vector<8x256xf32> to vector<8xf32>
    %255 = vector.shape_cast %254 : vector<8xf32> to vector<8x1xf32>
    %256 = arith.mulf %219, %219 : vector<4x256xf32>
    %cst_98 = arith.constant dense<0.000000e+00> : vector<4xf32>
    %257 = vector.multi_reduction <add>, %256, %cst_98 [1] : vector<4x256xf32> to vector<4xf32>
    %258 = vector.shape_cast %257 : vector<4xf32> to vector<4x1xf32>
    %259 = arith.mulf %221, %221 : vector<4x256xf32>
    %cst_99 = arith.constant dense<0.000000e+00> : vector<4xf32>
    %260 = vector.multi_reduction <add>, %259, %cst_99 [1] : vector<4x256xf32> to vector<4xf32>
    %261 = vector.shape_cast %260 : vector<4xf32> to vector<4x1xf32>
    %262 = tpu.concatenate %252, %255, %258, %261 in 0 : vector<8x1xf32>, vector<8x1xf32>, vector<4x1xf32>, vector<4x1xf32> -> vector<24x1xf32>
    %c0_100 = arith.constant 0 : index
    %c0_101 = arith.constant 0 : index
    %c0_102 = arith.constant 0 : index
    %263 = vector.load %arg13[%c0_100, %c0_101, %c0_102] : memref<1x24x1xf32, #tpu.memory_space<vmem>>, vector<1x24x1xf32>
    %264 = vector.shape_cast %263 : vector<1x24x1xf32> to vector<24x1xf32>
    %265 = vector.shape_cast %262 : vector<24x1xf32> to vector<1x24x1xf32>
    tpu.vector_store %arg13[%c0_100, %c0_101, %c0_102], %265 {strides = array<i32>} : memref<1x24x1xf32, #tpu.memory_space<vmem>>, vector<1x24x1xf32>,
    return
  }
  func.func @transform_0(%arg0: i32) -> (i32, i32, i32) {
    %c0_i32 = arith.constant 0 : i32
    %c0_i32_0 = arith.constant 0 : i32
    %c0_i32_1 = arith.constant 0 : i32
    return %arg0, %c0_i32, %c0_i32_0 : i32, i32, i32
  }
  func.func @transform_1(%arg0: i32) -> (i32, i32) {
    %c0_i32 = arith.constant 0 : i32
    %c0_i32_0 = arith.constant 0 : i32
    %c0_i32_1 = arith.constant 0 : i32
    return %c0_i32, %c0_i32_0 : i32, i32
  }
  func.func @transform_2(%arg0: i32) -> (i32, i32) {
    %c0_i32 = arith.constant 0 : i32
    %c0_i32_0 = arith.constant 0 : i32
    %c0_i32_1 = arith.constant 0 : i32
    return %c0_i32, %c0_i32_0 : i32, i32
  }
  func.func @transform_3(%arg0: i32) -> (i32, i32) {
    %c0_i32 = arith.constant 0 : i32
    %c0_i32_0 = arith.constant 0 : i32
    %c0_i32_1 = arith.constant 0 : i32
    return %c0_i32, %c0_i32_0 : i32, i32
  }
  func.func @transform_4(%arg0: i32) -> (i32, i32) {
    %c0_i32 = arith.constant 0 : i32
    %c0_i32_0 = arith.constant 0 : i32
    %c0_i32_1 = arith.constant 0 : i32
    return %c0_i32, %c0_i32_0 : i32, i32
  }
  func.func @transform_5(%arg0: i32) -> (i32, i32) {
    %c0_i32 = arith.constant 0 : i32
    %c0_i32_0 = arith.constant 0 : i32
    %c0_i32_1 = arith.constant 0 : i32
    return %c0_i32, %c0_i32_0 : i32, i32
  }
  func.func @transform_6(%arg0: i32) -> (i32, i32) {
    %c0_i32 = arith.constant 0 : i32
    %c0_i32_0 = arith.constant 0 : i32
    %c0_i32_1 = arith.constant 0 : i32
    return %c0_i32, %c0_i32_0 : i32, i32
  }
  func.func @transform_7(%arg0: i32) -> (i32, i32, i32) {
    %c0_i32 = arith.constant 0 : i32
    %c0_i32_0 = arith.constant 0 : i32
    %c0_i32_1 = arith.constant 0 : i32
    return %arg0, %c0_i32, %c0_i32_0 : i32, i32, i32
  }
  func.func @transform_8(%arg0: i32) -> (i32, i32, i32) {
    %c0_i32 = arith.constant 0 : i32
    %c0_i32_0 = arith.constant 0 : i32
    %c0_i32_1 = arith.constant 0 : i32
    return %arg0, %c0_i32, %c0_i32_0 : i32, i32, i32
  }
  func.func @transform_9(%arg0: i32) -> (i32, i32, i32) {
    %c0_i32 = arith.constant 0 : i32
    %c0_i32_0 = arith.constant 0 : i32
    %c0_i32_1 = arith.constant 0 : i32
    return %arg0, %c0_i32, %c0_i32_0 : i32, i32, i32
  }
  func.func @transform_10(%arg0: i32) -> (i32, i32, i32) {
    %c0_i32 = arith.constant 0 : i32
    %c0_i32_0 = arith.constant 0 : i32
    %c0_i32_1 = arith.constant 0 : i32
    return %arg0, %c0_i32, %c0_i32_0 : i32, i32, i32
  }
  func.func @transform_11(%arg0: i32) -> (i32, i32, i32) {
    %c0_i32 = arith.constant 0 : i32
    %c0_i32_0 = arith.constant 0 : i32
    %c0_i32_1 = arith.constant 0 : i32
    return %arg0, %c0_i32, %c0_i32_0 : i32, i32, i32
  }
  func.func @transform_12(%arg0: i32) -> (i32, i32, i32) {
    %c0_i32 = arith.constant 0 : i32
    %c0_i32_0 = arith.constant 0 : i32
    %c0_i32_1 = arith.constant 0 : i32
    return %arg0, %c0_i32, %c0_i32_0 : i32, i32, i32
  }
}

module attributes {stable_mosaic.version = 11 : i64} {
  func.func @_convk_kernel(%arg0: i32, %arg1: memref<1x4x256xbf16, #tpu.memory_space<vmem>>, %arg2: memref<1x256xi32, #tpu.memory_space<vmem>>, %arg3: memref<1x256xi32, #tpu.memory_space<vmem>>, %arg4: memref<8x36xbf16, #tpu.memory_space<vmem>>, %arg5: memref<4x1xf32, #tpu.memory_space<vmem>>, %arg6: memref<4x1xf32, #tpu.memory_space<vmem>>, %arg7: memref<1x8x256xbf16, #tpu.memory_space<vmem>>, %arg8: memref<1x8x1xf32, #tpu.memory_space<vmem>>, %arg9: memref<1x8x1xf32, #tpu.memory_space<vmem>>) attributes {dimension_semantics = [#tpu.dimension_semantics<parallel>], iteration_bounds = array<i64: 2>, scalar_prefetch = 0 : i64, scratch_operands = 0 : i64, tpu.core_type = #tpu.core_type<tc>, window_params = [{transform_indices = @transform_0, window_bounds = array<i64: 1, 4, 256>}, {pipeline_mode = #tpu.pipeline_mode<synchronous>, transform_indices = @transform_1, window_bounds = array<i64: 1, 256>}, {pipeline_mode = #tpu.pipeline_mode<synchronous>, transform_indices = @transform_2, window_bounds = array<i64: 1, 256>}, {pipeline_mode = #tpu.pipeline_mode<synchronous>, transform_indices = @transform_3, window_bounds = array<i64: 8, 36>}, {pipeline_mode = #tpu.pipeline_mode<synchronous>, transform_indices = @transform_4, window_bounds = array<i64: 4, 1>}, {pipeline_mode = #tpu.pipeline_mode<synchronous>, transform_indices = @transform_5, window_bounds = array<i64: 4, 1>}, {transform_indices = @transform_6, window_bounds = array<i64: 1, 8, 256>}, {transform_indices = @transform_7, window_bounds = array<i64: 1, 8, 1>}, {transform_indices = @transform_8, window_bounds = array<i64: 1, 8, 1>}]} {
    %c0 = arith.constant 0 : index
    %c0_0 = arith.constant 0 : index
    %c0_1 = arith.constant 0 : index
    %0 = vector.load %arg1[%c0, %c0_0, %c0_1] : memref<1x4x256xbf16, #tpu.memory_space<vmem>>, vector<1x4x256xbf16>
    %1 = vector.shape_cast %0 : vector<1x4x256xbf16> to vector<4x256xbf16>
    %2 = arith.extf %1 : vector<4x256xbf16> to vector<4x256xf32>
    %c0_2 = arith.constant 0 : index
    %c0_3 = arith.constant 0 : index
    %3 = vector.load %arg5[%c0_2, %c0_3] : memref<4x1xf32, #tpu.memory_space<vmem>>, vector<4x1xf32>
    %4 = vector.broadcast %3 : vector<4x1xf32> to vector<4x256xf32>
    %5 = arith.mulf %2, %4 : vector<4x256xf32>
    %c0_4 = arith.constant 0 : index
    %c0_5 = arith.constant 0 : index
    %6 = vector.load %arg6[%c0_4, %c0_5] : memref<4x1xf32, #tpu.memory_space<vmem>>, vector<4x1xf32>
    %7 = vector.broadcast %6 : vector<4x1xf32> to vector<4x256xf32>
    %8 = arith.addf %5, %7 : vector<4x256xf32>
    %cst = arith.constant 0.000000e+00 : f32
    %9 = vector.broadcast %cst : f32 to vector<4x256xf32>
    %10 = arith.maximumf %8, %9 : vector<4x256xf32>
    %c0_6 = arith.constant 0 : index
    %c0_7 = arith.constant 0 : index
    %11 = vector.load %arg2[%c0_6, %c0_7] : memref<1x256xi32, #tpu.memory_space<vmem>>, vector<1x256xi32>
    %c0_8 = arith.constant 0 : index
    %c0_9 = arith.constant 0 : index
    %12 = vector.load %arg3[%c0_8, %c0_9] : memref<1x256xi32, #tpu.memory_space<vmem>>, vector<1x256xi32>
    %13 = vector.extract_strided_slice %10 {offsets = [0, 239], sizes = [4, 17], strides = [1, 1]} : vector<4x256xf32> to vector<4x17xf32>
    %14 = vector.extract_strided_slice %10 {offsets = [0, 0], sizes = [4, 239], strides = [1, 1]} : vector<4x256xf32> to vector<4x239xf32>
    %15 = tpu.concatenate %13, %14 in 1 : vector<4x17xf32>, vector<4x239xf32> -> vector<4x256xf32>
    %c-1_i32 = arith.constant -1 : i32
    %16 = vector.broadcast %c-1_i32 : i32 to vector<1x256xi32>
    %17 = arith.addi %11, %16 : vector<1x256xi32>
    %c0_i32 = arith.constant 0 : i32
    %18 = vector.broadcast %c0_i32 : i32 to vector<1x256xi32>
    %19 = arith.cmpi sge, %17, %18 : vector<1x256xi32>
    %c-1_i32_10 = arith.constant -1 : i32
    %20 = vector.broadcast %c-1_i32_10 : i32 to vector<1x256xi32>
    %21 = arith.addi %11, %20 : vector<1x256xi32>
    %c16_i32 = arith.constant 16 : i32
    %22 = vector.broadcast %c16_i32 : i32 to vector<1x256xi32>
    %23 = arith.cmpi slt, %21, %22 : vector<1x256xi32>
    %24 = arith.andi %19, %23 : vector<1x256xi1>
    %c-1_i32_11 = arith.constant -1 : i32
    %25 = vector.broadcast %c-1_i32_11 : i32 to vector<1x256xi32>
    %26 = arith.addi %12, %25 : vector<1x256xi32>
    %c0_i32_12 = arith.constant 0 : i32
    %27 = vector.broadcast %c0_i32_12 : i32 to vector<1x256xi32>
    %28 = arith.cmpi sge, %26, %27 : vector<1x256xi32>
    %29 = arith.andi %24, %28 : vector<1x256xi1>
    %c-1_i32_13 = arith.constant -1 : i32
    %30 = vector.broadcast %c-1_i32_13 : i32 to vector<1x256xi32>
    %31 = arith.addi %12, %30 : vector<1x256xi32>
    %c16_i32_14 = arith.constant 16 : i32
    %32 = vector.broadcast %c16_i32_14 : i32 to vector<1x256xi32>
    %33 = arith.cmpi slt, %31, %32 : vector<1x256xi32>
    %34 = arith.andi %29, %33 : vector<1x256xi1>
    %cst_15 = arith.constant 0.000000e+00 : f32
    %35 = vector.shape_cast %34 : vector<1x256xi1> to vector<1x256xi1>
    %36 = vector.broadcast %35 : vector<1x256xi1> to vector<4x256xi1>
    %37 = vector.broadcast %cst_15 : f32 to vector<4x256xf32>
    %38 = arith.select %36, %15, %37 : vector<4x256xi1>, vector<4x256xf32>
    %39 = vector.extract_strided_slice %10 {offsets = [0, 240], sizes = [4, 16], strides = [1, 1]} : vector<4x256xf32> to vector<4x16xf32>
    %40 = vector.extract_strided_slice %10 {offsets = [0, 0], sizes = [4, 240], strides = [1, 1]} : vector<4x256xf32> to vector<4x240xf32>
    %41 = tpu.concatenate %39, %40 in 1 : vector<4x16xf32>, vector<4x240xf32> -> vector<4x256xf32>
    %c-1_i32_16 = arith.constant -1 : i32
    %42 = vector.broadcast %c-1_i32_16 : i32 to vector<1x256xi32>
    %43 = arith.addi %11, %42 : vector<1x256xi32>
    %c0_i32_17 = arith.constant 0 : i32
    %44 = vector.broadcast %c0_i32_17 : i32 to vector<1x256xi32>
    %45 = arith.cmpi sge, %43, %44 : vector<1x256xi32>
    %c-1_i32_18 = arith.constant -1 : i32
    %46 = vector.broadcast %c-1_i32_18 : i32 to vector<1x256xi32>
    %47 = arith.addi %11, %46 : vector<1x256xi32>
    %c16_i32_19 = arith.constant 16 : i32
    %48 = vector.broadcast %c16_i32_19 : i32 to vector<1x256xi32>
    %49 = arith.cmpi slt, %47, %48 : vector<1x256xi32>
    %50 = arith.andi %45, %49 : vector<1x256xi1>
    %c0_i32_20 = arith.constant 0 : i32
    %51 = vector.broadcast %c0_i32_20 : i32 to vector<1x256xi32>
    %52 = arith.addi %12, %51 : vector<1x256xi32>
    %c0_i32_21 = arith.constant 0 : i32
    %53 = vector.broadcast %c0_i32_21 : i32 to vector<1x256xi32>
    %54 = arith.cmpi sge, %52, %53 : vector<1x256xi32>
    %55 = arith.andi %50, %54 : vector<1x256xi1>
    %c0_i32_22 = arith.constant 0 : i32
    %56 = vector.broadcast %c0_i32_22 : i32 to vector<1x256xi32>
    %57 = arith.addi %12, %56 : vector<1x256xi32>
    %c16_i32_23 = arith.constant 16 : i32
    %58 = vector.broadcast %c16_i32_23 : i32 to vector<1x256xi32>
    %59 = arith.cmpi slt, %57, %58 : vector<1x256xi32>
    %60 = arith.andi %55, %59 : vector<1x256xi1>
    %cst_24 = arith.constant 0.000000e+00 : f32
    %61 = vector.shape_cast %60 : vector<1x256xi1> to vector<1x256xi1>
    %62 = vector.broadcast %61 : vector<1x256xi1> to vector<4x256xi1>
    %63 = vector.broadcast %cst_24 : f32 to vector<4x256xf32>
    %64 = arith.select %62, %41, %63 : vector<4x256xi1>, vector<4x256xf32>
    %65 = vector.extract_strided_slice %10 {offsets = [0, 241], sizes = [4, 15], strides = [1, 1]} : vector<4x256xf32> to vector<4x15xf32>
    %66 = vector.extract_strided_slice %10 {offsets = [0, 0], sizes = [4, 241], strides = [1, 1]} : vector<4x256xf32> to vector<4x241xf32>
    %67 = tpu.concatenate %65, %66 in 1 : vector<4x15xf32>, vector<4x241xf32> -> vector<4x256xf32>
    %c-1_i32_25 = arith.constant -1 : i32
    %68 = vector.broadcast %c-1_i32_25 : i32 to vector<1x256xi32>
    %69 = arith.addi %11, %68 : vector<1x256xi32>
    %c0_i32_26 = arith.constant 0 : i32
    %70 = vector.broadcast %c0_i32_26 : i32 to vector<1x256xi32>
    %71 = arith.cmpi sge, %69, %70 : vector<1x256xi32>
    %c-1_i32_27 = arith.constant -1 : i32
    %72 = vector.broadcast %c-1_i32_27 : i32 to vector<1x256xi32>
    %73 = arith.addi %11, %72 : vector<1x256xi32>
    %c16_i32_28 = arith.constant 16 : i32
    %74 = vector.broadcast %c16_i32_28 : i32 to vector<1x256xi32>
    %75 = arith.cmpi slt, %73, %74 : vector<1x256xi32>
    %76 = arith.andi %71, %75 : vector<1x256xi1>
    %c1_i32 = arith.constant 1 : i32
    %77 = vector.broadcast %c1_i32 : i32 to vector<1x256xi32>
    %78 = arith.addi %12, %77 : vector<1x256xi32>
    %c0_i32_29 = arith.constant 0 : i32
    %79 = vector.broadcast %c0_i32_29 : i32 to vector<1x256xi32>
    %80 = arith.cmpi sge, %78, %79 : vector<1x256xi32>
    %81 = arith.andi %76, %80 : vector<1x256xi1>
    %c1_i32_30 = arith.constant 1 : i32
    %82 = vector.broadcast %c1_i32_30 : i32 to vector<1x256xi32>
    %83 = arith.addi %12, %82 : vector<1x256xi32>
    %c16_i32_31 = arith.constant 16 : i32
    %84 = vector.broadcast %c16_i32_31 : i32 to vector<1x256xi32>
    %85 = arith.cmpi slt, %83, %84 : vector<1x256xi32>
    %86 = arith.andi %81, %85 : vector<1x256xi1>
    %cst_32 = arith.constant 0.000000e+00 : f32
    %87 = vector.shape_cast %86 : vector<1x256xi1> to vector<1x256xi1>
    %88 = vector.broadcast %87 : vector<1x256xi1> to vector<4x256xi1>
    %89 = vector.broadcast %cst_32 : f32 to vector<4x256xf32>
    %90 = arith.select %88, %67, %89 : vector<4x256xi1>, vector<4x256xf32>
    %91 = vector.extract_strided_slice %10 {offsets = [0, 255], sizes = [4, 1], strides = [1, 1]} : vector<4x256xf32> to vector<4x1xf32>
    %92 = vector.extract_strided_slice %10 {offsets = [0, 0], sizes = [4, 255], strides = [1, 1]} : vector<4x256xf32> to vector<4x255xf32>
    %93 = tpu.concatenate %91, %92 in 1 : vector<4x1xf32>, vector<4x255xf32> -> vector<4x256xf32>
    %c0_i32_33 = arith.constant 0 : i32
    %94 = vector.broadcast %c0_i32_33 : i32 to vector<1x256xi32>
    %95 = arith.addi %11, %94 : vector<1x256xi32>
    %c0_i32_34 = arith.constant 0 : i32
    %96 = vector.broadcast %c0_i32_34 : i32 to vector<1x256xi32>
    %97 = arith.cmpi sge, %95, %96 : vector<1x256xi32>
    %c0_i32_35 = arith.constant 0 : i32
    %98 = vector.broadcast %c0_i32_35 : i32 to vector<1x256xi32>
    %99 = arith.addi %11, %98 : vector<1x256xi32>
    %c16_i32_36 = arith.constant 16 : i32
    %100 = vector.broadcast %c16_i32_36 : i32 to vector<1x256xi32>
    %101 = arith.cmpi slt, %99, %100 : vector<1x256xi32>
    %102 = arith.andi %97, %101 : vector<1x256xi1>
    %c-1_i32_37 = arith.constant -1 : i32
    %103 = vector.broadcast %c-1_i32_37 : i32 to vector<1x256xi32>
    %104 = arith.addi %12, %103 : vector<1x256xi32>
    %c0_i32_38 = arith.constant 0 : i32
    %105 = vector.broadcast %c0_i32_38 : i32 to vector<1x256xi32>
    %106 = arith.cmpi sge, %104, %105 : vector<1x256xi32>
    %107 = arith.andi %102, %106 : vector<1x256xi1>
    %c-1_i32_39 = arith.constant -1 : i32
    %108 = vector.broadcast %c-1_i32_39 : i32 to vector<1x256xi32>
    %109 = arith.addi %12, %108 : vector<1x256xi32>
    %c16_i32_40 = arith.constant 16 : i32
    %110 = vector.broadcast %c16_i32_40 : i32 to vector<1x256xi32>
    %111 = arith.cmpi slt, %109, %110 : vector<1x256xi32>
    %112 = arith.andi %107, %111 : vector<1x256xi1>
    %cst_41 = arith.constant 0.000000e+00 : f32
    %113 = vector.shape_cast %112 : vector<1x256xi1> to vector<1x256xi1>
    %114 = vector.broadcast %113 : vector<1x256xi1> to vector<4x256xi1>
    %115 = vector.broadcast %cst_41 : f32 to vector<4x256xf32>
    %116 = arith.select %114, %93, %115 : vector<4x256xi1>, vector<4x256xf32>
    %c0_i32_42 = arith.constant 0 : i32
    %117 = vector.broadcast %c0_i32_42 : i32 to vector<1x256xi32>
    %118 = arith.addi %11, %117 : vector<1x256xi32>
    %c0_i32_43 = arith.constant 0 : i32
    %119 = vector.broadcast %c0_i32_43 : i32 to vector<1x256xi32>
    %120 = arith.cmpi sge, %118, %119 : vector<1x256xi32>
    %c0_i32_44 = arith.constant 0 : i32
    %121 = vector.broadcast %c0_i32_44 : i32 to vector<1x256xi32>
    %122 = arith.addi %11, %121 : vector<1x256xi32>
    %c16_i32_45 = arith.constant 16 : i32
    %123 = vector.broadcast %c16_i32_45 : i32 to vector<1x256xi32>
    %124 = arith.cmpi slt, %122, %123 : vector<1x256xi32>
    %125 = arith.andi %120, %124 : vector<1x256xi1>
    %c0_i32_46 = arith.constant 0 : i32
    %126 = vector.broadcast %c0_i32_46 : i32 to vector<1x256xi32>
    %127 = arith.addi %12, %126 : vector<1x256xi32>
    %c0_i32_47 = arith.constant 0 : i32
    %128 = vector.broadcast %c0_i32_47 : i32 to vector<1x256xi32>
    %129 = arith.cmpi sge, %127, %128 : vector<1x256xi32>
    %130 = arith.andi %125, %129 : vector<1x256xi1>
    %c0_i32_48 = arith.constant 0 : i32
    %131 = vector.broadcast %c0_i32_48 : i32 to vector<1x256xi32>
    %132 = arith.addi %12, %131 : vector<1x256xi32>
    %c16_i32_49 = arith.constant 16 : i32
    %133 = vector.broadcast %c16_i32_49 : i32 to vector<1x256xi32>
    %134 = arith.cmpi slt, %132, %133 : vector<1x256xi32>
    %135 = arith.andi %130, %134 : vector<1x256xi1>
    %cst_50 = arith.constant 0.000000e+00 : f32
    %136 = vector.shape_cast %135 : vector<1x256xi1> to vector<1x256xi1>
    %137 = vector.broadcast %136 : vector<1x256xi1> to vector<4x256xi1>
    %138 = vector.broadcast %cst_50 : f32 to vector<4x256xf32>
    %139 = arith.select %137, %10, %138 : vector<4x256xi1>, vector<4x256xf32>
    %140 = vector.extract_strided_slice %10 {offsets = [0, 1], sizes = [4, 255], strides = [1, 1]} : vector<4x256xf32> to vector<4x255xf32>
    %141 = vector.extract_strided_slice %10 {offsets = [0, 0], sizes = [4, 1], strides = [1, 1]} : vector<4x256xf32> to vector<4x1xf32>
    %142 = tpu.concatenate %140, %141 in 1 : vector<4x255xf32>, vector<4x1xf32> -> vector<4x256xf32>
    %c0_i32_51 = arith.constant 0 : i32
    %143 = vector.broadcast %c0_i32_51 : i32 to vector<1x256xi32>
    %144 = arith.addi %11, %143 : vector<1x256xi32>
    %c0_i32_52 = arith.constant 0 : i32
    %145 = vector.broadcast %c0_i32_52 : i32 to vector<1x256xi32>
    %146 = arith.cmpi sge, %144, %145 : vector<1x256xi32>
    %c0_i32_53 = arith.constant 0 : i32
    %147 = vector.broadcast %c0_i32_53 : i32 to vector<1x256xi32>
    %148 = arith.addi %11, %147 : vector<1x256xi32>
    %c16_i32_54 = arith.constant 16 : i32
    %149 = vector.broadcast %c16_i32_54 : i32 to vector<1x256xi32>
    %150 = arith.cmpi slt, %148, %149 : vector<1x256xi32>
    %151 = arith.andi %146, %150 : vector<1x256xi1>
    %c1_i32_55 = arith.constant 1 : i32
    %152 = vector.broadcast %c1_i32_55 : i32 to vector<1x256xi32>
    %153 = arith.addi %12, %152 : vector<1x256xi32>
    %c0_i32_56 = arith.constant 0 : i32
    %154 = vector.broadcast %c0_i32_56 : i32 to vector<1x256xi32>
    %155 = arith.cmpi sge, %153, %154 : vector<1x256xi32>
    %156 = arith.andi %151, %155 : vector<1x256xi1>
    %c1_i32_57 = arith.constant 1 : i32
    %157 = vector.broadcast %c1_i32_57 : i32 to vector<1x256xi32>
    %158 = arith.addi %12, %157 : vector<1x256xi32>
    %c16_i32_58 = arith.constant 16 : i32
    %159 = vector.broadcast %c16_i32_58 : i32 to vector<1x256xi32>
    %160 = arith.cmpi slt, %158, %159 : vector<1x256xi32>
    %161 = arith.andi %156, %160 : vector<1x256xi1>
    %cst_59 = arith.constant 0.000000e+00 : f32
    %162 = vector.shape_cast %161 : vector<1x256xi1> to vector<1x256xi1>
    %163 = vector.broadcast %162 : vector<1x256xi1> to vector<4x256xi1>
    %164 = vector.broadcast %cst_59 : f32 to vector<4x256xf32>
    %165 = arith.select %163, %142, %164 : vector<4x256xi1>, vector<4x256xf32>
    %166 = vector.extract_strided_slice %10 {offsets = [0, 15], sizes = [4, 241], strides = [1, 1]} : vector<4x256xf32> to vector<4x241xf32>
    %167 = vector.extract_strided_slice %10 {offsets = [0, 0], sizes = [4, 15], strides = [1, 1]} : vector<4x256xf32> to vector<4x15xf32>
    %168 = tpu.concatenate %166, %167 in 1 : vector<4x241xf32>, vector<4x15xf32> -> vector<4x256xf32>
    %c1_i32_60 = arith.constant 1 : i32
    %169 = vector.broadcast %c1_i32_60 : i32 to vector<1x256xi32>
    %170 = arith.addi %11, %169 : vector<1x256xi32>
    %c0_i32_61 = arith.constant 0 : i32
    %171 = vector.broadcast %c0_i32_61 : i32 to vector<1x256xi32>
    %172 = arith.cmpi sge, %170, %171 : vector<1x256xi32>
    %c1_i32_62 = arith.constant 1 : i32
    %173 = vector.broadcast %c1_i32_62 : i32 to vector<1x256xi32>
    %174 = arith.addi %11, %173 : vector<1x256xi32>
    %c16_i32_63 = arith.constant 16 : i32
    %175 = vector.broadcast %c16_i32_63 : i32 to vector<1x256xi32>
    %176 = arith.cmpi slt, %174, %175 : vector<1x256xi32>
    %177 = arith.andi %172, %176 : vector<1x256xi1>
    %c-1_i32_64 = arith.constant -1 : i32
    %178 = vector.broadcast %c-1_i32_64 : i32 to vector<1x256xi32>
    %179 = arith.addi %12, %178 : vector<1x256xi32>
    %c0_i32_65 = arith.constant 0 : i32
    %180 = vector.broadcast %c0_i32_65 : i32 to vector<1x256xi32>
    %181 = arith.cmpi sge, %179, %180 : vector<1x256xi32>
    %182 = arith.andi %177, %181 : vector<1x256xi1>
    %c-1_i32_66 = arith.constant -1 : i32
    %183 = vector.broadcast %c-1_i32_66 : i32 to vector<1x256xi32>
    %184 = arith.addi %12, %183 : vector<1x256xi32>
    %c16_i32_67 = arith.constant 16 : i32
    %185 = vector.broadcast %c16_i32_67 : i32 to vector<1x256xi32>
    %186 = arith.cmpi slt, %184, %185 : vector<1x256xi32>
    %187 = arith.andi %182, %186 : vector<1x256xi1>
    %cst_68 = arith.constant 0.000000e+00 : f32
    %188 = vector.shape_cast %187 : vector<1x256xi1> to vector<1x256xi1>
    %189 = vector.broadcast %188 : vector<1x256xi1> to vector<4x256xi1>
    %190 = vector.broadcast %cst_68 : f32 to vector<4x256xf32>
    %191 = arith.select %189, %168, %190 : vector<4x256xi1>, vector<4x256xf32>
    %192 = vector.extract_strided_slice %10 {offsets = [0, 16], sizes = [4, 240], strides = [1, 1]} : vector<4x256xf32> to vector<4x240xf32>
    %193 = vector.extract_strided_slice %10 {offsets = [0, 0], sizes = [4, 16], strides = [1, 1]} : vector<4x256xf32> to vector<4x16xf32>
    %194 = tpu.concatenate %192, %193 in 1 : vector<4x240xf32>, vector<4x16xf32> -> vector<4x256xf32>
    %c1_i32_69 = arith.constant 1 : i32
    %195 = vector.broadcast %c1_i32_69 : i32 to vector<1x256xi32>
    %196 = arith.addi %11, %195 : vector<1x256xi32>
    %c0_i32_70 = arith.constant 0 : i32
    %197 = vector.broadcast %c0_i32_70 : i32 to vector<1x256xi32>
    %198 = arith.cmpi sge, %196, %197 : vector<1x256xi32>
    %c1_i32_71 = arith.constant 1 : i32
    %199 = vector.broadcast %c1_i32_71 : i32 to vector<1x256xi32>
    %200 = arith.addi %11, %199 : vector<1x256xi32>
    %c16_i32_72 = arith.constant 16 : i32
    %201 = vector.broadcast %c16_i32_72 : i32 to vector<1x256xi32>
    %202 = arith.cmpi slt, %200, %201 : vector<1x256xi32>
    %203 = arith.andi %198, %202 : vector<1x256xi1>
    %c0_i32_73 = arith.constant 0 : i32
    %204 = vector.broadcast %c0_i32_73 : i32 to vector<1x256xi32>
    %205 = arith.addi %12, %204 : vector<1x256xi32>
    %c0_i32_74 = arith.constant 0 : i32
    %206 = vector.broadcast %c0_i32_74 : i32 to vector<1x256xi32>
    %207 = arith.cmpi sge, %205, %206 : vector<1x256xi32>
    %208 = arith.andi %203, %207 : vector<1x256xi1>
    %c0_i32_75 = arith.constant 0 : i32
    %209 = vector.broadcast %c0_i32_75 : i32 to vector<1x256xi32>
    %210 = arith.addi %12, %209 : vector<1x256xi32>
    %c16_i32_76 = arith.constant 16 : i32
    %211 = vector.broadcast %c16_i32_76 : i32 to vector<1x256xi32>
    %212 = arith.cmpi slt, %210, %211 : vector<1x256xi32>
    %213 = arith.andi %208, %212 : vector<1x256xi1>
    %cst_77 = arith.constant 0.000000e+00 : f32
    %214 = vector.shape_cast %213 : vector<1x256xi1> to vector<1x256xi1>
    %215 = vector.broadcast %214 : vector<1x256xi1> to vector<4x256xi1>
    %216 = vector.broadcast %cst_77 : f32 to vector<4x256xf32>
    %217 = arith.select %215, %194, %216 : vector<4x256xi1>, vector<4x256xf32>
    %218 = vector.extract_strided_slice %10 {offsets = [0, 17], sizes = [4, 239], strides = [1, 1]} : vector<4x256xf32> to vector<4x239xf32>
    %219 = vector.extract_strided_slice %10 {offsets = [0, 0], sizes = [4, 17], strides = [1, 1]} : vector<4x256xf32> to vector<4x17xf32>
    %220 = tpu.concatenate %218, %219 in 1 : vector<4x239xf32>, vector<4x17xf32> -> vector<4x256xf32>
    %c1_i32_78 = arith.constant 1 : i32
    %221 = vector.broadcast %c1_i32_78 : i32 to vector<1x256xi32>
    %222 = arith.addi %11, %221 : vector<1x256xi32>
    %c0_i32_79 = arith.constant 0 : i32
    %223 = vector.broadcast %c0_i32_79 : i32 to vector<1x256xi32>
    %224 = arith.cmpi sge, %222, %223 : vector<1x256xi32>
    %c1_i32_80 = arith.constant 1 : i32
    %225 = vector.broadcast %c1_i32_80 : i32 to vector<1x256xi32>
    %226 = arith.addi %11, %225 : vector<1x256xi32>
    %c16_i32_81 = arith.constant 16 : i32
    %227 = vector.broadcast %c16_i32_81 : i32 to vector<1x256xi32>
    %228 = arith.cmpi slt, %226, %227 : vector<1x256xi32>
    %229 = arith.andi %224, %228 : vector<1x256xi1>
    %c1_i32_82 = arith.constant 1 : i32
    %230 = vector.broadcast %c1_i32_82 : i32 to vector<1x256xi32>
    %231 = arith.addi %12, %230 : vector<1x256xi32>
    %c0_i32_83 = arith.constant 0 : i32
    %232 = vector.broadcast %c0_i32_83 : i32 to vector<1x256xi32>
    %233 = arith.cmpi sge, %231, %232 : vector<1x256xi32>
    %234 = arith.andi %229, %233 : vector<1x256xi1>
    %c1_i32_84 = arith.constant 1 : i32
    %235 = vector.broadcast %c1_i32_84 : i32 to vector<1x256xi32>
    %236 = arith.addi %12, %235 : vector<1x256xi32>
    %c16_i32_85 = arith.constant 16 : i32
    %237 = vector.broadcast %c16_i32_85 : i32 to vector<1x256xi32>
    %238 = arith.cmpi slt, %236, %237 : vector<1x256xi32>
    %239 = arith.andi %234, %238 : vector<1x256xi1>
    %cst_86 = arith.constant 0.000000e+00 : f32
    %240 = vector.shape_cast %239 : vector<1x256xi1> to vector<1x256xi1>
    %241 = vector.broadcast %240 : vector<1x256xi1> to vector<4x256xi1>
    %242 = vector.broadcast %cst_86 : f32 to vector<4x256xf32>
    %243 = arith.select %241, %220, %242 : vector<4x256xi1>, vector<4x256xf32>
    %244 = tpu.concatenate %38, %64, %90, %116, %139, %165, %191, %217, %243 in 0 : vector<4x256xf32>, vector<4x256xf32>, vector<4x256xf32>, vector<4x256xf32>, vector<4x256xf32>, vector<4x256xf32>, vector<4x256xf32>, vector<4x256xf32>, vector<4x256xf32> -> vector<36x256xf32>
    %245 = arith.truncf %244 : vector<36x256xf32> to vector<36x256xbf16>
    %c0_87 = arith.constant 0 : index
    %c0_88 = arith.constant 0 : index
    %246 = vector.load %arg4[%c0_87, %c0_88] : memref<8x36xbf16, #tpu.memory_space<vmem>>, vector<8x36xbf16>
    %cst_89 = arith.constant dense<0.000000e+00> : vector<8x256xf32>
    %247 = tpu.matmul %246, %245, %cst_89 {dimension_numbers = #tpu.dot_dimension_numbers<[1], [0], [0], [1], [0, 0, 1, 1], [], []>} : vector<8x36xbf16>, vector<36x256xbf16>, vector<8x256xf32> -> vector<8x256xf32>
    %248 = arith.truncf %247 : vector<8x256xf32> to vector<8x256xbf16>
    %c0_90 = arith.constant 0 : index
    %c0_91 = arith.constant 0 : index
    %c0_92 = arith.constant 0 : index
    %249 = vector.load %arg7[%c0_90, %c0_91, %c0_92] : memref<1x8x256xbf16, #tpu.memory_space<vmem>>, vector<1x8x256xbf16>
    %250 = vector.shape_cast %249 : vector<1x8x256xbf16> to vector<8x256xbf16>
    %251 = vector.shape_cast %248 : vector<8x256xbf16> to vector<1x8x256xbf16>
    tpu.vector_store %arg7[%c0_90, %c0_91, %c0_92], %251 {strides = array<i32>} : memref<1x8x256xbf16, #tpu.memory_space<vmem>>, vector<1x8x256xbf16>,
    %cst_93 = arith.constant dense<0.000000e+00> : vector<8xf32>
    %252 = vector.multi_reduction <add>, %247, %cst_93 [1] : vector<8x256xf32> to vector<8xf32>
    %253 = vector.shape_cast %252 : vector<8xf32> to vector<8x1xf32>
    %c0_94 = arith.constant 0 : index
    %c0_95 = arith.constant 0 : index
    %c0_96 = arith.constant 0 : index
    %254 = vector.load %arg8[%c0_94, %c0_95, %c0_96] : memref<1x8x1xf32, #tpu.memory_space<vmem>>, vector<1x8x1xf32>
    %255 = vector.shape_cast %254 : vector<1x8x1xf32> to vector<8x1xf32>
    %256 = vector.shape_cast %253 : vector<8x1xf32> to vector<1x8x1xf32>
    tpu.vector_store %arg8[%c0_94, %c0_95, %c0_96], %256 {strides = array<i32>} : memref<1x8x1xf32, #tpu.memory_space<vmem>>, vector<1x8x1xf32>,
    %257 = arith.mulf %247, %247 : vector<8x256xf32>
    %cst_97 = arith.constant dense<0.000000e+00> : vector<8xf32>
    %258 = vector.multi_reduction <add>, %257, %cst_97 [1] : vector<8x256xf32> to vector<8xf32>
    %259 = vector.shape_cast %258 : vector<8xf32> to vector<8x1xf32>
    %c0_98 = arith.constant 0 : index
    %c0_99 = arith.constant 0 : index
    %c0_100 = arith.constant 0 : index
    %260 = vector.load %arg9[%c0_98, %c0_99, %c0_100] : memref<1x8x1xf32, #tpu.memory_space<vmem>>, vector<1x8x1xf32>
    %261 = vector.shape_cast %260 : vector<1x8x1xf32> to vector<8x1xf32>
    %262 = vector.shape_cast %259 : vector<8x1xf32> to vector<1x8x1xf32>
    tpu.vector_store %arg9[%c0_98, %c0_99, %c0_100], %262 {strides = array<i32>} : memref<1x8x1xf32, #tpu.memory_space<vmem>>, vector<1x8x1xf32>,
    return
  }
  func.func @transform_0(%arg0: i32) -> (i32, i32, i32) {
    %c0_i32 = arith.constant 0 : i32
    %c0_i32_0 = arith.constant 0 : i32
    %c0_i32_1 = arith.constant 0 : i32
    return %arg0, %c0_i32, %c0_i32_0 : i32, i32, i32
  }
  func.func @transform_1(%arg0: i32) -> (i32, i32) {
    %c0_i32 = arith.constant 0 : i32
    %c0_i32_0 = arith.constant 0 : i32
    %c0_i32_1 = arith.constant 0 : i32
    return %c0_i32, %c0_i32_0 : i32, i32
  }
  func.func @transform_2(%arg0: i32) -> (i32, i32) {
    %c0_i32 = arith.constant 0 : i32
    %c0_i32_0 = arith.constant 0 : i32
    %c0_i32_1 = arith.constant 0 : i32
    return %c0_i32, %c0_i32_0 : i32, i32
  }
  func.func @transform_3(%arg0: i32) -> (i32, i32) {
    %c0_i32 = arith.constant 0 : i32
    %c0_i32_0 = arith.constant 0 : i32
    %c0_i32_1 = arith.constant 0 : i32
    return %c0_i32, %c0_i32_0 : i32, i32
  }
  func.func @transform_4(%arg0: i32) -> (i32, i32) {
    %c0_i32 = arith.constant 0 : i32
    %c0_i32_0 = arith.constant 0 : i32
    %c0_i32_1 = arith.constant 0 : i32
    return %c0_i32, %c0_i32_0 : i32, i32
  }
  func.func @transform_5(%arg0: i32) -> (i32, i32) {
    %c0_i32 = arith.constant 0 : i32
    %c0_i32_0 = arith.constant 0 : i32
    %c0_i32_1 = arith.constant 0 : i32
    return %c0_i32, %c0_i32_0 : i32, i32
  }
  func.func @transform_6(%arg0: i32) -> (i32, i32, i32) {
    %c0_i32 = arith.constant 0 : i32
    %c0_i32_0 = arith.constant 0 : i32
    %c0_i32_1 = arith.constant 0 : i32
    return %arg0, %c0_i32, %c0_i32_0 : i32, i32, i32
  }
  func.func @transform_7(%arg0: i32) -> (i32, i32, i32) {
    %c0_i32 = arith.constant 0 : i32
    %c0_i32_0 = arith.constant 0 : i32
    %c0_i32_1 = arith.constant 0 : i32
    return %arg0, %c0_i32, %c0_i32_0 : i32, i32, i32
  }
  func.func @transform_8(%arg0: i32) -> (i32, i32, i32) {
    %c0_i32 = arith.constant 0 : i32
    %c0_i32_0 = arith.constant 0 : i32
    %c0_i32_1 = arith.constant 0 : i32
    return %arg0, %c0_i32, %c0_i32_0 : i32, i32, i32
  }
}

module attributes {stable_mosaic.version = 11 : i64} {
  func.func @_finalize_kernel(%arg0: i32, %arg1: i32, %arg2: memref<1x8x256xbf16, #tpu.memory_space<vmem>>, %arg3: memref<1x8x256xbf16, #tpu.memory_space<vmem>>, %arg4: memref<1x8x256xbf16, #tpu.memory_space<vmem>>, %arg5: memref<1x8x256xbf16, #tpu.memory_space<vmem>>, %arg6: memref<32x1xf32, #tpu.memory_space<vmem>>, %arg7: memref<32x1xf32, #tpu.memory_space<vmem>>, %arg8: memref<1x32x256xbf16, #tpu.memory_space<vmem>>, %arg9: memref<1x32x1xf32, #tpu.memory_space<vmem>>) attributes {dimension_semantics = [#tpu.dimension_semantics<parallel>, #tpu.dimension_semantics<arbitrary>], iteration_bounds = array<i64: 2, 1>, scalar_prefetch = 0 : i64, scratch_operands = 0 : i64, tpu.core_type = #tpu.core_type<tc>, window_params = [{transform_indices = @transform_0, window_bounds = array<i64: 1, 8, 256>}, {transform_indices = @transform_1, window_bounds = array<i64: 1, 8, 256>}, {transform_indices = @transform_2, window_bounds = array<i64: 1, 8, 256>}, {transform_indices = @transform_3, window_bounds = array<i64: 1, 8, 256>}, {pipeline_mode = #tpu.pipeline_mode<synchronous>, transform_indices = @transform_4, window_bounds = array<i64: 32, 1>}, {pipeline_mode = #tpu.pipeline_mode<synchronous>, transform_indices = @transform_5, window_bounds = array<i64: 32, 1>}, {transform_indices = @transform_6, window_bounds = array<i64: 1, 32, 256>}, {transform_indices = @transform_7, window_bounds = array<i64: 1, 32, 1>}]} {
    %c0_i32 = arith.constant 0 : i32
    %0 = arith.cmpi eq, %arg1, %c0_i32 : i32
    %1 = arith.extui %0 : i1 to i32
    %c0_i32_0 = arith.constant 0 : i32
    %2 = arith.cmpi ne, %1, %c0_i32_0 : i32
    scf.if %2 {
      %cst_26 = arith.constant 0.000000e+00 : f32
      %33 = vector.broadcast %cst_26 : f32 to vector<1x32x1xf32>
      %c0_27 = arith.constant 0 : index
      %c0_28 = arith.constant 0 : index
      %c0_29 = arith.constant 0 : index
      %34 = vector.load %arg9[%c0_27, %c0_28, %c0_29] : memref<1x32x1xf32, #tpu.memory_space<vmem>>, vector<1x32x1xf32>
      tpu.vector_store %arg9[%c0_27, %c0_28, %c0_29], %33 {strides = array<i32>} : memref<1x32x1xf32, #tpu.memory_space<vmem>>, vector<1x32x1xf32>,
    } else {
    }
    %c0 = arith.constant 0 : index
    %c0_1 = arith.constant 0 : index
    %c0_2 = arith.constant 0 : index
    %3 = vector.load %arg2[%c0, %c0_1, %c0_2] : memref<1x8x256xbf16, #tpu.memory_space<vmem>>, vector<1x8x256xbf16>
    %4 = vector.shape_cast %3 : vector<1x8x256xbf16> to vector<8x256xbf16>
    %c0_3 = arith.constant 0 : index
    %c0_4 = arith.constant 0 : index
    %c0_5 = arith.constant 0 : index
    %5 = vector.load %arg3[%c0_3, %c0_4, %c0_5] : memref<1x8x256xbf16, #tpu.memory_space<vmem>>, vector<1x8x256xbf16>
    %6 = vector.shape_cast %5 : vector<1x8x256xbf16> to vector<8x256xbf16>
    %c0_6 = arith.constant 0 : index
    %c0_7 = arith.constant 0 : index
    %c0_8 = arith.constant 0 : index
    %7 = vector.load %arg4[%c0_6, %c0_7, %c0_8] : memref<1x8x256xbf16, #tpu.memory_space<vmem>>, vector<1x8x256xbf16>
    %8 = vector.shape_cast %7 : vector<1x8x256xbf16> to vector<8x256xbf16>
    %c0_9 = arith.constant 0 : index
    %c0_10 = arith.constant 0 : index
    %c0_11 = arith.constant 0 : index
    %9 = vector.load %arg5[%c0_9, %c0_10, %c0_11] : memref<1x8x256xbf16, #tpu.memory_space<vmem>>, vector<1x8x256xbf16>
    %10 = vector.shape_cast %9 : vector<1x8x256xbf16> to vector<8x256xbf16>
    %11 = tpu.concatenate %4, %6, %8, %10 in 0 : vector<8x256xbf16>, vector<8x256xbf16>, vector<8x256xbf16>, vector<8x256xbf16> -> vector<32x256xbf16>
    %12 = arith.extf %11 : vector<32x256xbf16> to vector<32x256xf32>
    %c0_12 = arith.constant 0 : index
    %c0_13 = arith.constant 0 : index
    %13 = vector.load %arg6[%c0_12, %c0_13] : memref<32x1xf32, #tpu.memory_space<vmem>>, vector<32x1xf32>
    %14 = vector.broadcast %13 : vector<32x1xf32> to vector<32x256xf32>
    %15 = arith.mulf %12, %14 : vector<32x256xf32>
    %c0_14 = arith.constant 0 : index
    %c0_15 = arith.constant 0 : index
    %16 = vector.load %arg7[%c0_14, %c0_15] : memref<32x1xf32, #tpu.memory_space<vmem>>, vector<32x1xf32>
    %17 = vector.broadcast %16 : vector<32x1xf32> to vector<32x256xf32>
    %18 = arith.addf %15, %17 : vector<32x256xf32>
    %cst = arith.constant 0.000000e+00 : f32
    %19 = vector.broadcast %cst : f32 to vector<32x256xf32>
    %20 = arith.maximumf %18, %19 : vector<32x256xf32>
    %21 = arith.truncf %20 : vector<32x256xf32> to vector<32x256xbf16>
    %c0_16 = arith.constant 0 : index
    %c0_17 = arith.constant 0 : index
    %c0_18 = arith.constant 0 : index
    %22 = vector.load %arg8[%c0_16, %c0_17, %c0_18] : memref<1x32x256xbf16, #tpu.memory_space<vmem>>, vector<1x32x256xbf16>
    %23 = vector.shape_cast %22 : vector<1x32x256xbf16> to vector<32x256xbf16>
    %24 = vector.shape_cast %21 : vector<32x256xbf16> to vector<1x32x256xbf16>
    tpu.vector_store %arg8[%c0_16, %c0_17, %c0_18], %24 {strides = array<i32>} : memref<1x32x256xbf16, #tpu.memory_space<vmem>>, vector<1x32x256xbf16>,
    %c0_19 = arith.constant 0 : index
    %c0_20 = arith.constant 0 : index
    %c0_21 = arith.constant 0 : index
    %25 = vector.load %arg9[%c0_19, %c0_20, %c0_21] : memref<1x32x1xf32, #tpu.memory_space<vmem>>, vector<1x32x1xf32>
    %26 = vector.shape_cast %25 : vector<1x32x1xf32> to vector<32x1xf32>
    %cst_22 = arith.constant dense<0.000000e+00> : vector<32xf32>
    %27 = vector.multi_reduction <add>, %20, %cst_22 [1] : vector<32x256xf32> to vector<32xf32>
    %28 = vector.shape_cast %27 : vector<32xf32> to vector<32x1xf32>
    %29 = arith.addf %26, %28 : vector<32x1xf32>
    %c0_23 = arith.constant 0 : index
    %c0_24 = arith.constant 0 : index
    %c0_25 = arith.constant 0 : index
    %30 = vector.load %arg9[%c0_23, %c0_24, %c0_25] : memref<1x32x1xf32, #tpu.memory_space<vmem>>, vector<1x32x1xf32>
    %31 = vector.shape_cast %30 : vector<1x32x1xf32> to vector<32x1xf32>
    %32 = vector.shape_cast %29 : vector<32x1xf32> to vector<1x32x1xf32>
    tpu.vector_store %arg9[%c0_23, %c0_24, %c0_25], %32 {strides = array<i32>} : memref<1x32x1xf32, #tpu.memory_space<vmem>>, vector<1x32x1xf32>,
    return
  }
  func.func @transform_0(%arg0: i32, %arg1: i32) -> (i32, i32, i32) {
    %c0_i32 = arith.constant 0 : i32
    %c0_i32_0 = arith.constant 0 : i32
    return %arg0, %c0_i32, %arg1 : i32, i32, i32
  }
  func.func @transform_1(%arg0: i32, %arg1: i32) -> (i32, i32, i32) {
    %c0_i32 = arith.constant 0 : i32
    %c0_i32_0 = arith.constant 0 : i32
    return %arg0, %c0_i32, %arg1 : i32, i32, i32
  }
  func.func @transform_2(%arg0: i32, %arg1: i32) -> (i32, i32, i32) {
    %c0_i32 = arith.constant 0 : i32
    %c0_i32_0 = arith.constant 0 : i32
    return %arg0, %c0_i32, %arg1 : i32, i32, i32
  }
  func.func @transform_3(%arg0: i32, %arg1: i32) -> (i32, i32, i32) {
    %c0_i32 = arith.constant 0 : i32
    %c0_i32_0 = arith.constant 0 : i32
    return %arg0, %c0_i32, %arg1 : i32, i32, i32
  }
  func.func @transform_4(%arg0: i32, %arg1: i32) -> (i32, i32) {
    %c0_i32 = arith.constant 0 : i32
    %c0_i32_0 = arith.constant 0 : i32
    %c0_i32_1 = arith.constant 0 : i32
    return %c0_i32, %c0_i32_0 : i32, i32
  }
  func.func @transform_5(%arg0: i32, %arg1: i32) -> (i32, i32) {
    %c0_i32 = arith.constant 0 : i32
    %c0_i32_0 = arith.constant 0 : i32
    %c0_i32_1 = arith.constant 0 : i32
    return %c0_i32, %c0_i32_0 : i32, i32
  }
  func.func @transform_6(%arg0: i32, %arg1: i32) -> (i32, i32, i32) {
    %c0_i32 = arith.constant 0 : i32
    %c0_i32_0 = arith.constant 0 : i32
    return %arg0, %c0_i32, %arg1 : i32, i32, i32
  }
  func.func @transform_7(%arg0: i32, %arg1: i32) -> (i32, i32, i32) {
    %c0_i32 = arith.constant 0 : i32
    %c0_i32_0 = arith.constant 0 : i32
    %c0_i32_1 = arith.constant 0 : i32
    return %arg0, %c0_i32, %c0_i32_0 : i32, i32, i32
  }
}

module attributes {stable_mosaic.version = 11 : i64} {
  func.func @_convk_kernel(%arg0: i32, %arg1: memref<1x4x256xbf16, #tpu.memory_space<vmem>>, %arg2: memref<1x256xi32, #tpu.memory_space<vmem>>, %arg3: memref<1x256xi32, #tpu.memory_space<vmem>>, %arg4: memref<8x100xbf16, #tpu.memory_space<vmem>>, %arg5: memref<4x1xf32, #tpu.memory_space<vmem>>, %arg6: memref<4x1xf32, #tpu.memory_space<vmem>>, %arg7: memref<1x8x256xbf16, #tpu.memory_space<vmem>>, %arg8: memref<1x8x1xf32, #tpu.memory_space<vmem>>, %arg9: memref<1x8x1xf32, #tpu.memory_space<vmem>>) attributes {dimension_semantics = [#tpu.dimension_semantics<parallel>], iteration_bounds = array<i64: 2>, scalar_prefetch = 0 : i64, scratch_operands = 0 : i64, tpu.core_type = #tpu.core_type<tc>, window_params = [{transform_indices = @transform_0, window_bounds = array<i64: 1, 4, 256>}, {pipeline_mode = #tpu.pipeline_mode<synchronous>, transform_indices = @transform_1, window_bounds = array<i64: 1, 256>}, {pipeline_mode = #tpu.pipeline_mode<synchronous>, transform_indices = @transform_2, window_bounds = array<i64: 1, 256>}, {pipeline_mode = #tpu.pipeline_mode<synchronous>, transform_indices = @transform_3, window_bounds = array<i64: 8, 100>}, {pipeline_mode = #tpu.pipeline_mode<synchronous>, transform_indices = @transform_4, window_bounds = array<i64: 4, 1>}, {pipeline_mode = #tpu.pipeline_mode<synchronous>, transform_indices = @transform_5, window_bounds = array<i64: 4, 1>}, {transform_indices = @transform_6, window_bounds = array<i64: 1, 8, 256>}, {transform_indices = @transform_7, window_bounds = array<i64: 1, 8, 1>}, {transform_indices = @transform_8, window_bounds = array<i64: 1, 8, 1>}]} {
    %c0 = arith.constant 0 : index
    %c0_0 = arith.constant 0 : index
    %c0_1 = arith.constant 0 : index
    %0 = vector.load %arg1[%c0, %c0_0, %c0_1] : memref<1x4x256xbf16, #tpu.memory_space<vmem>>, vector<1x4x256xbf16>
    %1 = vector.shape_cast %0 : vector<1x4x256xbf16> to vector<4x256xbf16>
    %2 = arith.extf %1 : vector<4x256xbf16> to vector<4x256xf32>
    %c0_2 = arith.constant 0 : index
    %c0_3 = arith.constant 0 : index
    %3 = vector.load %arg5[%c0_2, %c0_3] : memref<4x1xf32, #tpu.memory_space<vmem>>, vector<4x1xf32>
    %4 = vector.broadcast %3 : vector<4x1xf32> to vector<4x256xf32>
    %5 = arith.mulf %2, %4 : vector<4x256xf32>
    %c0_4 = arith.constant 0 : index
    %c0_5 = arith.constant 0 : index
    %6 = vector.load %arg6[%c0_4, %c0_5] : memref<4x1xf32, #tpu.memory_space<vmem>>, vector<4x1xf32>
    %7 = vector.broadcast %6 : vector<4x1xf32> to vector<4x256xf32>
    %8 = arith.addf %5, %7 : vector<4x256xf32>
    %cst = arith.constant 0.000000e+00 : f32
    %9 = vector.broadcast %cst : f32 to vector<4x256xf32>
    %10 = arith.maximumf %8, %9 : vector<4x256xf32>
    %c0_6 = arith.constant 0 : index
    %c0_7 = arith.constant 0 : index
    %11 = vector.load %arg2[%c0_6, %c0_7] : memref<1x256xi32, #tpu.memory_space<vmem>>, vector<1x256xi32>
    %c0_8 = arith.constant 0 : index
    %c0_9 = arith.constant 0 : index
    %12 = vector.load %arg3[%c0_8, %c0_9] : memref<1x256xi32, #tpu.memory_space<vmem>>, vector<1x256xi32>
    %13 = vector.extract_strided_slice %10 {offsets = [0, 222], sizes = [4, 34], strides = [1, 1]} : vector<4x256xf32> to vector<4x34xf32>
    %14 = vector.extract_strided_slice %10 {offsets = [0, 0], sizes = [4, 222], strides = [1, 1]} : vector<4x256xf32> to vector<4x222xf32>
    %15 = tpu.concatenate %13, %14 in 1 : vector<4x34xf32>, vector<4x222xf32> -> vector<4x256xf32>
    %c-2_i32 = arith.constant -2 : i32
    %16 = vector.broadcast %c-2_i32 : i32 to vector<1x256xi32>
    %17 = arith.addi %11, %16 : vector<1x256xi32>
    %c0_i32 = arith.constant 0 : i32
    %18 = vector.broadcast %c0_i32 : i32 to vector<1x256xi32>
    %19 = arith.cmpi sge, %17, %18 : vector<1x256xi32>
    %c-2_i32_10 = arith.constant -2 : i32
    %20 = vector.broadcast %c-2_i32_10 : i32 to vector<1x256xi32>
    %21 = arith.addi %11, %20 : vector<1x256xi32>
    %c16_i32 = arith.constant 16 : i32
    %22 = vector.broadcast %c16_i32 : i32 to vector<1x256xi32>
    %23 = arith.cmpi slt, %21, %22 : vector<1x256xi32>
    %24 = arith.andi %19, %23 : vector<1x256xi1>
    %c-2_i32_11 = arith.constant -2 : i32
    %25 = vector.broadcast %c-2_i32_11 : i32 to vector<1x256xi32>
    %26 = arith.addi %12, %25 : vector<1x256xi32>
    %c0_i32_12 = arith.constant 0 : i32
    %27 = vector.broadcast %c0_i32_12 : i32 to vector<1x256xi32>
    %28 = arith.cmpi sge, %26, %27 : vector<1x256xi32>
    %29 = arith.andi %24, %28 : vector<1x256xi1>
    %c-2_i32_13 = arith.constant -2 : i32
    %30 = vector.broadcast %c-2_i32_13 : i32 to vector<1x256xi32>
    %31 = arith.addi %12, %30 : vector<1x256xi32>
    %c16_i32_14 = arith.constant 16 : i32
    %32 = vector.broadcast %c16_i32_14 : i32 to vector<1x256xi32>
    %33 = arith.cmpi slt, %31, %32 : vector<1x256xi32>
    %34 = arith.andi %29, %33 : vector<1x256xi1>
    %cst_15 = arith.constant 0.000000e+00 : f32
    %35 = vector.shape_cast %34 : vector<1x256xi1> to vector<1x256xi1>
    %36 = vector.broadcast %35 : vector<1x256xi1> to vector<4x256xi1>
    %37 = vector.broadcast %cst_15 : f32 to vector<4x256xf32>
    %38 = arith.select %36, %15, %37 : vector<4x256xi1>, vector<4x256xf32>
    %39 = vector.extract_strided_slice %10 {offsets = [0, 223], sizes = [4, 33], strides = [1, 1]} : vector<4x256xf32> to vector<4x33xf32>
    %40 = vector.extract_strided_slice %10 {offsets = [0, 0], sizes = [4, 223], strides = [1, 1]} : vector<4x256xf32> to vector<4x223xf32>
    %41 = tpu.concatenate %39, %40 in 1 : vector<4x33xf32>, vector<4x223xf32> -> vector<4x256xf32>
    %c-2_i32_16 = arith.constant -2 : i32
    %42 = vector.broadcast %c-2_i32_16 : i32 to vector<1x256xi32>
    %43 = arith.addi %11, %42 : vector<1x256xi32>
    %c0_i32_17 = arith.constant 0 : i32
    %44 = vector.broadcast %c0_i32_17 : i32 to vector<1x256xi32>
    %45 = arith.cmpi sge, %43, %44 : vector<1x256xi32>
    %c-2_i32_18 = arith.constant -2 : i32
    %46 = vector.broadcast %c-2_i32_18 : i32 to vector<1x256xi32>
    %47 = arith.addi %11, %46 : vector<1x256xi32>
    %c16_i32_19 = arith.constant 16 : i32
    %48 = vector.broadcast %c16_i32_19 : i32 to vector<1x256xi32>
    %49 = arith.cmpi slt, %47, %48 : vector<1x256xi32>
    %50 = arith.andi %45, %49 : vector<1x256xi1>
    %c-1_i32 = arith.constant -1 : i32
    %51 = vector.broadcast %c-1_i32 : i32 to vector<1x256xi32>
    %52 = arith.addi %12, %51 : vector<1x256xi32>
    %c0_i32_20 = arith.constant 0 : i32
    %53 = vector.broadcast %c0_i32_20 : i32 to vector<1x256xi32>
    %54 = arith.cmpi sge, %52, %53 : vector<1x256xi32>
    %55 = arith.andi %50, %54 : vector<1x256xi1>
    %c-1_i32_21 = arith.constant -1 : i32
    %56 = vector.broadcast %c-1_i32_21 : i32 to vector<1x256xi32>
    %57 = arith.addi %12, %56 : vector<1x256xi32>
    %c16_i32_22 = arith.constant 16 : i32
    %58 = vector.broadcast %c16_i32_22 : i32 to vector<1x256xi32>
    %59 = arith.cmpi slt, %57, %58 : vector<1x256xi32>
    %60 = arith.andi %55, %59 : vector<1x256xi1>
    %cst_23 = arith.constant 0.000000e+00 : f32
    %61 = vector.shape_cast %60 : vector<1x256xi1> to vector<1x256xi1>
    %62 = vector.broadcast %61 : vector<1x256xi1> to vector<4x256xi1>
    %63 = vector.broadcast %cst_23 : f32 to vector<4x256xf32>
    %64 = arith.select %62, %41, %63 : vector<4x256xi1>, vector<4x256xf32>
    %65 = vector.extract_strided_slice %10 {offsets = [0, 224], sizes = [4, 32], strides = [1, 1]} : vector<4x256xf32> to vector<4x32xf32>
    %66 = vector.extract_strided_slice %10 {offsets = [0, 0], sizes = [4, 224], strides = [1, 1]} : vector<4x256xf32> to vector<4x224xf32>
    %67 = tpu.concatenate %65, %66 in 1 : vector<4x32xf32>, vector<4x224xf32> -> vector<4x256xf32>
    %c-2_i32_24 = arith.constant -2 : i32
    %68 = vector.broadcast %c-2_i32_24 : i32 to vector<1x256xi32>
    %69 = arith.addi %11, %68 : vector<1x256xi32>
    %c0_i32_25 = arith.constant 0 : i32
    %70 = vector.broadcast %c0_i32_25 : i32 to vector<1x256xi32>
    %71 = arith.cmpi sge, %69, %70 : vector<1x256xi32>
    %c-2_i32_26 = arith.constant -2 : i32
    %72 = vector.broadcast %c-2_i32_26 : i32 to vector<1x256xi32>
    %73 = arith.addi %11, %72 : vector<1x256xi32>
    %c16_i32_27 = arith.constant 16 : i32
    %74 = vector.broadcast %c16_i32_27 : i32 to vector<1x256xi32>
    %75 = arith.cmpi slt, %73, %74 : vector<1x256xi32>
    %76 = arith.andi %71, %75 : vector<1x256xi1>
    %c0_i32_28 = arith.constant 0 : i32
    %77 = vector.broadcast %c0_i32_28 : i32 to vector<1x256xi32>
    %78 = arith.addi %12, %77 : vector<1x256xi32>
    %c0_i32_29 = arith.constant 0 : i32
    %79 = vector.broadcast %c0_i32_29 : i32 to vector<1x256xi32>
    %80 = arith.cmpi sge, %78, %79 : vector<1x256xi32>
    %81 = arith.andi %76, %80 : vector<1x256xi1>
    %c0_i32_30 = arith.constant 0 : i32
    %82 = vector.broadcast %c0_i32_30 : i32 to vector<1x256xi32>
    %83 = arith.addi %12, %82 : vector<1x256xi32>
    %c16_i32_31 = arith.constant 16 : i32
    %84 = vector.broadcast %c16_i32_31 : i32 to vector<1x256xi32>
    %85 = arith.cmpi slt, %83, %84 : vector<1x256xi32>
    %86 = arith.andi %81, %85 : vector<1x256xi1>
    %cst_32 = arith.constant 0.000000e+00 : f32
    %87 = vector.shape_cast %86 : vector<1x256xi1> to vector<1x256xi1>
    %88 = vector.broadcast %87 : vector<1x256xi1> to vector<4x256xi1>
    %89 = vector.broadcast %cst_32 : f32 to vector<4x256xf32>
    %90 = arith.select %88, %67, %89 : vector<4x256xi1>, vector<4x256xf32>
    %91 = vector.extract_strided_slice %10 {offsets = [0, 225], sizes = [4, 31], strides = [1, 1]} : vector<4x256xf32> to vector<4x31xf32>
    %92 = vector.extract_strided_slice %10 {offsets = [0, 0], sizes = [4, 225], strides = [1, 1]} : vector<4x256xf32> to vector<4x225xf32>
    %93 = tpu.concatenate %91, %92 in 1 : vector<4x31xf32>, vector<4x225xf32> -> vector<4x256xf32>
    %c-2_i32_33 = arith.constant -2 : i32
    %94 = vector.broadcast %c-2_i32_33 : i32 to vector<1x256xi32>
    %95 = arith.addi %11, %94 : vector<1x256xi32>
    %c0_i32_34 = arith.constant 0 : i32
    %96 = vector.broadcast %c0_i32_34 : i32 to vector<1x256xi32>
    %97 = arith.cmpi sge, %95, %96 : vector<1x256xi32>
    %c-2_i32_35 = arith.constant -2 : i32
    %98 = vector.broadcast %c-2_i32_35 : i32 to vector<1x256xi32>
    %99 = arith.addi %11, %98 : vector<1x256xi32>
    %c16_i32_36 = arith.constant 16 : i32
    %100 = vector.broadcast %c16_i32_36 : i32 to vector<1x256xi32>
    %101 = arith.cmpi slt, %99, %100 : vector<1x256xi32>
    %102 = arith.andi %97, %101 : vector<1x256xi1>
    %c1_i32 = arith.constant 1 : i32
    %103 = vector.broadcast %c1_i32 : i32 to vector<1x256xi32>
    %104 = arith.addi %12, %103 : vector<1x256xi32>
    %c0_i32_37 = arith.constant 0 : i32
    %105 = vector.broadcast %c0_i32_37 : i32 to vector<1x256xi32>
    %106 = arith.cmpi sge, %104, %105 : vector<1x256xi32>
    %107 = arith.andi %102, %106 : vector<1x256xi1>
    %c1_i32_38 = arith.constant 1 : i32
    %108 = vector.broadcast %c1_i32_38 : i32 to vector<1x256xi32>
    %109 = arith.addi %12, %108 : vector<1x256xi32>
    %c16_i32_39 = arith.constant 16 : i32
    %110 = vector.broadcast %c16_i32_39 : i32 to vector<1x256xi32>
    %111 = arith.cmpi slt, %109, %110 : vector<1x256xi32>
    %112 = arith.andi %107, %111 : vector<1x256xi1>
    %cst_40 = arith.constant 0.000000e+00 : f32
    %113 = vector.shape_cast %112 : vector<1x256xi1> to vector<1x256xi1>
    %114 = vector.broadcast %113 : vector<1x256xi1> to vector<4x256xi1>
    %115 = vector.broadcast %cst_40 : f32 to vector<4x256xf32>
    %116 = arith.select %114, %93, %115 : vector<4x256xi1>, vector<4x256xf32>
    %117 = vector.extract_strided_slice %10 {offsets = [0, 226], sizes = [4, 30], strides = [1, 1]} : vector<4x256xf32> to vector<4x30xf32>
    %118 = vector.extract_strided_slice %10 {offsets = [0, 0], sizes = [4, 226], strides = [1, 1]} : vector<4x256xf32> to vector<4x226xf32>
    %119 = tpu.concatenate %117, %118 in 1 : vector<4x30xf32>, vector<4x226xf32> -> vector<4x256xf32>
    %c-2_i32_41 = arith.constant -2 : i32
    %120 = vector.broadcast %c-2_i32_41 : i32 to vector<1x256xi32>
    %121 = arith.addi %11, %120 : vector<1x256xi32>
    %c0_i32_42 = arith.constant 0 : i32
    %122 = vector.broadcast %c0_i32_42 : i32 to vector<1x256xi32>
    %123 = arith.cmpi sge, %121, %122 : vector<1x256xi32>
    %c-2_i32_43 = arith.constant -2 : i32
    %124 = vector.broadcast %c-2_i32_43 : i32 to vector<1x256xi32>
    %125 = arith.addi %11, %124 : vector<1x256xi32>
    %c16_i32_44 = arith.constant 16 : i32
    %126 = vector.broadcast %c16_i32_44 : i32 to vector<1x256xi32>
    %127 = arith.cmpi slt, %125, %126 : vector<1x256xi32>
    %128 = arith.andi %123, %127 : vector<1x256xi1>
    %c2_i32 = arith.constant 2 : i32
    %129 = vector.broadcast %c2_i32 : i32 to vector<1x256xi32>
    %130 = arith.addi %12, %129 : vector<1x256xi32>
    %c0_i32_45 = arith.constant 0 : i32
    %131 = vector.broadcast %c0_i32_45 : i32 to vector<1x256xi32>
    %132 = arith.cmpi sge, %130, %131 : vector<1x256xi32>
    %133 = arith.andi %128, %132 : vector<1x256xi1>
    %c2_i32_46 = arith.constant 2 : i32
    %134 = vector.broadcast %c2_i32_46 : i32 to vector<1x256xi32>
    %135 = arith.addi %12, %134 : vector<1x256xi32>
    %c16_i32_47 = arith.constant 16 : i32
    %136 = vector.broadcast %c16_i32_47 : i32 to vector<1x256xi32>
    %137 = arith.cmpi slt, %135, %136 : vector<1x256xi32>
    %138 = arith.andi %133, %137 : vector<1x256xi1>
    %cst_48 = arith.constant 0.000000e+00 : f32
    %139 = vector.shape_cast %138 : vector<1x256xi1> to vector<1x256xi1>
    %140 = vector.broadcast %139 : vector<1x256xi1> to vector<4x256xi1>
    %141 = vector.broadcast %cst_48 : f32 to vector<4x256xf32>
    %142 = arith.select %140, %119, %141 : vector<4x256xi1>, vector<4x256xf32>
    %143 = vector.extract_strided_slice %10 {offsets = [0, 238], sizes = [4, 18], strides = [1, 1]} : vector<4x256xf32> to vector<4x18xf32>
    %144 = vector.extract_strided_slice %10 {offsets = [0, 0], sizes = [4, 238], strides = [1, 1]} : vector<4x256xf32> to vector<4x238xf32>
    %145 = tpu.concatenate %143, %144 in 1 : vector<4x18xf32>, vector<4x238xf32> -> vector<4x256xf32>
    %c-1_i32_49 = arith.constant -1 : i32
    %146 = vector.broadcast %c-1_i32_49 : i32 to vector<1x256xi32>
    %147 = arith.addi %11, %146 : vector<1x256xi32>
    %c0_i32_50 = arith.constant 0 : i32
    %148 = vector.broadcast %c0_i32_50 : i32 to vector<1x256xi32>
    %149 = arith.cmpi sge, %147, %148 : vector<1x256xi32>
    %c-1_i32_51 = arith.constant -1 : i32
    %150 = vector.broadcast %c-1_i32_51 : i32 to vector<1x256xi32>
    %151 = arith.addi %11, %150 : vector<1x256xi32>
    %c16_i32_52 = arith.constant 16 : i32
    %152 = vector.broadcast %c16_i32_52 : i32 to vector<1x256xi32>
    %153 = arith.cmpi slt, %151, %152 : vector<1x256xi32>
    %154 = arith.andi %149, %153 : vector<1x256xi1>
    %c-2_i32_53 = arith.constant -2 : i32
    %155 = vector.broadcast %c-2_i32_53 : i32 to vector<1x256xi32>
    %156 = arith.addi %12, %155 : vector<1x256xi32>
    %c0_i32_54 = arith.constant 0 : i32
    %157 = vector.broadcast %c0_i32_54 : i32 to vector<1x256xi32>
    %158 = arith.cmpi sge, %156, %157 : vector<1x256xi32>
    %159 = arith.andi %154, %158 : vector<1x256xi1>
    %c-2_i32_55 = arith.constant -2 : i32
    %160 = vector.broadcast %c-2_i32_55 : i32 to vector<1x256xi32>
    %161 = arith.addi %12, %160 : vector<1x256xi32>
    %c16_i32_56 = arith.constant 16 : i32
    %162 = vector.broadcast %c16_i32_56 : i32 to vector<1x256xi32>
    %163 = arith.cmpi slt, %161, %162 : vector<1x256xi32>
    %164 = arith.andi %159, %163 : vector<1x256xi1>
    %cst_57 = arith.constant 0.000000e+00 : f32
    %165 = vector.shape_cast %164 : vector<1x256xi1> to vector<1x256xi1>
    %166 = vector.broadcast %165 : vector<1x256xi1> to vector<4x256xi1>
    %167 = vector.broadcast %cst_57 : f32 to vector<4x256xf32>
    %168 = arith.select %166, %145, %167 : vector<4x256xi1>, vector<4x256xf32>
    %169 = vector.extract_strided_slice %10 {offsets = [0, 239], sizes = [4, 17], strides = [1, 1]} : vector<4x256xf32> to vector<4x17xf32>
    %170 = vector.extract_strided_slice %10 {offsets = [0, 0], sizes = [4, 239], strides = [1, 1]} : vector<4x256xf32> to vector<4x239xf32>
    %171 = tpu.concatenate %169, %170 in 1 : vector<4x17xf32>, vector<4x239xf32> -> vector<4x256xf32>
    %c-1_i32_58 = arith.constant -1 : i32
    %172 = vector.broadcast %c-1_i32_58 : i32 to vector<1x256xi32>
    %173 = arith.addi %11, %172 : vector<1x256xi32>
    %c0_i32_59 = arith.constant 0 : i32
    %174 = vector.broadcast %c0_i32_59 : i32 to vector<1x256xi32>
    %175 = arith.cmpi sge, %173, %174 : vector<1x256xi32>
    %c-1_i32_60 = arith.constant -1 : i32
    %176 = vector.broadcast %c-1_i32_60 : i32 to vector<1x256xi32>
    %177 = arith.addi %11, %176 : vector<1x256xi32>
    %c16_i32_61 = arith.constant 16 : i32
    %178 = vector.broadcast %c16_i32_61 : i32 to vector<1x256xi32>
    %179 = arith.cmpi slt, %177, %178 : vector<1x256xi32>
    %180 = arith.andi %175, %179 : vector<1x256xi1>
    %c-1_i32_62 = arith.constant -1 : i32
    %181 = vector.broadcast %c-1_i32_62 : i32 to vector<1x256xi32>
    %182 = arith.addi %12, %181 : vector<1x256xi32>
    %c0_i32_63 = arith.constant 0 : i32
    %183 = vector.broadcast %c0_i32_63 : i32 to vector<1x256xi32>
    %184 = arith.cmpi sge, %182, %183 : vector<1x256xi32>
    %185 = arith.andi %180, %184 : vector<1x256xi1>
    %c-1_i32_64 = arith.constant -1 : i32
    %186 = vector.broadcast %c-1_i32_64 : i32 to vector<1x256xi32>
    %187 = arith.addi %12, %186 : vector<1x256xi32>
    %c16_i32_65 = arith.constant 16 : i32
    %188 = vector.broadcast %c16_i32_65 : i32 to vector<1x256xi32>
    %189 = arith.cmpi slt, %187, %188 : vector<1x256xi32>
    %190 = arith.andi %185, %189 : vector<1x256xi1>
    %cst_66 = arith.constant 0.000000e+00 : f32
    %191 = vector.shape_cast %190 : vector<1x256xi1> to vector<1x256xi1>
    %192 = vector.broadcast %191 : vector<1x256xi1> to vector<4x256xi1>
    %193 = vector.broadcast %cst_66 : f32 to vector<4x256xf32>
    %194 = arith.select %192, %171, %193 : vector<4x256xi1>, vector<4x256xf32>
    %195 = vector.extract_strided_slice %10 {offsets = [0, 240], sizes = [4, 16], strides = [1, 1]} : vector<4x256xf32> to vector<4x16xf32>
    %196 = vector.extract_strided_slice %10 {offsets = [0, 0], sizes = [4, 240], strides = [1, 1]} : vector<4x256xf32> to vector<4x240xf32>
    %197 = tpu.concatenate %195, %196 in 1 : vector<4x16xf32>, vector<4x240xf32> -> vector<4x256xf32>
    %c-1_i32_67 = arith.constant -1 : i32
    %198 = vector.broadcast %c-1_i32_67 : i32 to vector<1x256xi32>
    %199 = arith.addi %11, %198 : vector<1x256xi32>
    %c0_i32_68 = arith.constant 0 : i32
    %200 = vector.broadcast %c0_i32_68 : i32 to vector<1x256xi32>
    %201 = arith.cmpi sge, %199, %200 : vector<1x256xi32>
    %c-1_i32_69 = arith.constant -1 : i32
    %202 = vector.broadcast %c-1_i32_69 : i32 to vector<1x256xi32>
    %203 = arith.addi %11, %202 : vector<1x256xi32>
    %c16_i32_70 = arith.constant 16 : i32
    %204 = vector.broadcast %c16_i32_70 : i32 to vector<1x256xi32>
    %205 = arith.cmpi slt, %203, %204 : vector<1x256xi32>
    %206 = arith.andi %201, %205 : vector<1x256xi1>
    %c0_i32_71 = arith.constant 0 : i32
    %207 = vector.broadcast %c0_i32_71 : i32 to vector<1x256xi32>
    %208 = arith.addi %12, %207 : vector<1x256xi32>
    %c0_i32_72 = arith.constant 0 : i32
    %209 = vector.broadcast %c0_i32_72 : i32 to vector<1x256xi32>
    %210 = arith.cmpi sge, %208, %209 : vector<1x256xi32>
    %211 = arith.andi %206, %210 : vector<1x256xi1>
    %c0_i32_73 = arith.constant 0 : i32
    %212 = vector.broadcast %c0_i32_73 : i32 to vector<1x256xi32>
    %213 = arith.addi %12, %212 : vector<1x256xi32>
    %c16_i32_74 = arith.constant 16 : i32
    %214 = vector.broadcast %c16_i32_74 : i32 to vector<1x256xi32>
    %215 = arith.cmpi slt, %213, %214 : vector<1x256xi32>
    %216 = arith.andi %211, %215 : vector<1x256xi1>
    %cst_75 = arith.constant 0.000000e+00 : f32
    %217 = vector.shape_cast %216 : vector<1x256xi1> to vector<1x256xi1>
    %218 = vector.broadcast %217 : vector<1x256xi1> to vector<4x256xi1>
    %219 = vector.broadcast %cst_75 : f32 to vector<4x256xf32>
    %220 = arith.select %218, %197, %219 : vector<4x256xi1>, vector<4x256xf32>
    %221 = vector.extract_strided_slice %10 {offsets = [0, 241], sizes = [4, 15], strides = [1, 1]} : vector<4x256xf32> to vector<4x15xf32>
    %222 = vector.extract_strided_slice %10 {offsets = [0, 0], sizes = [4, 241], strides = [1, 1]} : vector<4x256xf32> to vector<4x241xf32>
    %223 = tpu.concatenate %221, %222 in 1 : vector<4x15xf32>, vector<4x241xf32> -> vector<4x256xf32>
    %c-1_i32_76 = arith.constant -1 : i32
    %224 = vector.broadcast %c-1_i32_76 : i32 to vector<1x256xi32>
    %225 = arith.addi %11, %224 : vector<1x256xi32>
    %c0_i32_77 = arith.constant 0 : i32
    %226 = vector.broadcast %c0_i32_77 : i32 to vector<1x256xi32>
    %227 = arith.cmpi sge, %225, %226 : vector<1x256xi32>
    %c-1_i32_78 = arith.constant -1 : i32
    %228 = vector.broadcast %c-1_i32_78 : i32 to vector<1x256xi32>
    %229 = arith.addi %11, %228 : vector<1x256xi32>
    %c16_i32_79 = arith.constant 16 : i32
    %230 = vector.broadcast %c16_i32_79 : i32 to vector<1x256xi32>
    %231 = arith.cmpi slt, %229, %230 : vector<1x256xi32>
    %232 = arith.andi %227, %231 : vector<1x256xi1>
    %c1_i32_80 = arith.constant 1 : i32
    %233 = vector.broadcast %c1_i32_80 : i32 to vector<1x256xi32>
    %234 = arith.addi %12, %233 : vector<1x256xi32>
    %c0_i32_81 = arith.constant 0 : i32
    %235 = vector.broadcast %c0_i32_81 : i32 to vector<1x256xi32>
    %236 = arith.cmpi sge, %234, %235 : vector<1x256xi32>
    %237 = arith.andi %232, %236 : vector<1x256xi1>
    %c1_i32_82 = arith.constant 1 : i32
    %238 = vector.broadcast %c1_i32_82 : i32 to vector<1x256xi32>
    %239 = arith.addi %12, %238 : vector<1x256xi32>
    %c16_i32_83 = arith.constant 16 : i32
    %240 = vector.broadcast %c16_i32_83 : i32 to vector<1x256xi32>
    %241 = arith.cmpi slt, %239, %240 : vector<1x256xi32>
    %242 = arith.andi %237, %241 : vector<1x256xi1>
    %cst_84 = arith.constant 0.000000e+00 : f32
    %243 = vector.shape_cast %242 : vector<1x256xi1> to vector<1x256xi1>
    %244 = vector.broadcast %243 : vector<1x256xi1> to vector<4x256xi1>
    %245 = vector.broadcast %cst_84 : f32 to vector<4x256xf32>
    %246 = arith.select %244, %223, %245 : vector<4x256xi1>, vector<4x256xf32>
    %247 = vector.extract_strided_slice %10 {offsets = [0, 242], sizes = [4, 14], strides = [1, 1]} : vector<4x256xf32> to vector<4x14xf32>
    %248 = vector.extract_strided_slice %10 {offsets = [0, 0], sizes = [4, 242], strides = [1, 1]} : vector<4x256xf32> to vector<4x242xf32>
    %249 = tpu.concatenate %247, %248 in 1 : vector<4x14xf32>, vector<4x242xf32> -> vector<4x256xf32>
    %c-1_i32_85 = arith.constant -1 : i32
    %250 = vector.broadcast %c-1_i32_85 : i32 to vector<1x256xi32>
    %251 = arith.addi %11, %250 : vector<1x256xi32>
    %c0_i32_86 = arith.constant 0 : i32
    %252 = vector.broadcast %c0_i32_86 : i32 to vector<1x256xi32>
    %253 = arith.cmpi sge, %251, %252 : vector<1x256xi32>
    %c-1_i32_87 = arith.constant -1 : i32
    %254 = vector.broadcast %c-1_i32_87 : i32 to vector<1x256xi32>
    %255 = arith.addi %11, %254 : vector<1x256xi32>
    %c16_i32_88 = arith.constant 16 : i32
    %256 = vector.broadcast %c16_i32_88 : i32 to vector<1x256xi32>
    %257 = arith.cmpi slt, %255, %256 : vector<1x256xi32>
    %258 = arith.andi %253, %257 : vector<1x256xi1>
    %c2_i32_89 = arith.constant 2 : i32
    %259 = vector.broadcast %c2_i32_89 : i32 to vector<1x256xi32>
    %260 = arith.addi %12, %259 : vector<1x256xi32>
    %c0_i32_90 = arith.constant 0 : i32
    %261 = vector.broadcast %c0_i32_90 : i32 to vector<1x256xi32>
    %262 = arith.cmpi sge, %260, %261 : vector<1x256xi32>
    %263 = arith.andi %258, %262 : vector<1x256xi1>
    %c2_i32_91 = arith.constant 2 : i32
    %264 = vector.broadcast %c2_i32_91 : i32 to vector<1x256xi32>
    %265 = arith.addi %12, %264 : vector<1x256xi32>
    %c16_i32_92 = arith.constant 16 : i32
    %266 = vector.broadcast %c16_i32_92 : i32 to vector<1x256xi32>
    %267 = arith.cmpi slt, %265, %266 : vector<1x256xi32>
    %268 = arith.andi %263, %267 : vector<1x256xi1>
    %cst_93 = arith.constant 0.000000e+00 : f32
    %269 = vector.shape_cast %268 : vector<1x256xi1> to vector<1x256xi1>
    %270 = vector.broadcast %269 : vector<1x256xi1> to vector<4x256xi1>
    %271 = vector.broadcast %cst_93 : f32 to vector<4x256xf32>
    %272 = arith.select %270, %249, %271 : vector<4x256xi1>, vector<4x256xf32>
    %273 = vector.extract_strided_slice %10 {offsets = [0, 254], sizes = [4, 2], strides = [1, 1]} : vector<4x256xf32> to vector<4x2xf32>
    %274 = vector.extract_strided_slice %10 {offsets = [0, 0], sizes = [4, 254], strides = [1, 1]} : vector<4x256xf32> to vector<4x254xf32>
    %275 = tpu.concatenate %273, %274 in 1 : vector<4x2xf32>, vector<4x254xf32> -> vector<4x256xf32>
    %c0_i32_94 = arith.constant 0 : i32
    %276 = vector.broadcast %c0_i32_94 : i32 to vector<1x256xi32>
    %277 = arith.addi %11, %276 : vector<1x256xi32>
    %c0_i32_95 = arith.constant 0 : i32
    %278 = vector.broadcast %c0_i32_95 : i32 to vector<1x256xi32>
    %279 = arith.cmpi sge, %277, %278 : vector<1x256xi32>
    %c0_i32_96 = arith.constant 0 : i32
    %280 = vector.broadcast %c0_i32_96 : i32 to vector<1x256xi32>
    %281 = arith.addi %11, %280 : vector<1x256xi32>
    %c16_i32_97 = arith.constant 16 : i32
    %282 = vector.broadcast %c16_i32_97 : i32 to vector<1x256xi32>
    %283 = arith.cmpi slt, %281, %282 : vector<1x256xi32>
    %284 = arith.andi %279, %283 : vector<1x256xi1>
    %c-2_i32_98 = arith.constant -2 : i32
    %285 = vector.broadcast %c-2_i32_98 : i32 to vector<1x256xi32>
    %286 = arith.addi %12, %285 : vector<1x256xi32>
    %c0_i32_99 = arith.constant 0 : i32
    %287 = vector.broadcast %c0_i32_99 : i32 to vector<1x256xi32>
    %288 = arith.cmpi sge, %286, %287 : vector<1x256xi32>
    %289 = arith.andi %284, %288 : vector<1x256xi1>
    %c-2_i32_100 = arith.constant -2 : i32
    %290 = vector.broadcast %c-2_i32_100 : i32 to vector<1x256xi32>
    %291 = arith.addi %12, %290 : vector<1x256xi32>
    %c16_i32_101 = arith.constant 16 : i32
    %292 = vector.broadcast %c16_i32_101 : i32 to vector<1x256xi32>
    %293 = arith.cmpi slt, %291, %292 : vector<1x256xi32>
    %294 = arith.andi %289, %293 : vector<1x256xi1>
    %cst_102 = arith.constant 0.000000e+00 : f32
    %295 = vector.shape_cast %294 : vector<1x256xi1> to vector<1x256xi1>
    %296 = vector.broadcast %295 : vector<1x256xi1> to vector<4x256xi1>
    %297 = vector.broadcast %cst_102 : f32 to vector<4x256xf32>
    %298 = arith.select %296, %275, %297 : vector<4x256xi1>, vector<4x256xf32>
    %299 = vector.extract_strided_slice %10 {offsets = [0, 255], sizes = [4, 1], strides = [1, 1]} : vector<4x256xf32> to vector<4x1xf32>
    %300 = vector.extract_strided_slice %10 {offsets = [0, 0], sizes = [4, 255], strides = [1, 1]} : vector<4x256xf32> to vector<4x255xf32>
    %301 = tpu.concatenate %299, %300 in 1 : vector<4x1xf32>, vector<4x255xf32> -> vector<4x256xf32>
    %c0_i32_103 = arith.constant 0 : i32
    %302 = vector.broadcast %c0_i32_103 : i32 to vector<1x256xi32>
    %303 = arith.addi %11, %302 : vector<1x256xi32>
    %c0_i32_104 = arith.constant 0 : i32
    %304 = vector.broadcast %c0_i32_104 : i32 to vector<1x256xi32>
    %305 = arith.cmpi sge, %303, %304 : vector<1x256xi32>
    %c0_i32_105 = arith.constant 0 : i32
    %306 = vector.broadcast %c0_i32_105 : i32 to vector<1x256xi32>
    %307 = arith.addi %11, %306 : vector<1x256xi32>
    %c16_i32_106 = arith.constant 16 : i32
    %308 = vector.broadcast %c16_i32_106 : i32 to vector<1x256xi32>
    %309 = arith.cmpi slt, %307, %308 : vector<1x256xi32>
    %310 = arith.andi %305, %309 : vector<1x256xi1>
    %c-1_i32_107 = arith.constant -1 : i32
    %311 = vector.broadcast %c-1_i32_107 : i32 to vector<1x256xi32>
    %312 = arith.addi %12, %311 : vector<1x256xi32>
    %c0_i32_108 = arith.constant 0 : i32
    %313 = vector.broadcast %c0_i32_108 : i32 to vector<1x256xi32>
    %314 = arith.cmpi sge, %312, %313 : vector<1x256xi32>
    %315 = arith.andi %310, %314 : vector<1x256xi1>
    %c-1_i32_109 = arith.constant -1 : i32
    %316 = vector.broadcast %c-1_i32_109 : i32 to vector<1x256xi32>
    %317 = arith.addi %12, %316 : vector<1x256xi32>
    %c16_i32_110 = arith.constant 16 : i32
    %318 = vector.broadcast %c16_i32_110 : i32 to vector<1x256xi32>
    %319 = arith.cmpi slt, %317, %318 : vector<1x256xi32>
    %320 = arith.andi %315, %319 : vector<1x256xi1>
    %cst_111 = arith.constant 0.000000e+00 : f32
    %321 = vector.shape_cast %320 : vector<1x256xi1> to vector<1x256xi1>
    %322 = vector.broadcast %321 : vector<1x256xi1> to vector<4x256xi1>
    %323 = vector.broadcast %cst_111 : f32 to vector<4x256xf32>
    %324 = arith.select %322, %301, %323 : vector<4x256xi1>, vector<4x256xf32>
    %c0_i32_112 = arith.constant 0 : i32
    %325 = vector.broadcast %c0_i32_112 : i32 to vector<1x256xi32>
    %326 = arith.addi %11, %325 : vector<1x256xi32>
    %c0_i32_113 = arith.constant 0 : i32
    %327 = vector.broadcast %c0_i32_113 : i32 to vector<1x256xi32>
    %328 = arith.cmpi sge, %326, %327 : vector<1x256xi32>
    %c0_i32_114 = arith.constant 0 : i32
    %329 = vector.broadcast %c0_i32_114 : i32 to vector<1x256xi32>
    %330 = arith.addi %11, %329 : vector<1x256xi32>
    %c16_i32_115 = arith.constant 16 : i32
    %331 = vector.broadcast %c16_i32_115 : i32 to vector<1x256xi32>
    %332 = arith.cmpi slt, %330, %331 : vector<1x256xi32>
    %333 = arith.andi %328, %332 : vector<1x256xi1>
    %c0_i32_116 = arith.constant 0 : i32
    %334 = vector.broadcast %c0_i32_116 : i32 to vector<1x256xi32>
    %335 = arith.addi %12, %334 : vector<1x256xi32>
    %c0_i32_117 = arith.constant 0 : i32
    %336 = vector.broadcast %c0_i32_117 : i32 to vector<1x256xi32>
    %337 = arith.cmpi sge, %335, %336 : vector<1x256xi32>
    %338 = arith.andi %333, %337 : vector<1x256xi1>
    %c0_i32_118 = arith.constant 0 : i32
    %339 = vector.broadcast %c0_i32_118 : i32 to vector<1x256xi32>
    %340 = arith.addi %12, %339 : vector<1x256xi32>
    %c16_i32_119 = arith.constant 16 : i32
    %341 = vector.broadcast %c16_i32_119 : i32 to vector<1x256xi32>
    %342 = arith.cmpi slt, %340, %341 : vector<1x256xi32>
    %343 = arith.andi %338, %342 : vector<1x256xi1>
    %cst_120 = arith.constant 0.000000e+00 : f32
    %344 = vector.shape_cast %343 : vector<1x256xi1> to vector<1x256xi1>
    %345 = vector.broadcast %344 : vector<1x256xi1> to vector<4x256xi1>
    %346 = vector.broadcast %cst_120 : f32 to vector<4x256xf32>
    %347 = arith.select %345, %10, %346 : vector<4x256xi1>, vector<4x256xf32>
    %348 = vector.extract_strided_slice %10 {offsets = [0, 1], sizes = [4, 255], strides = [1, 1]} : vector<4x256xf32> to vector<4x255xf32>
    %349 = vector.extract_strided_slice %10 {offsets = [0, 0], sizes = [4, 1], strides = [1, 1]} : vector<4x256xf32> to vector<4x1xf32>
    %350 = tpu.concatenate %348, %349 in 1 : vector<4x255xf32>, vector<4x1xf32> -> vector<4x256xf32>
    %c0_i32_121 = arith.constant 0 : i32
    %351 = vector.broadcast %c0_i32_121 : i32 to vector<1x256xi32>
    %352 = arith.addi %11, %351 : vector<1x256xi32>
    %c0_i32_122 = arith.constant 0 : i32
    %353 = vector.broadcast %c0_i32_122 : i32 to vector<1x256xi32>
    %354 = arith.cmpi sge, %352, %353 : vector<1x256xi32>
    %c0_i32_123 = arith.constant 0 : i32
    %355 = vector.broadcast %c0_i32_123 : i32 to vector<1x256xi32>
    %356 = arith.addi %11, %355 : vector<1x256xi32>
    %c16_i32_124 = arith.constant 16 : i32
    %357 = vector.broadcast %c16_i32_124 : i32 to vector<1x256xi32>
    %358 = arith.cmpi slt, %356, %357 : vector<1x256xi32>
    %359 = arith.andi %354, %358 : vector<1x256xi1>
    %c1_i32_125 = arith.constant 1 : i32
    %360 = vector.broadcast %c1_i32_125 : i32 to vector<1x256xi32>
    %361 = arith.addi %12, %360 : vector<1x256xi32>
    %c0_i32_126 = arith.constant 0 : i32
    %362 = vector.broadcast %c0_i32_126 : i32 to vector<1x256xi32>
    %363 = arith.cmpi sge, %361, %362 : vector<1x256xi32>
    %364 = arith.andi %359, %363 : vector<1x256xi1>
    %c1_i32_127 = arith.constant 1 : i32
    %365 = vector.broadcast %c1_i32_127 : i32 to vector<1x256xi32>
    %366 = arith.addi %12, %365 : vector<1x256xi32>
    %c16_i32_128 = arith.constant 16 : i32
    %367 = vector.broadcast %c16_i32_128 : i32 to vector<1x256xi32>
    %368 = arith.cmpi slt, %366, %367 : vector<1x256xi32>
    %369 = arith.andi %364, %368 : vector<1x256xi1>
    %cst_129 = arith.constant 0.000000e+00 : f32
    %370 = vector.shape_cast %369 : vector<1x256xi1> to vector<1x256xi1>
    %371 = vector.broadcast %370 : vector<1x256xi1> to vector<4x256xi1>
    %372 = vector.broadcast %cst_129 : f32 to vector<4x256xf32>
    %373 = arith.select %371, %350, %372 : vector<4x256xi1>, vector<4x256xf32>
    %374 = vector.extract_strided_slice %10 {offsets = [0, 2], sizes = [4, 254], strides = [1, 1]} : vector<4x256xf32> to vector<4x254xf32>
    %375 = vector.extract_strided_slice %10 {offsets = [0, 0], sizes = [4, 2], strides = [1, 1]} : vector<4x256xf32> to vector<4x2xf32>
    %376 = tpu.concatenate %374, %375 in 1 : vector<4x254xf32>, vector<4x2xf32> -> vector<4x256xf32>
    %c0_i32_130 = arith.constant 0 : i32
    %377 = vector.broadcast %c0_i32_130 : i32 to vector<1x256xi32>
    %378 = arith.addi %11, %377 : vector<1x256xi32>
    %c0_i32_131 = arith.constant 0 : i32
    %379 = vector.broadcast %c0_i32_131 : i32 to vector<1x256xi32>
    %380 = arith.cmpi sge, %378, %379 : vector<1x256xi32>
    %c0_i32_132 = arith.constant 0 : i32
    %381 = vector.broadcast %c0_i32_132 : i32 to vector<1x256xi32>
    %382 = arith.addi %11, %381 : vector<1x256xi32>
    %c16_i32_133 = arith.constant 16 : i32
    %383 = vector.broadcast %c16_i32_133 : i32 to vector<1x256xi32>
    %384 = arith.cmpi slt, %382, %383 : vector<1x256xi32>
    %385 = arith.andi %380, %384 : vector<1x256xi1>
    %c2_i32_134 = arith.constant 2 : i32
    %386 = vector.broadcast %c2_i32_134 : i32 to vector<1x256xi32>
    %387 = arith.addi %12, %386 : vector<1x256xi32>
    %c0_i32_135 = arith.constant 0 : i32
    %388 = vector.broadcast %c0_i32_135 : i32 to vector<1x256xi32>
    %389 = arith.cmpi sge, %387, %388 : vector<1x256xi32>
    %390 = arith.andi %385, %389 : vector<1x256xi1>
    %c2_i32_136 = arith.constant 2 : i32
    %391 = vector.broadcast %c2_i32_136 : i32 to vector<1x256xi32>
    %392 = arith.addi %12, %391 : vector<1x256xi32>
    %c16_i32_137 = arith.constant 16 : i32
    %393 = vector.broadcast %c16_i32_137 : i32 to vector<1x256xi32>
    %394 = arith.cmpi slt, %392, %393 : vector<1x256xi32>
    %395 = arith.andi %390, %394 : vector<1x256xi1>
    %cst_138 = arith.constant 0.000000e+00 : f32
    %396 = vector.shape_cast %395 : vector<1x256xi1> to vector<1x256xi1>
    %397 = vector.broadcast %396 : vector<1x256xi1> to vector<4x256xi1>
    %398 = vector.broadcast %cst_138 : f32 to vector<4x256xf32>
    %399 = arith.select %397, %376, %398 : vector<4x256xi1>, vector<4x256xf32>
    %400 = vector.extract_strided_slice %10 {offsets = [0, 14], sizes = [4, 242], strides = [1, 1]} : vector<4x256xf32> to vector<4x242xf32>
    %401 = vector.extract_strided_slice %10 {offsets = [0, 0], sizes = [4, 14], strides = [1, 1]} : vector<4x256xf32> to vector<4x14xf32>
    %402 = tpu.concatenate %400, %401 in 1 : vector<4x242xf32>, vector<4x14xf32> -> vector<4x256xf32>
    %c1_i32_139 = arith.constant 1 : i32
    %403 = vector.broadcast %c1_i32_139 : i32 to vector<1x256xi32>
    %404 = arith.addi %11, %403 : vector<1x256xi32>
    %c0_i32_140 = arith.constant 0 : i32
    %405 = vector.broadcast %c0_i32_140 : i32 to vector<1x256xi32>
    %406 = arith.cmpi sge, %404, %405 : vector<1x256xi32>
    %c1_i32_141 = arith.constant 1 : i32
    %407 = vector.broadcast %c1_i32_141 : i32 to vector<1x256xi32>
    %408 = arith.addi %11, %407 : vector<1x256xi32>
    %c16_i32_142 = arith.constant 16 : i32
    %409 = vector.broadcast %c16_i32_142 : i32 to vector<1x256xi32>
    %410 = arith.cmpi slt, %408, %409 : vector<1x256xi32>
    %411 = arith.andi %406, %410 : vector<1x256xi1>
    %c-2_i32_143 = arith.constant -2 : i32
    %412 = vector.broadcast %c-2_i32_143 : i32 to vector<1x256xi32>
    %413 = arith.addi %12, %412 : vector<1x256xi32>
    %c0_i32_144 = arith.constant 0 : i32
    %414 = vector.broadcast %c0_i32_144 : i32 to vector<1x256xi32>
    %415 = arith.cmpi sge, %413, %414 : vector<1x256xi32>
    %416 = arith.andi %411, %415 : vector<1x256xi1>
    %c-2_i32_145 = arith.constant -2 : i32
    %417 = vector.broadcast %c-2_i32_145 : i32 to vector<1x256xi32>
    %418 = arith.addi %12, %417 : vector<1x256xi32>
    %c16_i32_146 = arith.constant 16 : i32
    %419 = vector.broadcast %c16_i32_146 : i32 to vector<1x256xi32>
    %420 = arith.cmpi slt, %418, %419 : vector<1x256xi32>
    %421 = arith.andi %416, %420 : vector<1x256xi1>
    %cst_147 = arith.constant 0.000000e+00 : f32
    %422 = vector.shape_cast %421 : vector<1x256xi1> to vector<1x256xi1>
    %423 = vector.broadcast %422 : vector<1x256xi1> to vector<4x256xi1>
    %424 = vector.broadcast %cst_147 : f32 to vector<4x256xf32>
    %425 = arith.select %423, %402, %424 : vector<4x256xi1>, vector<4x256xf32>
    %426 = vector.extract_strided_slice %10 {offsets = [0, 15], sizes = [4, 241], strides = [1, 1]} : vector<4x256xf32> to vector<4x241xf32>
    %427 = vector.extract_strided_slice %10 {offsets = [0, 0], sizes = [4, 15], strides = [1, 1]} : vector<4x256xf32> to vector<4x15xf32>
    %428 = tpu.concatenate %426, %427 in 1 : vector<4x241xf32>, vector<4x15xf32> -> vector<4x256xf32>
    %c1_i32_148 = arith.constant 1 : i32
    %429 = vector.broadcast %c1_i32_148 : i32 to vector<1x256xi32>
    %430 = arith.addi %11, %429 : vector<1x256xi32>
    %c0_i32_149 = arith.constant 0 : i32
    %431 = vector.broadcast %c0_i32_149 : i32 to vector<1x256xi32>
    %432 = arith.cmpi sge, %430, %431 : vector<1x256xi32>
    %c1_i32_150 = arith.constant 1 : i32
    %433 = vector.broadcast %c1_i32_150 : i32 to vector<1x256xi32>
    %434 = arith.addi %11, %433 : vector<1x256xi32>
    %c16_i32_151 = arith.constant 16 : i32
    %435 = vector.broadcast %c16_i32_151 : i32 to vector<1x256xi32>
    %436 = arith.cmpi slt, %434, %435 : vector<1x256xi32>
    %437 = arith.andi %432, %436 : vector<1x256xi1>
    %c-1_i32_152 = arith.constant -1 : i32
    %438 = vector.broadcast %c-1_i32_152 : i32 to vector<1x256xi32>
    %439 = arith.addi %12, %438 : vector<1x256xi32>
    %c0_i32_153 = arith.constant 0 : i32
    %440 = vector.broadcast %c0_i32_153 : i32 to vector<1x256xi32>
    %441 = arith.cmpi sge, %439, %440 : vector<1x256xi32>
    %442 = arith.andi %437, %441 : vector<1x256xi1>
    %c-1_i32_154 = arith.constant -1 : i32
    %443 = vector.broadcast %c-1_i32_154 : i32 to vector<1x256xi32>
    %444 = arith.addi %12, %443 : vector<1x256xi32>
    %c16_i32_155 = arith.constant 16 : i32
    %445 = vector.broadcast %c16_i32_155 : i32 to vector<1x256xi32>
    %446 = arith.cmpi slt, %444, %445 : vector<1x256xi32>
    %447 = arith.andi %442, %446 : vector<1x256xi1>
    %cst_156 = arith.constant 0.000000e+00 : f32
    %448 = vector.shape_cast %447 : vector<1x256xi1> to vector<1x256xi1>
    %449 = vector.broadcast %448 : vector<1x256xi1> to vector<4x256xi1>
    %450 = vector.broadcast %cst_156 : f32 to vector<4x256xf32>
    %451 = arith.select %449, %428, %450 : vector<4x256xi1>, vector<4x256xf32>
    %452 = vector.extract_strided_slice %10 {offsets = [0, 16], sizes = [4, 240], strides = [1, 1]} : vector<4x256xf32> to vector<4x240xf32>
    %453 = vector.extract_strided_slice %10 {offsets = [0, 0], sizes = [4, 16], strides = [1, 1]} : vector<4x256xf32> to vector<4x16xf32>
    %454 = tpu.concatenate %452, %453 in 1 : vector<4x240xf32>, vector<4x16xf32> -> vector<4x256xf32>
    %c1_i32_157 = arith.constant 1 : i32
    %455 = vector.broadcast %c1_i32_157 : i32 to vector<1x256xi32>
    %456 = arith.addi %11, %455 : vector<1x256xi32>
    %c0_i32_158 = arith.constant 0 : i32
    %457 = vector.broadcast %c0_i32_158 : i32 to vector<1x256xi32>
    %458 = arith.cmpi sge, %456, %457 : vector<1x256xi32>
    %c1_i32_159 = arith.constant 1 : i32
    %459 = vector.broadcast %c1_i32_159 : i32 to vector<1x256xi32>
    %460 = arith.addi %11, %459 : vector<1x256xi32>
    %c16_i32_160 = arith.constant 16 : i32
    %461 = vector.broadcast %c16_i32_160 : i32 to vector<1x256xi32>
    %462 = arith.cmpi slt, %460, %461 : vector<1x256xi32>
    %463 = arith.andi %458, %462 : vector<1x256xi1>
    %c0_i32_161 = arith.constant 0 : i32
    %464 = vector.broadcast %c0_i32_161 : i32 to vector<1x256xi32>
    %465 = arith.addi %12, %464 : vector<1x256xi32>
    %c0_i32_162 = arith.constant 0 : i32
    %466 = vector.broadcast %c0_i32_162 : i32 to vector<1x256xi32>
    %467 = arith.cmpi sge, %465, %466 : vector<1x256xi32>
    %468 = arith.andi %463, %467 : vector<1x256xi1>
    %c0_i32_163 = arith.constant 0 : i32
    %469 = vector.broadcast %c0_i32_163 : i32 to vector<1x256xi32>
    %470 = arith.addi %12, %469 : vector<1x256xi32>
    %c16_i32_164 = arith.constant 16 : i32
    %471 = vector.broadcast %c16_i32_164 : i32 to vector<1x256xi32>
    %472 = arith.cmpi slt, %470, %471 : vector<1x256xi32>
    %473 = arith.andi %468, %472 : vector<1x256xi1>
    %cst_165 = arith.constant 0.000000e+00 : f32
    %474 = vector.shape_cast %473 : vector<1x256xi1> to vector<1x256xi1>
    %475 = vector.broadcast %474 : vector<1x256xi1> to vector<4x256xi1>
    %476 = vector.broadcast %cst_165 : f32 to vector<4x256xf32>
    %477 = arith.select %475, %454, %476 : vector<4x256xi1>, vector<4x256xf32>
    %478 = vector.extract_strided_slice %10 {offsets = [0, 17], sizes = [4, 239], strides = [1, 1]} : vector<4x256xf32> to vector<4x239xf32>
    %479 = vector.extract_strided_slice %10 {offsets = [0, 0], sizes = [4, 17], strides = [1, 1]} : vector<4x256xf32> to vector<4x17xf32>
    %480 = tpu.concatenate %478, %479 in 1 : vector<4x239xf32>, vector<4x17xf32> -> vector<4x256xf32>
    %c1_i32_166 = arith.constant 1 : i32
    %481 = vector.broadcast %c1_i32_166 : i32 to vector<1x256xi32>
    %482 = arith.addi %11, %481 : vector<1x256xi32>
    %c0_i32_167 = arith.constant 0 : i32
    %483 = vector.broadcast %c0_i32_167 : i32 to vector<1x256xi32>
    %484 = arith.cmpi sge, %482, %483 : vector<1x256xi32>
    %c1_i32_168 = arith.constant 1 : i32
    %485 = vector.broadcast %c1_i32_168 : i32 to vector<1x256xi32>
    %486 = arith.addi %11, %485 : vector<1x256xi32>
    %c16_i32_169 = arith.constant 16 : i32
    %487 = vector.broadcast %c16_i32_169 : i32 to vector<1x256xi32>
    %488 = arith.cmpi slt, %486, %487 : vector<1x256xi32>
    %489 = arith.andi %484, %488 : vector<1x256xi1>
    %c1_i32_170 = arith.constant 1 : i32
    %490 = vector.broadcast %c1_i32_170 : i32 to vector<1x256xi32>
    %491 = arith.addi %12, %490 : vector<1x256xi32>
    %c0_i32_171 = arith.constant 0 : i32
    %492 = vector.broadcast %c0_i32_171 : i32 to vector<1x256xi32>
    %493 = arith.cmpi sge, %491, %492 : vector<1x256xi32>
    %494 = arith.andi %489, %493 : vector<1x256xi1>
    %c1_i32_172 = arith.constant 1 : i32
    %495 = vector.broadcast %c1_i32_172 : i32 to vector<1x256xi32>
    %496 = arith.addi %12, %495 : vector<1x256xi32>
    %c16_i32_173 = arith.constant 16 : i32
    %497 = vector.broadcast %c16_i32_173 : i32 to vector<1x256xi32>
    %498 = arith.cmpi slt, %496, %497 : vector<1x256xi32>
    %499 = arith.andi %494, %498 : vector<1x256xi1>
    %cst_174 = arith.constant 0.000000e+00 : f32
    %500 = vector.shape_cast %499 : vector<1x256xi1> to vector<1x256xi1>
    %501 = vector.broadcast %500 : vector<1x256xi1> to vector<4x256xi1>
    %502 = vector.broadcast %cst_174 : f32 to vector<4x256xf32>
    %503 = arith.select %501, %480, %502 : vector<4x256xi1>, vector<4x256xf32>
    %504 = vector.extract_strided_slice %10 {offsets = [0, 18], sizes = [4, 238], strides = [1, 1]} : vector<4x256xf32> to vector<4x238xf32>
    %505 = vector.extract_strided_slice %10 {offsets = [0, 0], sizes = [4, 18], strides = [1, 1]} : vector<4x256xf32> to vector<4x18xf32>
    %506 = tpu.concatenate %504, %505 in 1 : vector<4x238xf32>, vector<4x18xf32> -> vector<4x256xf32>
    %c1_i32_175 = arith.constant 1 : i32
    %507 = vector.broadcast %c1_i32_175 : i32 to vector<1x256xi32>
    %508 = arith.addi %11, %507 : vector<1x256xi32>
    %c0_i32_176 = arith.constant 0 : i32
    %509 = vector.broadcast %c0_i32_176 : i32 to vector<1x256xi32>
    %510 = arith.cmpi sge, %508, %509 : vector<1x256xi32>
    %c1_i32_177 = arith.constant 1 : i32
    %511 = vector.broadcast %c1_i32_177 : i32 to vector<1x256xi32>
    %512 = arith.addi %11, %511 : vector<1x256xi32>
    %c16_i32_178 = arith.constant 16 : i32
    %513 = vector.broadcast %c16_i32_178 : i32 to vector<1x256xi32>
    %514 = arith.cmpi slt, %512, %513 : vector<1x256xi32>
    %515 = arith.andi %510, %514 : vector<1x256xi1>
    %c2_i32_179 = arith.constant 2 : i32
    %516 = vector.broadcast %c2_i32_179 : i32 to vector<1x256xi32>
    %517 = arith.addi %12, %516 : vector<1x256xi32>
    %c0_i32_180 = arith.constant 0 : i32
    %518 = vector.broadcast %c0_i32_180 : i32 to vector<1x256xi32>
    %519 = arith.cmpi sge, %517, %518 : vector<1x256xi32>
    %520 = arith.andi %515, %519 : vector<1x256xi1>
    %c2_i32_181 = arith.constant 2 : i32
    %521 = vector.broadcast %c2_i32_181 : i32 to vector<1x256xi32>
    %522 = arith.addi %12, %521 : vector<1x256xi32>
    %c16_i32_182 = arith.constant 16 : i32
    %523 = vector.broadcast %c16_i32_182 : i32 to vector<1x256xi32>
    %524 = arith.cmpi slt, %522, %523 : vector<1x256xi32>
    %525 = arith.andi %520, %524 : vector<1x256xi1>
    %cst_183 = arith.constant 0.000000e+00 : f32
    %526 = vector.shape_cast %525 : vector<1x256xi1> to vector<1x256xi1>
    %527 = vector.broadcast %526 : vector<1x256xi1> to vector<4x256xi1>
    %528 = vector.broadcast %cst_183 : f32 to vector<4x256xf32>
    %529 = arith.select %527, %506, %528 : vector<4x256xi1>, vector<4x256xf32>
    %530 = vector.extract_strided_slice %10 {offsets = [0, 30], sizes = [4, 226], strides = [1, 1]} : vector<4x256xf32> to vector<4x226xf32>
    %531 = vector.extract_strided_slice %10 {offsets = [0, 0], sizes = [4, 30], strides = [1, 1]} : vector<4x256xf32> to vector<4x30xf32>
    %532 = tpu.concatenate %530, %531 in 1 : vector<4x226xf32>, vector<4x30xf32> -> vector<4x256xf32>
    %c2_i32_184 = arith.constant 2 : i32
    %533 = vector.broadcast %c2_i32_184 : i32 to vector<1x256xi32>
    %534 = arith.addi %11, %533 : vector<1x256xi32>
    %c0_i32_185 = arith.constant 0 : i32
    %535 = vector.broadcast %c0_i32_185 : i32 to vector<1x256xi32>
    %536 = arith.cmpi sge, %534, %535 : vector<1x256xi32>
    %c2_i32_186 = arith.constant 2 : i32
    %537 = vector.broadcast %c2_i32_186 : i32 to vector<1x256xi32>
    %538 = arith.addi %11, %537 : vector<1x256xi32>
    %c16_i32_187 = arith.constant 16 : i32
    %539 = vector.broadcast %c16_i32_187 : i32 to vector<1x256xi32>
    %540 = arith.cmpi slt, %538, %539 : vector<1x256xi32>
    %541 = arith.andi %536, %540 : vector<1x256xi1>
    %c-2_i32_188 = arith.constant -2 : i32
    %542 = vector.broadcast %c-2_i32_188 : i32 to vector<1x256xi32>
    %543 = arith.addi %12, %542 : vector<1x256xi32>
    %c0_i32_189 = arith.constant 0 : i32
    %544 = vector.broadcast %c0_i32_189 : i32 to vector<1x256xi32>
    %545 = arith.cmpi sge, %543, %544 : vector<1x256xi32>
    %546 = arith.andi %541, %545 : vector<1x256xi1>
    %c-2_i32_190 = arith.constant -2 : i32
    %547 = vector.broadcast %c-2_i32_190 : i32 to vector<1x256xi32>
    %548 = arith.addi %12, %547 : vector<1x256xi32>
    %c16_i32_191 = arith.constant 16 : i32
    %549 = vector.broadcast %c16_i32_191 : i32 to vector<1x256xi32>
    %550 = arith.cmpi slt, %548, %549 : vector<1x256xi32>
    %551 = arith.andi %546, %550 : vector<1x256xi1>
    %cst_192 = arith.constant 0.000000e+00 : f32
    %552 = vector.shape_cast %551 : vector<1x256xi1> to vector<1x256xi1>
    %553 = vector.broadcast %552 : vector<1x256xi1> to vector<4x256xi1>
    %554 = vector.broadcast %cst_192 : f32 to vector<4x256xf32>
    %555 = arith.select %553, %532, %554 : vector<4x256xi1>, vector<4x256xf32>
    %556 = vector.extract_strided_slice %10 {offsets = [0, 31], sizes = [4, 225], strides = [1, 1]} : vector<4x256xf32> to vector<4x225xf32>
    %557 = vector.extract_strided_slice %10 {offsets = [0, 0], sizes = [4, 31], strides = [1, 1]} : vector<4x256xf32> to vector<4x31xf32>
    %558 = tpu.concatenate %556, %557 in 1 : vector<4x225xf32>, vector<4x31xf32> -> vector<4x256xf32>
    %c2_i32_193 = arith.constant 2 : i32
    %559 = vector.broadcast %c2_i32_193 : i32 to vector<1x256xi32>
    %560 = arith.addi %11, %559 : vector<1x256xi32>
    %c0_i32_194 = arith.constant 0 : i32
    %561 = vector.broadcast %c0_i32_194 : i32 to vector<1x256xi32>
    %562 = arith.cmpi sge, %560, %561 : vector<1x256xi32>
    %c2_i32_195 = arith.constant 2 : i32
    %563 = vector.broadcast %c2_i32_195 : i32 to vector<1x256xi32>
    %564 = arith.addi %11, %563 : vector<1x256xi32>
    %c16_i32_196 = arith.constant 16 : i32
    %565 = vector.broadcast %c16_i32_196 : i32 to vector<1x256xi32>
    %566 = arith.cmpi slt, %564, %565 : vector<1x256xi32>
    %567 = arith.andi %562, %566 : vector<1x256xi1>
    %c-1_i32_197 = arith.constant -1 : i32
    %568 = vector.broadcast %c-1_i32_197 : i32 to vector<1x256xi32>
    %569 = arith.addi %12, %568 : vector<1x256xi32>
    %c0_i32_198 = arith.constant 0 : i32
    %570 = vector.broadcast %c0_i32_198 : i32 to vector<1x256xi32>
    %571 = arith.cmpi sge, %569, %570 : vector<1x256xi32>
    %572 = arith.andi %567, %571 : vector<1x256xi1>
    %c-1_i32_199 = arith.constant -1 : i32
    %573 = vector.broadcast %c-1_i32_199 : i32 to vector<1x256xi32>
    %574 = arith.addi %12, %573 : vector<1x256xi32>
    %c16_i32_200 = arith.constant 16 : i32
    %575 = vector.broadcast %c16_i32_200 : i32 to vector<1x256xi32>
    %576 = arith.cmpi slt, %574, %575 : vector<1x256xi32>
    %577 = arith.andi %572, %576 : vector<1x256xi1>
    %cst_201 = arith.constant 0.000000e+00 : f32
    %578 = vector.shape_cast %577 : vector<1x256xi1> to vector<1x256xi1>
    %579 = vector.broadcast %578 : vector<1x256xi1> to vector<4x256xi1>
    %580 = vector.broadcast %cst_201 : f32 to vector<4x256xf32>
    %581 = arith.select %579, %558, %580 : vector<4x256xi1>, vector<4x256xf32>
    %582 = vector.extract_strided_slice %10 {offsets = [0, 32], sizes = [4, 224], strides = [1, 1]} : vector<4x256xf32> to vector<4x224xf32>
    %583 = vector.extract_strided_slice %10 {offsets = [0, 0], sizes = [4, 32], strides = [1, 1]} : vector<4x256xf32> to vector<4x32xf32>
    %584 = tpu.concatenate %582, %583 in 1 : vector<4x224xf32>, vector<4x32xf32> -> vector<4x256xf32>
    %c2_i32_202 = arith.constant 2 : i32
    %585 = vector.broadcast %c2_i32_202 : i32 to vector<1x256xi32>
    %586 = arith.addi %11, %585 : vector<1x256xi32>
    %c0_i32_203 = arith.constant 0 : i32
    %587 = vector.broadcast %c0_i32_203 : i32 to vector<1x256xi32>
    %588 = arith.cmpi sge, %586, %587 : vector<1x256xi32>
    %c2_i32_204 = arith.constant 2 : i32
    %589 = vector.broadcast %c2_i32_204 : i32 to vector<1x256xi32>
    %590 = arith.addi %11, %589 : vector<1x256xi32>
    %c16_i32_205 = arith.constant 16 : i32
    %591 = vector.broadcast %c16_i32_205 : i32 to vector<1x256xi32>
    %592 = arith.cmpi slt, %590, %591 : vector<1x256xi32>
    %593 = arith.andi %588, %592 : vector<1x256xi1>
    %c0_i32_206 = arith.constant 0 : i32
    %594 = vector.broadcast %c0_i32_206 : i32 to vector<1x256xi32>
    %595 = arith.addi %12, %594 : vector<1x256xi32>
    %c0_i32_207 = arith.constant 0 : i32
    %596 = vector.broadcast %c0_i32_207 : i32 to vector<1x256xi32>
    %597 = arith.cmpi sge, %595, %596 : vector<1x256xi32>
    %598 = arith.andi %593, %597 : vector<1x256xi1>
    %c0_i32_208 = arith.constant 0 : i32
    %599 = vector.broadcast %c0_i32_208 : i32 to vector<1x256xi32>
    %600 = arith.addi %12, %599 : vector<1x256xi32>
    %c16_i32_209 = arith.constant 16 : i32
    %601 = vector.broadcast %c16_i32_209 : i32 to vector<1x256xi32>
    %602 = arith.cmpi slt, %600, %601 : vector<1x256xi32>
    %603 = arith.andi %598, %602 : vector<1x256xi1>
    %cst_210 = arith.constant 0.000000e+00 : f32
    %604 = vector.shape_cast %603 : vector<1x256xi1> to vector<1x256xi1>
    %605 = vector.broadcast %604 : vector<1x256xi1> to vector<4x256xi1>
    %606 = vector.broadcast %cst_210 : f32 to vector<4x256xf32>
    %607 = arith.select %605, %584, %606 : vector<4x256xi1>, vector<4x256xf32>
    %608 = vector.extract_strided_slice %10 {offsets = [0, 33], sizes = [4, 223], strides = [1, 1]} : vector<4x256xf32> to vector<4x223xf32>
    %609 = vector.extract_strided_slice %10 {offsets = [0, 0], sizes = [4, 33], strides = [1, 1]} : vector<4x256xf32> to vector<4x33xf32>
    %610 = tpu.concatenate %608, %609 in 1 : vector<4x223xf32>, vector<4x33xf32> -> vector<4x256xf32>
    %c2_i32_211 = arith.constant 2 : i32
    %611 = vector.broadcast %c2_i32_211 : i32 to vector<1x256xi32>
    %612 = arith.addi %11, %611 : vector<1x256xi32>
    %c0_i32_212 = arith.constant 0 : i32
    %613 = vector.broadcast %c0_i32_212 : i32 to vector<1x256xi32>
    %614 = arith.cmpi sge, %612, %613 : vector<1x256xi32>
    %c2_i32_213 = arith.constant 2 : i32
    %615 = vector.broadcast %c2_i32_213 : i32 to vector<1x256xi32>
    %616 = arith.addi %11, %615 : vector<1x256xi32>
    %c16_i32_214 = arith.constant 16 : i32
    %617 = vector.broadcast %c16_i32_214 : i32 to vector<1x256xi32>
    %618 = arith.cmpi slt, %616, %617 : vector<1x256xi32>
    %619 = arith.andi %614, %618 : vector<1x256xi1>
    %c1_i32_215 = arith.constant 1 : i32
    %620 = vector.broadcast %c1_i32_215 : i32 to vector<1x256xi32>
    %621 = arith.addi %12, %620 : vector<1x256xi32>
    %c0_i32_216 = arith.constant 0 : i32
    %622 = vector.broadcast %c0_i32_216 : i32 to vector<1x256xi32>
    %623 = arith.cmpi sge, %621, %622 : vector<1x256xi32>
    %624 = arith.andi %619, %623 : vector<1x256xi1>
    %c1_i32_217 = arith.constant 1 : i32
    %625 = vector.broadcast %c1_i32_217 : i32 to vector<1x256xi32>
    %626 = arith.addi %12, %625 : vector<1x256xi32>
    %c16_i32_218 = arith.constant 16 : i32
    %627 = vector.broadcast %c16_i32_218 : i32 to vector<1x256xi32>
    %628 = arith.cmpi slt, %626, %627 : vector<1x256xi32>
    %629 = arith.andi %624, %628 : vector<1x256xi1>
    %cst_219 = arith.constant 0.000000e+00 : f32
    %630 = vector.shape_cast %629 : vector<1x256xi1> to vector<1x256xi1>
    %631 = vector.broadcast %630 : vector<1x256xi1> to vector<4x256xi1>
    %632 = vector.broadcast %cst_219 : f32 to vector<4x256xf32>
    %633 = arith.select %631, %610, %632 : vector<4x256xi1>, vector<4x256xf32>
    %634 = vector.extract_strided_slice %10 {offsets = [0, 34], sizes = [4, 222], strides = [1, 1]} : vector<4x256xf32> to vector<4x222xf32>
    %635 = vector.extract_strided_slice %10 {offsets = [0, 0], sizes = [4, 34], strides = [1, 1]} : vector<4x256xf32> to vector<4x34xf32>
    %636 = tpu.concatenate %634, %635 in 1 : vector<4x222xf32>, vector<4x34xf32> -> vector<4x256xf32>
    %c2_i32_220 = arith.constant 2 : i32
    %637 = vector.broadcast %c2_i32_220 : i32 to vector<1x256xi32>
    %638 = arith.addi %11, %637 : vector<1x256xi32>
    %c0_i32_221 = arith.constant 0 : i32
    %639 = vector.broadcast %c0_i32_221 : i32 to vector<1x256xi32>
    %640 = arith.cmpi sge, %638, %639 : vector<1x256xi32>
    %c2_i32_222 = arith.constant 2 : i32
    %641 = vector.broadcast %c2_i32_222 : i32 to vector<1x256xi32>
    %642 = arith.addi %11, %641 : vector<1x256xi32>
    %c16_i32_223 = arith.constant 16 : i32
    %643 = vector.broadcast %c16_i32_223 : i32 to vector<1x256xi32>
    %644 = arith.cmpi slt, %642, %643 : vector<1x256xi32>
    %645 = arith.andi %640, %644 : vector<1x256xi1>
    %c2_i32_224 = arith.constant 2 : i32
    %646 = vector.broadcast %c2_i32_224 : i32 to vector<1x256xi32>
    %647 = arith.addi %12, %646 : vector<1x256xi32>
    %c0_i32_225 = arith.constant 0 : i32
    %648 = vector.broadcast %c0_i32_225 : i32 to vector<1x256xi32>
    %649 = arith.cmpi sge, %647, %648 : vector<1x256xi32>
    %650 = arith.andi %645, %649 : vector<1x256xi1>
    %c2_i32_226 = arith.constant 2 : i32
    %651 = vector.broadcast %c2_i32_226 : i32 to vector<1x256xi32>
    %652 = arith.addi %12, %651 : vector<1x256xi32>
    %c16_i32_227 = arith.constant 16 : i32
    %653 = vector.broadcast %c16_i32_227 : i32 to vector<1x256xi32>
    %654 = arith.cmpi slt, %652, %653 : vector<1x256xi32>
    %655 = arith.andi %650, %654 : vector<1x256xi1>
    %cst_228 = arith.constant 0.000000e+00 : f32
    %656 = vector.shape_cast %655 : vector<1x256xi1> to vector<1x256xi1>
    %657 = vector.broadcast %656 : vector<1x256xi1> to vector<4x256xi1>
    %658 = vector.broadcast %cst_228 : f32 to vector<4x256xf32>
    %659 = arith.select %657, %636, %658 : vector<4x256xi1>, vector<4x256xf32>
    %660 = tpu.concatenate %38, %64, %90, %116, %142, %168, %194, %220, %246, %272, %298, %324, %347, %373, %399, %425 in 0 : vector<4x256xf32>, vector<4x256xf32>, vector<4x256xf32>, vector<4x256xf32>, vector<4x256xf32>, vector<4x256xf32>, vector<4x256xf32>, vector<4x256xf32>, vector<4x256xf32>, vector<4x256xf32>, vector<4x256xf32>, vector<4x256xf32>, vector<4x256xf32>, vector<4x256xf32>, vector<4x256xf32>, vector<4x256xf32> -> vector<64x256xf32>
    %661 = tpu.concatenate %451, %477, %503, %529, %555, %581, %607, %633, %659 in 0 : vector<4x256xf32>, vector<4x256xf32>, vector<4x256xf32>, vector<4x256xf32>, vector<4x256xf32>, vector<4x256xf32>, vector<4x256xf32>, vector<4x256xf32>, vector<4x256xf32> -> vector<36x256xf32>
    %662 = tpu.concatenate %660, %661 in 0 : vector<64x256xf32>, vector<36x256xf32> -> vector<100x256xf32>
    %663 = arith.truncf %662 : vector<100x256xf32> to vector<100x256xbf16>
    %c0_229 = arith.constant 0 : index
    %c0_230 = arith.constant 0 : index
    %664 = vector.load %arg4[%c0_229, %c0_230] : memref<8x100xbf16, #tpu.memory_space<vmem>>, vector<8x100xbf16>
    %cst_231 = arith.constant dense<0.000000e+00> : vector<8x256xf32>
    %665 = tpu.matmul %664, %663, %cst_231 {dimension_numbers = #tpu.dot_dimension_numbers<[1], [0], [0], [1], [0, 0, 1, 1], [], []>} : vector<8x100xbf16>, vector<100x256xbf16>, vector<8x256xf32> -> vector<8x256xf32>
    %666 = arith.truncf %665 : vector<8x256xf32> to vector<8x256xbf16>
    %c0_232 = arith.constant 0 : index
    %c0_233 = arith.constant 0 : index
    %c0_234 = arith.constant 0 : index
    %667 = vector.load %arg7[%c0_232, %c0_233, %c0_234] : memref<1x8x256xbf16, #tpu.memory_space<vmem>>, vector<1x8x256xbf16>
    %668 = vector.shape_cast %667 : vector<1x8x256xbf16> to vector<8x256xbf16>
    %669 = vector.shape_cast %666 : vector<8x256xbf16> to vector<1x8x256xbf16>
    tpu.vector_store %arg7[%c0_232, %c0_233, %c0_234], %669 {strides = array<i32>} : memref<1x8x256xbf16, #tpu.memory_space<vmem>>, vector<1x8x256xbf16>,
    %cst_235 = arith.constant dense<0.000000e+00> : vector<8xf32>
    %670 = vector.multi_reduction <add>, %665, %cst_235 [1] : vector<8x256xf32> to vector<8xf32>
    %671 = vector.shape_cast %670 : vector<8xf32> to vector<8x1xf32>
    %c0_236 = arith.constant 0 : index
    %c0_237 = arith.constant 0 : index
    %c0_238 = arith.constant 0 : index
    %672 = vector.load %arg8[%c0_236, %c0_237, %c0_238] : memref<1x8x1xf32, #tpu.memory_space<vmem>>, vector<1x8x1xf32>
    %673 = vector.shape_cast %672 : vector<1x8x1xf32> to vector<8x1xf32>
    %674 = vector.shape_cast %671 : vector<8x1xf32> to vector<1x8x1xf32>
    tpu.vector_store %arg8[%c0_236, %c0_237, %c0_238], %674 {strides = array<i32>} : memref<1x8x1xf32, #tpu.memory_space<vmem>>, vector<1x8x1xf32>,
    %675 = arith.mulf %665, %665 : vector<8x256xf32>
    %cst_239 = arith.constant dense<0.000000e+00> : vector<8xf32>
    %676 = vector.multi_reduction <add>, %675, %cst_239 [1] : vector<8x256xf32> to vector<8xf32>
    %677 = vector.shape_cast %676 : vector<8xf32> to vector<8x1xf32>
    %c0_240 = arith.constant 0 : index
    %c0_241 = arith.constant 0 : index
    %c0_242 = arith.constant 0 : index
    %678 = vector.load %arg9[%c0_240, %c0_241, %c0_242] : memref<1x8x1xf32, #tpu.memory_space<vmem>>, vector<1x8x1xf32>
    %679 = vector.shape_cast %678 : vector<1x8x1xf32> to vector<8x1xf32>
    %680 = vector.shape_cast %677 : vector<8x1xf32> to vector<1x8x1xf32>
    tpu.vector_store %arg9[%c0_240, %c0_241, %c0_242], %680 {strides = array<i32>} : memref<1x8x1xf32, #tpu.memory_space<vmem>>, vector<1x8x1xf32>,
    return
  }
  func.func @transform_0(%arg0: i32) -> (i32, i32, i32) {
    %c0_i32 = arith.constant 0 : i32
    %c0_i32_0 = arith.constant 0 : i32
    %c0_i32_1 = arith.constant 0 : i32
    return %arg0, %c0_i32, %c0_i32_0 : i32, i32, i32
  }
  func.func @transform_1(%arg0: i32) -> (i32, i32) {
    %c0_i32 = arith.constant 0 : i32
    %c0_i32_0 = arith.constant 0 : i32
    %c0_i32_1 = arith.constant 0 : i32
    return %c0_i32, %c0_i32_0 : i32, i32
  }
  func.func @transform_2(%arg0: i32) -> (i32, i32) {
    %c0_i32 = arith.constant 0 : i32
    %c0_i32_0 = arith.constant 0 : i32
    %c0_i32_1 = arith.constant 0 : i32
    return %c0_i32, %c0_i32_0 : i32, i32
  }
  func.func @transform_3(%arg0: i32) -> (i32, i32) {
    %c0_i32 = arith.constant 0 : i32
    %c0_i32_0 = arith.constant 0 : i32
    %c0_i32_1 = arith.constant 0 : i32
    return %c0_i32, %c0_i32_0 : i32, i32
  }
  func.func @transform_4(%arg0: i32) -> (i32, i32) {
    %c0_i32 = arith.constant 0 : i32
    %c0_i32_0 = arith.constant 0 : i32
    %c0_i32_1 = arith.constant 0 : i32
    return %c0_i32, %c0_i32_0 : i32, i32
  }
  func.func @transform_5(%arg0: i32) -> (i32, i32) {
    %c0_i32 = arith.constant 0 : i32
    %c0_i32_0 = arith.constant 0 : i32
    %c0_i32_1 = arith.constant 0 : i32
    return %c0_i32, %c0_i32_0 : i32, i32
  }
  func.func @transform_6(%arg0: i32) -> (i32, i32, i32) {
    %c0_i32 = arith.constant 0 : i32
    %c0_i32_0 = arith.constant 0 : i32
    %c0_i32_1 = arith.constant 0 : i32
    return %arg0, %c0_i32, %c0_i32_0 : i32, i32, i32
  }
  func.func @transform_7(%arg0: i32) -> (i32, i32, i32) {
    %c0_i32 = arith.constant 0 : i32
    %c0_i32_0 = arith.constant 0 : i32
    %c0_i32_1 = arith.constant 0 : i32
    return %arg0, %c0_i32, %c0_i32_0 : i32, i32, i32
  }
  func.func @transform_8(%arg0: i32) -> (i32, i32, i32) {
    %c0_i32 = arith.constant 0 : i32
    %c0_i32_0 = arith.constant 0 : i32
    %c0_i32_1 = arith.constant 0 : i32
    return %arg0, %c0_i32, %c0_i32_0 : i32, i32, i32
  }
}

module attributes {stable_mosaic.version = 11 : i64} {
  func.func @_se_kernel(%arg0: i32, %arg1: i32, %arg2: memref<1x32x1xf32, #tpu.memory_space<vmem>>, %arg3: memref<10x32xf32, #tpu.memory_space<vmem>>, %arg4: memref<10x1xf32, #tpu.memory_space<vmem>>, %arg5: memref<32x10xf32, #tpu.memory_space<vmem>>, %arg6: memref<32x1xf32, #tpu.memory_space<vmem>>, %arg7: memref<1x32x256xbf16, #tpu.memory_space<vmem>>, %arg8: memref<1x32x256xf32, #tpu.memory_space<vmem>>, %arg9: memref<32x1xf32, #tpu.memory_space<vmem>>) attributes {dimension_semantics = [#tpu.dimension_semantics<parallel>, #tpu.dimension_semantics<arbitrary>], iteration_bounds = array<i64: 2, 1>, scalar_prefetch = 0 : i64, scratch_operands = 1 : i64, tpu.core_type = #tpu.core_type<tc>, window_params = [{transform_indices = @transform_0, window_bounds = array<i64: 1, 32, 1>}, {pipeline_mode = #tpu.pipeline_mode<synchronous>, transform_indices = @transform_1, window_bounds = array<i64: 10, 32>}, {pipeline_mode = #tpu.pipeline_mode<synchronous>, transform_indices = @transform_2, window_bounds = array<i64: 10, 1>}, {pipeline_mode = #tpu.pipeline_mode<synchronous>, transform_indices = @transform_3, window_bounds = array<i64: 32, 10>}, {pipeline_mode = #tpu.pipeline_mode<synchronous>, transform_indices = @transform_4, window_bounds = array<i64: 32, 1>}, {transform_indices = @transform_5, window_bounds = array<i64: 1, 32, 256>}, {transform_indices = @transform_6, window_bounds = array<i64: 1, 32, 256>}]} {
    %c0_i32 = arith.constant 0 : i32
    %0 = arith.cmpi eq, %arg1, %c0_i32 : i32
    %1 = arith.extui %0 : i1 to i32
    %c0_i32_0 = arith.constant 0 : i32
    %2 = arith.cmpi ne, %1, %c0_i32_0 : i32
    scf.if %2 {
      %c0_8 = arith.constant 0 : index
      %c0_9 = arith.constant 0 : index
      %c0_10 = arith.constant 0 : index
      %12 = vector.load %arg2[%c0_8, %c0_9, %c0_10] : memref<1x32x1xf32, #tpu.memory_space<vmem>>, vector<1x32x1xf32>
      %13 = vector.shape_cast %12 : vector<1x32x1xf32> to vector<32x1xf32>
      %cst = arith.constant 3.906250e-03 : f32
      %14 = vector.broadcast %cst : f32 to vector<32x1xf32>
      %15 = arith.mulf %13, %14 : vector<32x1xf32>
      %c0_11 = arith.constant 0 : index
      %c0_12 = arith.constant 0 : index
      %16 = vector.load %arg3[%c0_11, %c0_12] : memref<10x32xf32, #tpu.memory_space<vmem>>, vector<10x32xf32>
      %cst_13 = arith.constant dense<0.000000e+00> : vector<10x1xf32>
      %17 = tpu.matmul %16, %15, %cst_13 {dimension_numbers = #tpu.dot_dimension_numbers<[1], [0], [0], [1], [0, 0, 1, 1], [], []>} : vector<10x32xf32>, vector<32x1xf32>, vector<10x1xf32> -> vector<10x1xf32>
      %c0_14 = arith.constant 0 : index
      %c0_15 = arith.constant 0 : index
      %18 = vector.load %arg4[%c0_14, %c0_15] : memref<10x1xf32, #tpu.memory_space<vmem>>, vector<10x1xf32>
      %19 = arith.addf %17, %18 : vector<10x1xf32>
      %cst_16 = arith.constant 0.000000e+00 : f32
      %20 = vector.broadcast %cst_16 : f32 to vector<10x1xf32>
      %21 = arith.maximumf %19, %20 : vector<10x1xf32>
      %c0_17 = arith.constant 0 : index
      %c0_18 = arith.constant 0 : index
      %22 = vector.load %arg5[%c0_17, %c0_18] : memref<32x10xf32, #tpu.memory_space<vmem>>, vector<32x10xf32>
      %cst_19 = arith.constant dense<0.000000e+00> : vector<32x1xf32>
      %23 = tpu.matmul %22, %21, %cst_19 {dimension_numbers = #tpu.dot_dimension_numbers<[1], [0], [0], [1], [0, 0, 1, 1], [], []>} : vector<32x10xf32>, vector<10x1xf32>, vector<32x1xf32> -> vector<32x1xf32>
      %c0_20 = arith.constant 0 : index
      %c0_21 = arith.constant 0 : index
      %24 = vector.load %arg6[%c0_20, %c0_21] : memref<32x1xf32, #tpu.memory_space<vmem>>, vector<32x1xf32>
      %25 = arith.addf %23, %24 : vector<32x1xf32>
      %26 = arith.negf %25 : vector<32x1xf32>
      %27 = math.exp %26 : vector<32x1xf32>
      %cst_22 = arith.constant 1.000000e+00 : f32
      %28 = vector.broadcast %cst_22 : f32 to vector<32x1xf32>
      %29 = arith.addf %28, %27 : vector<32x1xf32>
      %30 = arith.divf %28, %29 : vector<32x1xf32>
      %c0_23 = arith.constant 0 : index
      %c0_24 = arith.constant 0 : index
      %31 = vector.load %arg9[%c0_23, %c0_24] : memref<32x1xf32, #tpu.memory_space<vmem>>, vector<32x1xf32>
      tpu.vector_store %arg9[%c0_23, %c0_24], %30 {strides = array<i32>} : memref<32x1xf32, #tpu.memory_space<vmem>>, vector<32x1xf32>,
    } else {
    }
    %c0 = arith.constant 0 : index
    %c0_1 = arith.constant 0 : index
    %c0_2 = arith.constant 0 : index
    %3 = vector.load %arg7[%c0, %c0_1, %c0_2] : memref<1x32x256xbf16, #tpu.memory_space<vmem>>, vector<1x32x256xbf16>
    %4 = vector.shape_cast %3 : vector<1x32x256xbf16> to vector<32x256xbf16>
    %5 = arith.extf %4 : vector<32x256xbf16> to vector<32x256xf32>
    %c0_3 = arith.constant 0 : index
    %c0_4 = arith.constant 0 : index
    %6 = vector.load %arg9[%c0_3, %c0_4] : memref<32x1xf32, #tpu.memory_space<vmem>>, vector<32x1xf32>
    %7 = vector.broadcast %6 : vector<32x1xf32> to vector<32x256xf32>
    %8 = arith.mulf %5, %7 : vector<32x256xf32>
    %c0_5 = arith.constant 0 : index
    %c0_6 = arith.constant 0 : index
    %c0_7 = arith.constant 0 : index
    %9 = vector.load %arg8[%c0_5, %c0_6, %c0_7] : memref<1x32x256xf32, #tpu.memory_space<vmem>>, vector<1x32x256xf32>
    %10 = vector.shape_cast %9 : vector<1x32x256xf32> to vector<32x256xf32>
    %11 = vector.shape_cast %8 : vector<32x256xf32> to vector<1x32x256xf32>
    tpu.vector_store %arg8[%c0_5, %c0_6, %c0_7], %11 {strides = array<i32>} : memref<1x32x256xf32, #tpu.memory_space<vmem>>, vector<1x32x256xf32>,
    return
  }
  func.func @transform_0(%arg0: i32, %arg1: i32) -> (i32, i32, i32) {
    %c0_i32 = arith.constant 0 : i32
    %c0_i32_0 = arith.constant 0 : i32
    %c0_i32_1 = arith.constant 0 : i32
    return %arg0, %c0_i32, %c0_i32_0 : i32, i32, i32
  }
  func.func @transform_1(%arg0: i32, %arg1: i32) -> (i32, i32) {
    %c0_i32 = arith.constant 0 : i32
    %c0_i32_0 = arith.constant 0 : i32
    %c0_i32_1 = arith.constant 0 : i32
    return %c0_i32, %c0_i32_0 : i32, i32
  }
  func.func @transform_2(%arg0: i32, %arg1: i32) -> (i32, i32) {
    %c0_i32 = arith.constant 0 : i32
    %c0_i32_0 = arith.constant 0 : i32
    %c0_i32_1 = arith.constant 0 : i32
    return %c0_i32, %c0_i32_0 : i32, i32
  }
  func.func @transform_3(%arg0: i32, %arg1: i32) -> (i32, i32) {
    %c0_i32 = arith.constant 0 : i32
    %c0_i32_0 = arith.constant 0 : i32
    %c0_i32_1 = arith.constant 0 : i32
    return %c0_i32, %c0_i32_0 : i32, i32
  }
  func.func @transform_4(%arg0: i32, %arg1: i32) -> (i32, i32) {
    %c0_i32 = arith.constant 0 : i32
    %c0_i32_0 = arith.constant 0 : i32
    %c0_i32_1 = arith.constant 0 : i32
    return %c0_i32, %c0_i32_0 : i32, i32
  }
  func.func @transform_5(%arg0: i32, %arg1: i32) -> (i32, i32, i32) {
    %c0_i32 = arith.constant 0 : i32
    %c0_i32_0 = arith.constant 0 : i32
    return %arg0, %c0_i32, %arg1 : i32, i32, i32
  }
  func.func @transform_6(%arg0: i32, %arg1: i32) -> (i32, i32, i32) {
    %c0_i32 = arith.constant 0 : i32
    %c0_i32_0 = arith.constant 0 : i32
    return %arg0, %c0_i32, %arg1 : i32, i32, i32
  }
}

</mosaic_0001>

<bundles_post_ra>
// kernel: se_inception_forward.8
= control target key start
LH: loop header
LB: loop body
LE: loop exit
PB: predicated region body
PF: predicated region fallthrough
CT: control target
= control target key end

     0   :  { %s939_s24 = smov 0   ;;  %s941_s25 = smov 0   ;;  %s1042_s0 = inlined_call_operand.vmem [shape: bf16[2,8,256], index: 0, kind: input, shape index: {}]   ;;  %s1043_s1 = inlined_call_operand.vmem [shape: bf16[2,8,256], index: 1, kind: input, shape index: {}]   ;;  %s1044_s2 = inlined_call_operand.vmem [shape: bf16[2,8,256], index: 2, kind: input, shape index: {}]   ;;  %s1045_s3 = inlined_call_operand.vmem [shape: bf16[2,8,256], index: 3, kind: input, shape index: {}]   ;;  %s1046_s4 = inlined_call_operand.vmem [shape: f32[32,1], index: 4, kind: input, shape index: {}]   ;;  %s1047_s5 = inlined_call_operand.vmem [shape: f32[32,1], index: 5, kind: input, shape index: {}]   ;;  %s1048_s6 = inlined_call_operand.vmem [shape: bf16[2,32,256], index: 6, kind: output, shape index: {0}]   ;;  %s1049_s7 = inlined_call_operand.vmem [shape: f32[2,32,1], index: 7, kind: output, shape index: {1}]  }
   0x1   :  { %s943_s26 = smov 0  }
   0x2 LB: > { %s30_s27 = sadd.s32 1, %s891_s25  ;;  %p800_p0 = scmp.ge.s32.totalorder %s895_s26, 1  ;;  %s895_s26 = sphi %s943_s26, %s18_s26   ;;  %s891_s25 = sphi %s941_s25, %s1051_s25   ;;  %s887_s24 = sphi %s939_s24, %s1050_s24  }
   0x3   : > { %p32_p1 = scmp.ge.s32.totalorder %s30_s27, 2  ;;  %p312_p2 = scmp.lt.s32.totalorder %s895_s26, 3 }
   0x5   : > { %s1053_s27 = smov (%p32_p1, %s30_s27), 0  ;;  %p313_p3 = pnand %p800_p0, %p312_p2 }
   0x6   : > { %v499_v0 = vld [vmem:[%s1046_s4 + $0x10] sm:$0xff] (!%p313_p3)  ;;  %v497_v1 = vld [vmem:[%s1046_s4] sm:$0xff] (!%p313_p3)  ;;  %v897_v2 = vmov (!%p313_p3), 0   ;;  %v500_v3 = vld [vmem:[%s1046_s4 + $0x18] sm:$0xff] (!%p313_p3)  ;;  %p385_p4 = scmp.lt.s32.totalorder (!%p313_p3), %s887_s24, 1  ;;  %vm443_vm0 = vcmask (!%p313_p3), 7168  }
   0x7   : > { %316 = sbr.rel (%p313_p3) target bundleno = 304 (0x130), region = 44  ;;  %864 = vset.pattern.permute.xlu1 (!%p313_p3), %v897_v2  ;;  %863 = vset.pattern.permute.xlu0 (!%p313_p3), %v897_v2  ;;  %v498_v4 = vld [vmem:[%s1046_s4 + $0x8] sm:$0xff] (!%p313_p3)  ;;  %v529_v6 = vld [vmem:[%s1047_s5] sm:$0xff] (!%p313_p3)  ;;  %v532_v7 = vld [vmem:[%s1047_s5 + $0x18] sm:$0xff] (!%p313_p3)  ;;  %v898_v9 = vmov (!%p313_p3), 0.0   ;;  %vm472_vm1 = vcmask (!%p313_p3), 1043456  }
   0x8   : > { %513 = vperm.xlu1 (!%p313_p3), %864, %v499_v0   ;;  %503 = vperm.xlu0 (!%p313_p3), %863, %v497_v1   ;;  %v530_v5 = vld [vmem:[%s1047_s5 + $0x8] sm:$0xff] (!%p313_p3)  ;;  %v531_v8 = vld [vmem:[%s1047_s5 + $0x10] sm:$0xff] (!%p313_p3) }
   0xc   : > { %518 = vperm.xlu1 (!%p313_p3), %864, %v500_v3   ;;  %508 = vperm.xlu0 (!%p313_p3), %863, %v498_v4  }
   0xe   : > { %s1055_s24 = smov (!%p385_p4, %s887_s24), 1 }
   0xf   : > { %s831_s21 = sshll.u32 %s1055_s24, 5  ;;  %s827_s29 = sshll.u32 %s1055_s24, 3 }
  0x10   : > { %540 = vperm.xlu1 %864, %v530_v5   ;;  %535 = vperm.xlu0 %863, %v529_v6   ;;  %s993_s28 = scalar_lea.vmem %s1049_s7, %s831_s21  ;;  %s392_s9 = scalar_lea.vmem %s1042_s0, %s827_s29 }
  0x11   : > { %445 = vst.msk [vmem:[%s993_s28 + $0x8] sm:$0xff] %vm443_vm0, %v898_v9  ;;  %444 = vst.msk [vmem:[%s993_s28] sm:$0xff] %vm443_vm0, %v898_v9  ;;  %s402_s12 = scalar_lea.vmem %s1043_s1, %s827_s29  ;;  %s412_s15 = scalar_lea.vmem %s1044_s2, %s827_s29  ;;  %v448_v10 = vld [vmem:[%s392_s9] sm:$0xff] }
  0x12   : > { %446 = vst.msk [vmem:[%s993_s28 + $0x10] sm:$0xff] %vm443_vm0, %v898_v9  ;;  %447 = vst.msk [vmem:[%s993_s28 + $0x18] sm:$0xff] %vm443_vm0, %v898_v9  ;;  %s422_s18 = scalar_lea.vmem %s1045_s3, %s827_s29  ;;  %v449_v11 = vld [vmem:[%s402_s12] sm:$0xff]  ;;  %v813_v14 = vcombine.low %v448_v10, %v448_v10  ;;  %v814_v15 = vcombine.high %v448_v10, %v448_v10  ;;  %s432_s22 = scalar_lea.vmem %s1048_s6, %s831_s21 }
  0x13   : > { %v450_v12 = vld [vmem:[%s412_s15] sm:$0xff]  ;;  %v815_v16 = vcombine.low %v449_v11, %v449_v11  ;;  %v816_v17 = vcombine.high %v449_v11, %v449_v11 }
  0x14   : > { %550 = vperm.xlu1 %864, %v532_v7   ;;  %545 = vperm.xlu0 %863, %v531_v8   ;;  %v451_v13 = vld [vmem:[%s422_s18] sm:$0xff]  ;;  %v817_v18 = vcombine.low %v450_v12, %v450_v12  ;;  %v818_v19 = vcombine.high %v450_v12, %v450_v12 }
  0x15   : > { %v819_v20 = vcombine.low %v451_v13, %v451_v13  ;;  %v820_v21 = vcombine.high %v451_v13, %v451_v13  ;;  %v475_v24 = vsel %vm472_vm1, %v813_v14, %v815_v16  ;;  %v479_v25 = vsel %vm472_vm1, %v814_v15, %v816_v17 }
  0x16   : > { %v489_v28 = vunpack.c.l.bf16 %v475_v24  ;;  %v490_v29 = vunpack.c.l.bf16 %v479_v25  ;;  %v491_v30 = vunpack.c.h.bf16 %v475_v24  ;;  %v492_v31 = vunpack.c.h.bf16 %v479_v25 }
  0x17   : > { %v483_v26 = vsel %vm472_vm1, %v817_v18, %v819_v20  ;;  %v487_v27 = vsel %vm472_vm1, %v818_v19, %v820_v21 }
  0x18   : > { %v495_v34 = vunpack.c.h.bf16 %v483_v26  ;;  %v496_v35 = vunpack.c.h.bf16 %v487_v27  ;;  %v493_v40 = vunpack.c.l.bf16 %v483_v26  ;;  %v494_v41 = vunpack.c.l.bf16 %v487_v27  ;;  %v598_v10 = vld [vmem:[%s993_s28 + $0x8] sm:$0xff]  ;;  %v597_v11 = vld [vmem:[%s993_s28] sm:$0xff] }
  0x19   : > { %v599_v16 = vld [vmem:[%s993_s28 + $0x10] sm:$0xff]  ;;  %v600_v19 = vld [vmem:[%s993_s28 + $0x18] sm:$0xff] }
  0x87   : > { %v514_v22 = vpop.permute.xlu1 %513  ;;  %v504_v23 = vpop.permute.xlu0 %503 }
  0x88   : > { %v521_v36 = vmul.f32 %v504_v23, %v489_v28  ;;  %v522_v37 = vmul.f32 %v504_v23, %v490_v29  ;;  %v525_v54 = vmul.f32 %v514_v22, %v493_v40  ;;  %v526_v55 = vmul.f32 %v514_v22, %v494_v41 }
  0x8b   : > { %v519_v32 = vpop.permute.xlu1 %518  ;;  %v509_v33 = vpop.permute.xlu0 %508 }
  0x8c   : > { %v523_v38 = vmul.f32 %v509_v33, %v491_v30  ;;  %v524_v39 = vmul.f32 %v509_v33, %v492_v31  ;;  %v527_v48 = vmul.f32 %v519_v32, %v495_v34  ;;  %v528_v49 = vmul.f32 %v519_v32, %v496_v35 }
  0x8f   : > { %v541_v42 = vpop.permute.xlu1 %540  ;;  %v536_v43 = vpop.permute.xlu0 %535 }
  0x90   : > { %v555_v44 = vadd.f32 %v541_v42, %v523_v38  ;;  %v556_v45 = vadd.f32 %v541_v42, %v524_v39  ;;  %v553_v46 = vadd.f32 %v536_v43, %v521_v36  ;;  %v554_v47 = vadd.f32 %v536_v43, %v522_v37 }
  0x92   : > { %v563_v50 = vmax.f32 %v555_v44, 0.0  ;;  %v564_v51 = vmax.f32 %v556_v45, 0.0  ;;  %v561_v52 = vmax.f32 %v553_v46, 0.0  ;;  %v562_v53 = vmax.f32 %v554_v47, 0.0 }
  0x93   : > { %v551_v56 = vpop.permute.xlu1 %550  ;;  %v546_v57 = vpop.permute.xlu0 %545 }
  0x94   : > { %v834_v58 = vpack.c.bf16 %v564_v51, %v563_v50  ;;  %v833_v59 = vpack.c.bf16 %v562_v53, %v561_v52  ;;  %v559_v60 = vadd.f32 %v551_v56, %v527_v48  ;;  %v560_v61 = vadd.f32 %v551_v56, %v528_v49 }
  0x95   : > { %v557_v62 = vadd.f32 %v546_v57, %v525_v54  ;;  %v558_v63 = vadd.f32 %v546_v57, %v526_v55  ;;  %v604_v0 = vadd.f32 %v564_v51, %v563_v50  ;;  %v601_v1 = vadd.f32 %v562_v53, %v561_v52 }
  0x96   : > { %594 = vst [vmem:[%s432_s22 + $0x8] sm:$0xff] %v834_v58  ;;  %593 = vst [vmem:[%s432_s22] sm:$0xff] %v833_v59  ;;  %v567_v2 = vmax.f32 %v559_v60, 0.0  ;;  %v568_v3 = vmax.f32 %v560_v61, 0.0 }
  0x97   : > { %v565_v4 = vmax.f32 %v557_v62, 0.0  ;;  %v566_v5 = vmax.f32 %v558_v63, 0.0  ;;  %605 = vadd.xlane.f32.xlu1 %v604_v0  ;;  %602 = vadd.xlane.f32.xlu0 %v601_v1 }
  0x98   : > { %v836_v6 = vpack.c.bf16 %v568_v3, %v567_v2  ;;  %v610_v9 = vadd.f32 %v568_v3, %v567_v2 }
  0x99   : > { %v835_v7 = vpack.c.bf16 %v566_v5, %v565_v4  ;;  %v607_v8 = vadd.f32 %v566_v5, %v565_v4 }
  0x9a   : > { %596 = vst [vmem:[%s432_s22 + $0x18] sm:$0xff] %v836_v6 }
  0x9b   : > { %595 = vst [vmem:[%s432_s22 + $0x10] sm:$0xff] %v835_v7  ;;  %608 = vadd.xlane.f32.xlu0 %v607_v8 }
  0x9f   : > { %611 = vadd.xlane.f32.xlu0 %v610_v9 }
 0x124   : > { %v606_v12 = vpop.xlane.xlu1 %605  ;;  %v603_v13 = vpop.xlane.xlu0 %602 }
 0x125   : > { %v614_v14 = vadd.f32 %v606_v12, %v598_v10  ;;  %v613_v15 = vadd.f32 %v603_v13, %v597_v11 }
 0x127   : > { %619 = vst.msk [vmem:[%s993_s28 + $0x8] sm:$0xff] %vm443_vm0, %v614_v14  ;;  %618 = vst.msk [vmem:[%s993_s28] sm:$0xff] %vm443_vm0, %v613_v15 }
 0x128   : > { %v609_v17 = vpop.xlane.xlu0 %608 }
 0x129   : > { %v615_v18 = vadd.f32 %v609_v17, %v599_v16 }
 0x12b   : > { %620 = vst.msk [vmem:[%s993_s28 + $0x10] sm:$0xff] %vm443_vm0, %v615_v18 }
 0x12c   : > { %v612_v20 = vpop.xlane.xlu0 %611 }
 0x12d   : > { %v616_v21 = vadd.f32 %v612_v20, %v600_v19 }
 0x12f   : > { %621 = vst.msk [vmem:[%s993_s28 + $0x18] sm:$0xff] %vm443_vm0, %v616_v21 }
 0x130 PF: > { %s18_s26 = sadd.s32 1, %s895_s26   ;;  %s1050_s24 = smov %s891_s25 }
 0x131   : > { %p15_p5 = scmp.ge.s32.totalorder %s18_s26, 4   ;;  %s1051_s25 = smov %s1053_s27 }
 0x133   :  { %17 = sbr.rel (!%p15_p5) target bundleno = 2 (0x2), region = 99 }

// kernel: se_inception_forward.6
= control target key start
LH: loop header
LB: loop body
LE: loop exit
PB: predicated region body
PF: predicated region fallthrough
CT: control target
= control target key end

     0   :  { %s967_s27 = smov 0   ;;  %s1240_s0 = inlined_call_operand.vmem [shape: bf16[2,4,256], index: 0, kind: input, shape index: {}]   ;;  %s1241_s1 = inlined_call_operand.vmem [shape: s32[1,256], index: 1, kind: input, shape index: {}]   ;;  %s1242_s2 = inlined_call_operand.vmem [shape: s32[1,256], index: 2, kind: input, shape index: {}]   ;;  %s1243_s3 = inlined_call_operand.vmem [shape: bf16[8,36], index: 3, kind: input, shape index: {}]   ;;  %s1244_s4 = inlined_call_operand.vmem [shape: f32[4,1], index: 4, kind: input, shape index: {}]   ;;  %s1245_s5 = inlined_call_operand.vmem [shape: f32[4,1], index: 5, kind: input, shape index: {}]   ;;  %s1246_s6 = inlined_call_operand.vmem [shape: bf16[2,8,256], index: 6, kind: output, shape index: {0}]   ;;  %s1247_s7 = inlined_call_operand.vmem [shape: f32[2,8,1], index: 7, kind: output, shape index: {1}]   ;;  %s1248_s8 = inlined_call_operand.vmem [shape: f32[2,8,1], index: 8, kind: output, shape index: {2}]  }
   0x1 LB: > { %s826_s28 = sadd.s32 4294967295, %s910_s27   ;;  %p830_p0 = scmp.ge.s32.totalorder %s910_s27, 1  ;;  %s910_s27 = sphi %s967_s27, %s19_s27  }
   0x2   : > { %p267_p1 = scmp.lt.s32.totalorder %s910_s27, 3 }
   0x4   : > { %p268_p2 = pnand %p830_p0, %p267_p1 }
   0x5   : > { %v330_v0 = vld [vmem:[%s1244_s4] sm:$0xf] (!%p268_p2)  ;;  %v912_v1 = vmov (!%p268_p2), 0   ;;  %p309_p3 = scmp.lt.s32.totalorder (!%p268_p2), %s826_s28, 1  ;;  %v913_v3 = vmov (!%p268_p2), 839922192   ;;  %v338_v5 = vlaneseq (!%p268_p2) }
   0x6   : > { %271 = sbr.rel (%p268_p2) target bundleno = 655 (0x28f), region = 44  ;;  %863 = vset.pattern.permute.xlu0 (!%p268_p2), %v912_v1  ;;  %681 = vmatprep.mubr.bf16.mxu0 (!%p268_p2), %v912_v1  ;;  %v344_v2 = vld [vmem:[%s1245_s5] sm:$0xf] (!%p268_p2)  ;;  %v336_v4 = vunpack.c.l.s4 (!%p268_p2), %v913_v3  ;;  %s914_s19 = smov (!%p268_p2), 17  }
   0x7   : > { %333 = vperm.xlu0 (!%p268_p2), %863, %v330_v0   ;;  %v359_v6 = vld [vmem:[%s1241_s1] sm:$0x3] (!%p268_p2)  ;;  %v339_v8 = vshrl.u32 (!%p268_p2), %v338_v5, 7  ;;  %s915_s20 = smov (!%p268_p2), 16   ;;  %s916_s21 = smov (!%p268_p2), 127  }
   0x8   : > { %v337_v7 = vunpack.c.0.s8 (!%p268_p2), %v336_v4  ;;  %v995_v9 = vld [vmem:[%s1242_s2] sm:$0x3] (!%p268_p2)  ;;  %vm460_vm0 = vcmp.ge.s32.totalorder (!%p268_p2), %v359_v6, 0  ;;  %vm461_vm1 = vcmp.lt.s32.totalorder (!%p268_p2), %v359_v6, 16  ;;  %s917_s22 = smov (!%p268_p2), 1   ;;  %s918_s23 = smov (!%p268_p2), 113  }
   0x9   : > { %vm997_vm2 = vmand (!%p268_p2), %vm460_vm0, %vm461_vm1  ;;  %vm1252_vm3 = vcmp.ge.s32.totalorder (!%p268_p2), %v995_v9, 0  ;;  %vm1254_vm4 = vcmp.lt.s32.totalorder (!%p268_p2), %v995_v9, 16  ;;  %v1009_v17 = vsub.s32 (!%p268_p2), 1, %v339_v8  ;;  %v1011_v20 = vsub.s32 (!%p268_p2), 0, %v339_v8  ;;  %s919_s24 = smov (!%p268_p2), 15   ;;  %s920_s25 = smov (!%p268_p2), 112  }
   0xa   : > { %v340_v10 = vsub.s32 (!%p268_p2), %v337_v7, %v339_v8  ;;  %vm478_vm5 = vmand (!%p268_p2), %vm997_vm2, %vm1252_vm3  ;;  %s921_s26 = smov (!%p268_p2), 111   ;;  %v373_v33 = vadd.s32 (!%p268_p2), 4294967295, %v359_v6  ;;  %v377_v34 = vadd.s32 (!%p268_p2), 4294967295, %v995_v9  ;;  %v432_v35 = vadd.s32 (!%p268_p2), 1, %v995_v9 }
   0xb   : > { %347 = vperm.xlu0 (!%p268_p2), %863, %v344_v2   ;;  %vm479_vm6 = vmand (!%p268_p2), %vm478_vm5, %vm1254_vm4  ;;  %v529_v36 = vadd.s32 (!%p268_p2), 1, %v359_v6 }
   0xc   : > { %v480_v22 = vsel (!%p268_p2), %vm479_vm6, 1, %v912_v1  ;;  %vm374_vm9 = vcmp.ge.s32.totalorder (!%p268_p2), %v373_v33, 0  ;;  %vm375_vm10 = vcmp.lt.s32.totalorder (!%p268_p2), %v373_v33, 16  ;;  %vm1251_vm12 = vcmp.ge.s32.totalorder (!%p268_p2), %v377_v34, 0 }
   0xd   : > { %s1310_s28 = smov (!%p309_p3, %s826_s28), 1  ;;  %v488_v24 = vrot.slane %v480_v22, %v1009_v17  ;;  %v484_v25 = vrot.slane %v480_v22, %v1011_v20  ;;  %vm376_vm11 = vmand %vm374_vm9, %vm375_vm10  ;;  %vm1255_vm13 = vcmp.ge.s32.totalorder %v432_v35, 0  ;;  %vm1253_vm15 = vcmp.lt.s32.totalorder %v377_v34, 16 }
   0xe   : > { %s842_s11 = sshll.u32 %s1310_s28, 2  ;;  %vm379_vm14 = vmand %vm376_vm11, %vm1251_vm12  ;;  %vm435_vm1 = vcmp.lt.s32.totalorder %v432_v35, 16  ;;  %vm530_vm10 = vcmp.ge.s32.totalorder %v529_v36, 0  ;;  %s843_s9 = sshll.u32 %s1310_s28, 3 }
   0xf   : > { %s313_s16 = scalar_lea.vmem %s1240_s0, %s842_s11  ;;  %vm1024_vm7 = vcmp.eq.s32.totalorder %v488_v24, 1  ;;  %vm1028_vm8 = vcmp.eq.s32.totalorder %v484_v25, 1  ;;  %vm406_vm0 = vmand %vm376_vm11, %vm1252_vm3  ;;  %vm1262_vm3 = vcmp.ge.s32.totalorder %v377_v34, 0  ;;  %s318_s12 = scalar_lea.vmem %s1246_s6, %s843_s9 }
  0x10   : > { %v328_v11 = vld [vmem:[%s313_s16] sm:$0xf]  ;;  %vm504_vm5 = vmand %vm997_vm2, %vm1255_vm13  ;;  %s322_s28 = scalar_lea.vmem %s1247_s7, %s843_s9  ;;  %s326_s17 = scalar_lea.vmem %s1248_s8, %s843_s9 }
  0x11   : > { %v329_v14 = vunpack.c.l.bf16 %v328_v11  ;;  %vm381_vm6 = vmand %vm379_vm14, %vm1253_vm15 }
  0x12   : > { %vm505_vm9 = vmand %vm504_vm5, %vm435_vm1  ;;  %v382_v37 = vsel %vm381_vm6, 1, %v912_v1  ;;  %vm498_vm6 = vcmask 1039360  }
  0x13   : > { %vm434_vm12 = vmand %vm376_vm11, %vm1255_vm13  ;;  %v506_v38 = vsel %vm505_vm9, 1, %v912_v1  ;;  %vm1264_vm11 = vcmp.lt.s32.totalorder %v377_v34, 16  ;;  %v390_v40 = vrot.slane %v382_v37, %v1009_v17  ;;  %v386_v41 = vrot.slane %v382_v37, %v1011_v20 }
  0x14   : > { %vm463_vm14 = vmand %vm997_vm2, %vm1262_vm3  ;;  %v510_v42 = vrot.slane %v506_v38, %v1011_v20  ;;  %v514_v44 = vrot.slane %v506_v38, %v1009_v17  ;;  %vm368_vm9 = vcmask 138240  }
  0x15   : > { %vm464_vm13 = vmand %vm463_vm14, %vm1264_vm11 }
  0x16   : > { %vm1265_vm2 = vmmov %vm1262_vm3  ;;  %v465_v46 = vsel %vm464_vm13, 1, %v912_v1  ;;  %vm1086_vm13 = vcmp.eq.s32.totalorder %v386_v41, 1 }
  0x17   : > { %vm1268_vm14 = vmmov %vm1264_vm11  ;;  %vm455_vm11 = vcmask 7168   ;;  %v473_v54 = vrot.slane %v465_v46, %v1009_v17  ;;  %v469_v2 = vrot.slane %v465_v46, %v1011_v20 }
  0x86   : > { %v334_v13 = vpop.permute.xlu0 %333 }
  0x87   : > { %v341_v15 = vrot.slane %v334_v13, %v340_v10 }
  0x89   : > { %v343_v18 = vmul.f32 %v341_v15, %v329_v14 }
  0x8a   : > { %v348_v16 = vpop.permute.xlu0 %347 }
  0x8b   : > { %v355_v19 = vrot.slane %v348_v16, %v340_v10 }
  0x8d   : > { %v357_v21 = vadd.f32 %v355_v19, %v343_v18 }
  0x8f   : > { %v1014_v23 = vmax.f32 %v357_v21, 0.0 }
  0x91   : > { %v1020_v26 = vcombine.high %v1014_v23, %v1014_v23  ;;  %v492_v32 = vsel %vm1028_vm8, %v1014_v23, 0.0  ;;  %vm408_vm8 = vmand %vm406_vm0, %vm1254_vm4  ;;  %vm1263_vm4 = vcmp.ge.s32.totalorder %v995_v9, 0 }
  0x92   : > { %vm436_vm0 = vmand %vm434_vm12, %vm435_vm1  ;;  %v409_v39 = vsel %vm408_vm8, 1, %v912_v1  ;;  %vm400_vm8 = vcmask 130048  }
  0x93   : > { %v874_v27 = vpack.i.bf16 %v1014_v23, %v1020_v26  ;;  %v493_v30 = vsel %vm1024_vm7, %v1020_v26, 0.0  ;;  %v884_v31 = vpack.i.bf16 %v1020_v26, %v1014_v23  ;;  %vm531_vm7 = vcmp.lt.s32.totalorder %v529_v36, 16 }
  0x94   : > { %vm532_vm15 = vmand %vm530_vm10, %vm531_vm7  ;;  %vm1266_vm7 = vcmp.lt.s32.totalorder %v995_v9, 16  ;;  %v417_v43 = vrot.slane %v409_v39, %v1009_v17  ;;  %v437_v45 = vsel %vm436_vm0, 1, %v912_v1  ;;  %v413_v47 = vrot.slane %v409_v39, %v1011_v20 }
  0x95   : > { %875 = vrot.lane.b32.xlu0 %v874_v27, %s914_s19  ;;  %865 = vrot.lane.b32.xlu1 %v874_v27, %s915_s20  ;;  %vm558_vm5 = vmand %vm532_vm15, %vm1263_vm4  ;;  %vm1267_vm4 = vcmp.ge.s32.totalorder %v432_v35, 0  ;;  %v445_v53 = vrot.slane %v437_v45, %v1009_v17  ;;  %v441_v55 = vrot.slane %v437_v45, %v1011_v20 }
  0x96   : > { %vm533_vm3 = vmand %vm532_vm15, %vm1265_vm2  ;;  %vm1082_vm2 = vcmp.eq.s32.totalorder %v390_v40, 1  ;;  %vm1090_vm0 = vcmp.eq.s32.totalorder %v417_v43, 1 }
  0x97   : > { %vm559_vm10 = vmand %vm558_vm5, %vm1266_vm7  ;;  %vm1105_vm7 = vcmp.eq.s32.totalorder %v413_v47, 1 }
  0x98   : > { %vm583_vm12 = vmand %vm532_vm15, %vm1267_vm4  ;;  %v560_v48 = vsel %vm559_vm10, 1, %v912_v1  ;;  %vm622_vm4 = vcmask 1043456   ;;  %vm1126_vm10 = vcmp.eq.s32.totalorder %v441_v55, 1 }
  0x99   : > { %885 = vrot.lane.b32.xlu0 %v884_v31, %s916_s21  ;;  %870 = vrot.lane.b32.xlu1 %v874_v27, %s917_s22  ;;  %vm534_vm5 = vmand %vm533_vm3, %vm1268_vm14  ;;  %vm1101_vm3 = vcmp.eq.s32.totalorder %v514_v44, 1  ;;  %v564_v62 = vrot.slane %v560_v48, %v1011_v20  ;;  %v568_v63 = vrot.slane %v560_v48, %v1009_v17  ;;  %vm1118_vm14 = vcmp.eq.s32.totalorder %v445_v53, 1 }
  0x9a   : > { %vm1078_vm15 = vmand %vm583_vm12, %vm435_vm1  ;;  %vm1097_vm1 = vcmp.eq.s32.totalorder %v510_v42, 1  ;;  %v535_v59 = vsel %vm534_vm5, 1, %v912_v1  ;;  %vm1122_vm5 = vcmp.eq.s32.totalorder %v473_v54, 1  ;;  %vm1140_vm12 = vcmp.eq.s32.totalorder %v469_v2, 1 }
  0x9b   : > { %v1115_v0 = vsel %vm1078_vm15, 1, %v912_v1  ;;  %v543_v1 = vrot.slane %v535_v59, %v1009_v17  ;;  %v539_v13 = vrot.slane %v535_v59, %v1011_v20  ;;  %vm1148_vm15 = vcmp.eq.s32.totalorder %v568_v63, 1 }
  0x9c   : > { %v593_v16 = vrot.slane %v1115_v0, %v1009_v17  ;;  %v589_v36 = vrot.slane %v1115_v0, %v1011_v20 }
  0x9d   : > { %895 = vrot.lane.b32.xlu0 %v884_v31, %s918_s23  ;;  %880 = vrot.lane.b32.xlu1 %v874_v27, %s919_s24 }
  0xa1   : > { %890 = vrot.lane.b32.xlu1 %v884_v31, %s920_s25 }
  0xa5   : > { %900 = vrot.lane.b32.xlu1 %v884_v31, %s921_s26 }
 0x107   : > { %v876_v60 = vpop.permute.xlu0 %875  ;;  %v866_v61 = vpop.permute.xlu1 %865 }
 0x108   : > { %v878_v3 = vunpack.i.h.bf16 %v876_v60  ;;  %v877_v4 = vunpack.i.l.bf16 %v876_v60  ;;  %v868_v5 = vunpack.i.h.bf16 %v866_v61  ;;  %v867_v6 = vunpack.i.l.bf16 %v866_v61 }
 0x10a   : > { %v401_v10 = vsel %vm400_vm8, %v868_v5, %v867_v6  ;;  %v404_v11 = vsel %vm400_vm8, %v867_v6, %v868_v5  ;;  %v369_v12 = vsel %vm368_vm9, %v878_v3, %v877_v4  ;;  %v372_v19 = vsel %vm368_vm9, %v877_v4, %v878_v3 }
 0x10b   : > { %v886_v14 = vpop.permute.xlu0 %885  ;;  %v871_v15 = vpop.permute.xlu1 %870  ;;  %v421_v18 = vsel %vm1090_vm0, %v401_v10, 0.0  ;;  %vm1144_vm8 = vcmp.eq.s32.totalorder %v564_v62, 1  ;;  %v394_v17 = vsel %vm1082_vm2, %v369_v12, 0.0  ;;  %v420_v35 = vsel %vm1105_vm7, %v404_v11, 0.0 }
 0x10c   : > { %v888_v22 = vunpack.i.h.bf16 %v886_v14  ;;  %v887_v24 = vunpack.i.l.bf16 %v886_v14  ;;  %v873_v25 = vunpack.i.h.bf16 %v871_v15  ;;  %v872_v27 = vunpack.i.l.bf16 %v871_v15 }
 0x10d   : > { %v601_v34 = vrot.slane %v421_v18, 4  ;;  %vm1162_vm9 = vcmp.eq.s32.totalorder %v543_v1, 1  ;;  %vm1166_vm2 = vcmp.eq.s32.totalorder %v539_v13, 1  ;;  %v393_v47 = vsel %vm1086_vm13, %v372_v19, 0.0 }
 0x10e   : > { %v499_v37 = vsel %vm498_vm6, %v887_v24, %v888_v22  ;;  %v503_v38 = vsel %vm498_vm6, %v888_v22, %v887_v24  ;;  %v456_v39 = vsel %vm455_vm11, %v873_v25, %v872_v27  ;;  %v459_v40 = vsel %vm455_vm11, %v872_v27, %v873_v25 }
 0x10f   : > { %v517_v43 = vsel %vm1097_vm1, %v499_v37, 0.0  ;;  %v518_v20 = vsel %vm1101_vm3, %v503_v38, 0.0  ;;  %v896_v44 = vpop.permute.xlu0 %895  ;;  %v881_v45 = vpop.permute.xlu1 %880  ;;  %vm577_vm6 = vcmask 908288   ;;  %v477_v46 = vsel %vm1122_vm5, %v456_v39, 0.0 }
 0x110   : > { %v613_v48 = vrot.slane %v518_v20, 4  ;;  %v898_v49 = vunpack.i.h.bf16 %v896_v44  ;;  %v897_v50 = vunpack.i.l.bf16 %v896_v44  ;;  %v600_v52 = vrot.slane %v420_v35, 4  ;;  %v637_v35 = vld [vmem:[%s1243_s3] sm:$0xf] }
 0x111   : > { %v612_v53 = vrot.slane %v517_v43, 4  ;;  %v883_v54 = vunpack.i.h.bf16 %v881_v45  ;;  %v882_v55 = vunpack.i.l.bf16 %v881_v45  ;;  %v476_v56 = vsel %vm1140_vm12, %v459_v40, 0.0 }
 0x112   : > { %vm1299_vm0 = vcmask 924672   ;;  %v607_v59 = vrot.slane %v477_v46, 4  ;;  %v624_v60 = vsel %vm622_vm4, %v394_v17, %v601_v34  ;;  %vm1301_vm3 = vcmask 121856  }
 0x113   : > { %v524_v57 = vsel %vm1299_vm0, %v897_v50, %v898_v49  ;;  %vm1300_vm1 = vmmov %vm1299_vm0  ;;  %v891_v61 = vpop.permute.xlu1 %890  ;;  %v428_v51 = vsel %vm1301_vm3, %v883_v54, %v882_v55  ;;  %v606_v63 = vrot.slane %v476_v56, 4  ;;  %v628_v0 = vsel %vm622_vm4, %v493_v30, %v613_v48 }
 0x114   : > { %v528_v58 = vsel %vm1300_vm1, %v898_v49, %v897_v50  ;;  %vm1302_vm13 = vmmov %vm1301_vm3  ;;  %v893_v2 = vunpack.i.h.bf16 %v891_v61  ;;  %v892_v3 = vunpack.i.l.bf16 %v891_v61  ;;  %v449_v4 = vsel %vm1118_vm14, %v428_v51, 0.0 }
 0x115   : > { %v431_v62 = vsel %vm1302_vm13, %v882_v55, %v883_v54  ;;  %v626_v6 = vsel %vm622_vm4, %v449_v4, %v607_v59  ;;  %v623_v8 = vsel %vm622_vm4, %v393_v47, %v600_v52  ;;  %v627_v26 = vsel %vm622_vm4, %v492_v32, %v612_v53 }
 0x116   : > { %v448_v5 = vsel %vm1126_vm10, %v431_v62, 0.0  ;;  %vm1305_vm5 = vcmask 916480   ;;  %v632_v7 = vpack.c.bf16 %v626_v6, %v624_v60  ;;  %vm595_vm10 = vcmp.eq.s32.totalorder %v593_v16, 1 }
 0x117   : > { %v625_v1 = vsel %vm622_vm4, %v448_v5, %v606_v63  ;;  %v553_v28 = vsel %vm1305_vm5, %v892_v3, %v893_v2  ;;  %vm1306_vm0 = vmmov %vm1305_vm5  ;;  %v901_v12 = vpop.permute.xlu1 %900  ;;  %vm1208_vm14 = vcmp.eq.s32.totalorder %v589_v36, 1  ;;  %v547_v15 = vsel %vm1162_vm9, %v528_v58, 0.0 }
 0x118   : > { %v557_v30 = vsel %vm1306_vm0, %v893_v2, %v892_v3  ;;  %v631_v10 = vpack.c.bf16 %v625_v1, %v623_v8  ;;  %v571_v9 = vsel %vm1144_vm8, %v553_v28, 0.0  ;;  %v903_v13 = vunpack.i.h.bf16 %v901_v12  ;;  %649 = vmatprep.subr.bf16.mxu0 %v632_v7 }
 0x119   : > { %v572_v11 = vsel %vm1148_vm15, %v557_v30, 0.0  ;;  %v618_v23 = vrot.slane %v571_v9, 4  ;;  %v902_v14 = vunpack.i.l.bf16 %v901_v12  ;;  %v546_v18 = vsel %vm1166_vm2, %v524_v57, 0.0 }
 0x11a   : > { %v619_v32 = vrot.slane %v572_v11, 4  ;;  %650 = vmatpush1.bf16.msra.mxu0 %v631_v10  ;;  %vm642_vm15 = vcmask 1041408  }
 0x11b   : > { %v582_v19 = vsel %vm577_vm6, %v903_v13, %v902_v14  ;;  %v629_v21 = vsel %vm622_vm4, %v546_v18, %v618_v23  ;;  %v578_v22 = vsel %vm577_vm6, %v902_v14, %v903_v13 }
 0x11c   : > { %v630_v16 = vsel %vm622_vm4, %v547_v15, %v619_v32  ;;  %v597_v24 = vsel %vm595_vm10, %v582_v19, 0.0  ;;  %v633_v27 = vpack.c.bf16 %v629_v21, %v627_v26  ;;  %v596_v31 = vsel %vm1208_vm14, %v578_v22, 0.0 }
 0x11d   : > { %v634_v25 = vpack.c.bf16 %v630_v16, %v628_v0  ;;  %v636_v33 = vpack.c.bf16 %v597_v24, %v597_v24  ;;  %v635_v17 = vpack.c.bf16 %v596_v31, %v596_v31  ;;  %vm638_vm4 = vcmask 293888  }
 0x11f   : > { %651 = vmatprep.subr.bf16.mxu0 %v634_v25  ;;  %v644_v34 = vsel %vm642_vm15, %v635_v17, 0 }
 0x120   : > { %652 = vmatpush1.bf16.msra.mxu0 %v633_v27 }
 0x121   : > { %837 = vmatprep.subr.msk.bf16.mxu0 %vm642_vm15, %v636_v33 }
 0x124   : > { %654 = vmatpush1.bf16.msra.mxu0 %v644_v34 }
 0x127   : > { %838 = vmatmul.mubr.msk.bf16.vlgmr.msra.gmra.mrb[0].mxu0 %vm638_vm4, %v637_v35 }
 0x1fa   : > { %v683_v36 = vpop.f32.mrb[0].mxu0 }
 0x1fb   : > { %v685_v37 = vpop.f32.mrb[1].mxu0  ;;  %v703_v38 = vmul.f32 %v683_v36, %v683_v36 }
 0x1fc   : > { %v844_v39 = vpack.c.bf16 %v685_v37, %v683_v36  ;;  %v687_v40 = vpop.f32.mrb[2].mxu0  ;;  %v699_v41 = vadd.f32 %v685_v37, %v683_v36  ;;  %v704_v42 = vmul.f32 %v685_v37, %v685_v37 }
 0x1fd   : > { %v688_v43 = vpop.f32.mrb[3].mxu0 }
 0x1fe   : > { %698 = vst [vmem:[%s318_s12] sm:$0xff] %v844_v39  ;;  %700 = vadd.xlane.f32.xlu0 %v699_v41  ;;  %v705_v20 = vadd.f32 %v704_v42, %v703_v38 }
 0x200   : > { %706 = vadd.xlane.f32.xlu1 %v705_v20 }
 0x28b   : > { %v701_v44 = vpop.xlane.xlu0 %700 }
 0x28c   : > { %702 = vst.msk [vmem:[%s322_s28] sm:$0xff] %vm455_vm11, %v701_v44 }
 0x28d   : > { %v707_v45 = vpop.xlane.xlu1 %706 }
 0x28e   : > { %708 = vst.msk [vmem:[%s326_s17] sm:$0xff] %vm455_vm11, %v707_v45 }
 0x28f PF: > { %s19_s27 = sadd.s32 1, %s910_s27  }
 0x290   : > { %p16_p4 = scmp.ge.s32.totalorder %s19_s27, 4  }
 0x292   :  { %18 = sbr.rel (!%p16_p4) target bundleno = 1 (0x1), region = 98 }

// kernel: se_inception_forward.5
= control target key start
LH: loop header
LB: loop body
LE: loop exit
PB: predicated region body
PF: predicated region fallthrough
CT: control target
= control target key end

     0   :  { %s1474_s21 = smov 0   ;;  %s1722_s0 = inlined_call_operand.vmem [shape: bf16[2,4,256], index: 0, kind: input, shape index: {}]   ;;  %s1723_s1 = inlined_call_operand.vmem [shape: s32[1,256], index: 1, kind: input, shape index: {}]   ;;  %s1724_s2 = inlined_call_operand.vmem [shape: s32[1,256], index: 2, kind: input, shape index: {}]   ;;  %s1725_s3 = inlined_call_operand.vmem [shape: bf16[8,4], index: 3, kind: input, shape index: {}]   ;;  %s1726_s4 = inlined_call_operand.vmem [shape: bf16[8,4], index: 4, kind: input, shape index: {}]   ;;  %s1727_s5 = inlined_call_operand.vmem [shape: bf16[4,4], index: 5, kind: input, shape index: {}]   ;;  %s1728_s6 = inlined_call_operand.vmem [shape: bf16[4,4], index: 6, kind: input, shape index: {}]   ;;  %s1729_s7 = inlined_call_operand.vmem [shape: bf16[2,8,256], index: 7, kind: output, shape index: {0}]   ;;  %s1730_s8 = inlined_call_operand.vmem [shape: bf16[2,8,256], index: 8, kind: output, shape index: {1}]   ;;  %s1731_s9 = inlined_call_operand.vmem [shape: bf16[2,4,256], index: 9, kind: output, shape index: {2}]   ;;  %s1732_s10 = inlined_call_operand.vmem [shape: bf16[2,4,256], index: 10, kind: output, shape index: {3}]   ;;  %s1733_s11 = inlined_call_operand.vmem [shape: f32[2,24,1], index: 11, kind: output, shape index: {4}]   ;;  %s1734_s12 = inlined_call_operand.vmem [shape: f32[2,24,1], index: 12, kind: output, shape index: {5}]  }
   0x1 LB: > { %s1292_s22 = sadd.s32 4294967295, %s1397_s21   ;;  %p1296_p0 = scmp.ge.s32.totalorder %s1397_s21, 1  ;;  %s1397_s21 = sphi %s1474_s21, %s23_s21  }
   0x2   : > { %p373_p1 = scmp.lt.s32.totalorder %s1397_s21, 3 }
   0x4   : > { %p374_p2 = pnand %p1296_p0, %p373_p1 }
   0x5   : > { %p440_p3 = scmp.lt.s32.totalorder (!%p374_p2), %s1292_s22, 1  ;;  %v1399_v0 = vmov (!%p374_p2), 0   ;;  %s1400_s27 = smov (!%p374_p2), 17   ;;  %v502_v6 = vlaneseq (!%p374_p2)  ;;  %v1408_v7 = vmov (!%p374_p2), 1983009808   ;;  %vm1736_vm0 = vcmask (!%p374_p2), 1041408  }
   0x6   : > { %377 = sbr.rel (%p374_p2) target bundleno = 576 (0x240), region = 48  ;;  %821 = vmatprep.mubr.bf16.mxu0 (!%p374_p2), %v1399_v0  ;;  %872 = vmatprep.mubr.bf16.mxu1 (!%p374_p2), %v1399_v0  ;;  %s1401_s28 = smov (!%p374_p2), 15   ;;  %v771_v8 = vunpack.c.l.s4 (!%p374_p2), %v1408_v7  ;;  %v768_v15 = vld [vmem:[%s1725_s3] sm:$0xf] (!%p374_p2)  ;;  %vm1735_vm1 = vcmask (!%p374_p2), 31744   ;;  %vm487_vm14 = vcmask (!%p374_p2), 138240  }
   0x7   : > { %s1402_s29 = smov (!%p374_p2), 16   ;;  %s1403_s30 = smov (!%p374_p2), 1   ;;  %v503_v9 = vshrl.u32 (!%p374_p2), %v502_v6, 7  ;;  %v881_v16 = vld [vmem:[%s1727_s5] sm:$0x3] (!%p374_p2) }
   0x8   : > { %s1404_s13 = smov (!%p374_p2), 127   ;;  %s1405_s14 = smov (!%p374_p2), 113   ;;  %v772_v10 = vunpack.c.0.s8 (!%p374_p2), %v771_v8  ;;  %v1526_v17 = vld [vmem:[%s1723_s1] sm:$0x3] (!%p374_p2) }
   0x9   : > { %s1406_s15 = smov (!%p374_p2), 112   ;;  %s1407_s16 = smov (!%p374_p2), 111   ;;  %v1531_v18 = vld [vmem:[%s1724_s2] sm:$0x3] (!%p374_p2)  ;;  %v492_v19 = vadd.s32 (!%p374_p2), 4294967295, %v1526_v17  ;;  %v1550_v22 = vsub.s32 (!%p374_p2), 0, %v503_v9 }
   0xa   : > { %v775_v11 = vsub.s32 (!%p374_p2), %v772_v10, %v503_v9  ;;  %v1535_v20 = vadd.s32 (!%p374_p2), 4294967295, %v1531_v18  ;;  %vm530_vm9 = vcmp.ge.s32.totalorder (!%p374_p2), %v1531_v18, 0  ;;  %v1552_v23 = vsub.s32 (!%p374_p2), 1, %v503_v9 }
   0xb   : > { %vm493_vm2 = vcmp.ge.s32.totalorder (!%p374_p2), %v492_v19, 0  ;;  %vm494_vm3 = vcmp.lt.s32.totalorder (!%p374_p2), %v492_v19, 16  ;;  %vm532_vm11 = vcmp.lt.s32.totalorder (!%p374_p2), %v1531_v18, 16  ;;  %v1561_v25 = vadd.s32 (!%p374_p2), 1, %v1531_v18 }
   0xc   : > { %vm1537_vm4 = vmand (!%p374_p2), %vm493_vm2, %vm494_vm3  ;;  %vm497_vm5 = vcmp.ge.s32.totalorder (!%p374_p2), %v1535_v20, 0  ;;  %vm499_vm7 = vcmp.lt.s32.totalorder (!%p374_p2), %v1535_v20, 16  ;;  %v670_v57 = vadd.s32 (!%p374_p2), 1, %v1526_v17 }
   0xd   : > { %s1753_s22 = smov (!%p440_p3, %s1292_s22), 1  ;;  %vm498_vm6 = vmand %vm1537_vm4, %vm497_vm5  ;;  %vm566_vm13 = vcmp.ge.s32.totalorder %v1561_v25, 0  ;;  %vm568_vm15 = vcmp.lt.s32.totalorder %v1561_v25, 16 }
   0xe   : > { %s1487_s23 = sshll.u32 %s1753_s22, 2  ;;  %vm500_vm8 = vmand %vm498_vm6, %vm499_vm7  ;;  %s1332_s24 = smul.u32 24, %s1753_s22 }
   0xf   : > { %s444_s26 = scalar_lea.vmem %s1722_s0, %s1487_s23  ;;  %v501_v24 = vsel %vm500_vm8, 1, %v1399_v0  ;;  %vm531_vm10 = vmand %vm1537_vm4, %vm530_vm9  ;;  %vm601_vm8 = vcmp.ge.s32.totalorder %v1526_v17, 0  ;;  %s459_s20 = scalar_lea.vmem %s1731_s9, %s1487_s23 }
  0x10   : > { %v476_v1 = vld [vmem:[%s444_s26] sm:$0xf]  ;;  %v505_v26 = vrot.slane %v501_v24, %v1550_v22  ;;  %v509_v27 = vrot.slane %v501_v24, %v1552_v23  ;;  %vm533_vm12 = vmand %vm531_vm10, %vm532_vm11  ;;  %vm602_vm10 = vcmp.lt.s32.totalorder %v1526_v17, 16 }
  0x11   : > { %v1493_v2 = vunpack.c.l.bf16 %v476_v1  ;;  %v776_v12 = vrot.slane %v476_v1, %v775_v11  ;;  %v534_v29 = vsel %vm533_vm12, 1, %v1399_v0  ;;  %vm567_vm6 = vmand %vm1537_vm4, %vm566_vm13  ;;  %vm525_vm12 = vcmask 130048  }
  0x12   : > { %vm1570_vm2 = vcmp.eq.s32.totalorder %v505_v26, 1  ;;  %vm511_vm3 = vcmp.eq.s32.totalorder %v509_v27, 1  ;;  %v538_v37 = vrot.slane %v534_v29, %v1550_v22  ;;  %v542_v38 = vrot.slane %v534_v29, %v1552_v23  ;;  %vm569_vm4 = vmand %vm567_vm6, %vm568_vm15 }
  0x13   : > { %v1497_v3 = vcombine.high %v1493_v2, %v1493_v2  ;;  %v1503_v13 = vcombine.high %v776_v12, %v776_v12  ;;  %v1508_v14 = vsel %vm1736_vm0, %v776_v12, 0  ;;  %v570_v45 = vsel %vm569_vm4, 1, %v1399_v0 }
  0x14   : > { %v574_v50 = vrot.slane %v570_v45, %v1550_v22  ;;  %v578_v51 = vrot.slane %v570_v45, %v1552_v23 }
  0x15   : > { %v1351_v4 = vpack.i.bf16 %v1493_v2, %v1497_v3  ;;  %v1371_v5 = vpack.i.bf16 %v1497_v3, %v1493_v2  ;;  %1309 = vmatprep.subr.msk.bf16.mxu0 %vm1736_vm0, %v1503_v13 }
  0x16   : > { %790 = vmatpush1.bf16.msra.mxu0 %v1508_v14  ;;  %vm580_vm4 = vcmp.eq.s32.totalorder %v578_v51, 1 }
  0x17   : > { %1352 = vrot.lane.b32.xlu0 %v1351_v4, %s1400_s27  ;;  %1362 = vrot.lane.b32.xlu1 %v1351_v4, %s1401_s28  ;;  %s1688_s27 = scalar_lea.vmem %s1733_s11, %s1332_s24 }
  0x18   : > { %1313 = vmatprep.subr.msk.bf16.mxu0 %vm1736_vm0, %v1503_v13 }
  0x19   : > { %1310 = vmatmul.mubr.msk.bf16.vlgmr.msra.gmra.mrb[0].mxu0 %vm1735_vm1, %v768_v15 }
  0x1a   : > { %886 = vmatpush1.bf16.msra.mxu0 %v1508_v14  ;;  %917 = vmatprep.mubr.bf16.mxu0 %v1399_v0 }
  0x1b   : > { %1357 = vrot.lane.b32.xlu0 %v1351_v4, %s1402_s29  ;;  %1367 = vrot.lane.b32.xlu1 %v1351_v4, %s1403_s30 }
  0x1f   : > { %1372 = vrot.lane.b32.xlu0 %v1371_v5, %s1404_s13  ;;  %1377 = vrot.lane.b32.xlu1 %v1371_v5, %s1405_s14  ;;  %s1326_s14 = sshll.u32 %s1753_s22, 3 }
  0x20   : > { %s449_s17 = scalar_lea.vmem %s1729_s7, %s1326_s14  ;;  %s454_s30 = scalar_lea.vmem %s1730_s8, %s1326_s14 }
  0x21   : > { %1314 = vmatmul.mubr.msk.bf16.vlgmr.msra.gmra.mrb[4].mxu0 %vm1735_vm1, %v881_v16  ;;  %vm1588_vm1 = vmand %vm601_vm8, %vm602_vm10  ;;  %vm560_vm8 = vcmask 121856   ;;  %vm1604_vm10 = vcmp.eq.s32.totalorder %v574_v50, 1 }
  0x23   : > { %1382 = vrot.lane.b32.xlu0 %v1371_v5, %s1406_s15  ;;  %1387 = vrot.lane.b32.xlu1 %v1371_v5, %s1407_s16  ;;  %s464_s16 = scalar_lea.vmem %s1732_s10, %s1487_s23 }
  0x89   : > { %v1353_v28 = vpop.permute.xlu0 %1352  ;;  %v1363_v48 = vpop.permute.xlu1 %1362 }
  0x8a   : > { %v1355_v31 = vunpack.i.h.bf16 %v1353_v28  ;;  %v1354_v32 = vunpack.i.l.bf16 %v1353_v28  ;;  %v1365_v54 = vunpack.i.h.bf16 %v1363_v48  ;;  %v1364_v55 = vunpack.i.l.bf16 %v1363_v48 }
  0x8c   : > { %v488_v33 = vsel %vm487_vm14, %v1355_v31, %v1354_v32  ;;  %v491_v34 = vsel %vm487_vm14, %v1354_v32, %v1355_v31  ;;  %vm543_vm14 = vcmp.eq.s32.totalorder %v538_v37, 1  ;;  %v561_v61 = vsel %vm560_vm8, %v1365_v54, %v1364_v55 }
  0x8d   : > { %v513_v35 = vsel %vm1570_vm2, %v491_v34, %v1493_v2  ;;  %v514_v36 = vsel %vm511_vm3, %v488_v33, %v1497_v3  ;;  %v1358_v39 = vpop.permute.xlu0 %1357  ;;  %vm544_vm2 = vcmp.eq.s32.totalorder %v542_v38, 1  ;;  %vm604_vm3 = vmand %vm1588_vm1, %vm497_vm5  ;;  %v564_v62 = vsel %vm560_vm8, %v1364_v55, %v1365_v54  ;;  %v1368_v63 = vpop.permute.xlu1 %1367 }
  0x8e   : > { %v517_v40 = vcombine.low %v513_v35, %v514_v36  ;;  %v1360_v41 = vunpack.i.h.bf16 %v1358_v39  ;;  %v1359_v42 = vunpack.i.l.bf16 %v1358_v39  ;;  %vm605_vm6 = vmand %vm604_vm3, %vm499_vm7  ;;  %v1370_v6 = vunpack.i.h.bf16 %v1368_v63 }
  0x8f   : > { %v606_v59 = vsel %vm605_vm6, 1, %v1399_v0  ;;  %v1369_v7 = vunpack.i.l.bf16 %v1368_v63  ;;  %vm596_vm6 = vcmask 7168  }
  0x90   : > { %v519_v44 = vmax.f32 %v1493_v2, %v517_v40  ;;  %v526_v46 = vsel %vm525_vm12, %v1360_v41, %v1359_v42  ;;  %v529_v47 = vsel %vm525_vm12, %v1359_v42, %v1360_v41  ;;  %vm637_vm12 = vmand %vm1588_vm1, %vm566_vm13  ;;  %v610_v2 = vrot.slane %v606_v59, %v1550_v22 }
  0x91   : > { %v614_v3 = vrot.slane %v606_v59, %v1552_v23  ;;  %vm638_vm3 = vmand %vm637_vm12, %vm568_vm15  ;;  %v597_v12 = vsel %vm596_vm6, %v1370_v6, %v1369_v7  ;;  %v600_v15 = vsel %vm596_vm6, %v1369_v7, %v1370_v6  ;;  %v1373_v16 = vpop.permute.xlu0 %1372  ;;  %vm631_vm12 = vcmask 1039360   ;;  %v1378_v34 = vpop.permute.xlu1 %1377 }
  0x92   : > { %v546_v49 = vcombine.high %v519_v44, %v519_v44  ;;  %v548_v52 = vsel %vm543_vm14, %v529_v47, %v519_v44  ;;  %vm671_vm14 = vcmp.ge.s32.totalorder %v670_v57, 0  ;;  %v639_v11 = vsel %vm638_vm3, 1, %v1399_v0 }
  0x93   : > { %vm615_vm1 = vcmp.eq.s32.totalorder %v610_v2, 1  ;;  %vm616_vm0 = vcmp.eq.s32.totalorder %v614_v3, 1  ;;  %v643_v19 = vrot.slane %v639_v11, %v1550_v22  ;;  %v647_v21 = vrot.slane %v639_v11, %v1552_v23 }
  0x94   : > { %v549_v53 = vsel %vm544_vm2, %v526_v46, %v546_v49  ;;  %vm672_vm2 = vcmp.lt.s32.totalorder %v670_v57, 16  ;;  %v1375_v27 = vunpack.i.h.bf16 %v1373_v16  ;;  %v1374_v28 = vunpack.i.l.bf16 %v1373_v16  ;;  %v926_v16 = vld [vmem:[%s1728_s6] sm:$0x3] }
  0x95   : > { %v552_v56 = vcombine.low %v548_v52, %v549_v53  ;;  %vm1618_vm8 = vmand %vm671_vm14, %vm672_vm2  ;;  %vm648_vm14 = vcmp.eq.s32.totalorder %v643_v19, 1  ;;  %vm649_vm2 = vcmp.eq.s32.totalorder %v647_v21, 1  ;;  %v1380_v39 = vunpack.i.h.bf16 %v1378_v34  ;;  %v1383_v46 = vpop.permute.xlu0 %1382 }
  0x96   : > { %v632_v32 = vsel %vm631_vm12, %v1374_v28, %v1375_v27  ;;  %v636_v33 = vsel %vm631_vm12, %v1375_v27, %v1374_v28  ;;  %v1379_v40 = vunpack.i.l.bf16 %v1378_v34  ;;  %v1385_v51 = vunpack.i.h.bf16 %v1383_v46 }
  0x97   : > { %v554_v58 = vmax.f32 %v519_v44, %v552_v56  ;;  %v1384_v52 = vunpack.i.l.bf16 %v1383_v46 }
  0x99   : > { %v582_v1 = vcombine.high %v554_v58, %v554_v58  ;;  %v584_v4 = vsel %vm1604_vm10, %v564_v62, %v554_v58  ;;  %vm674_vm10 = vmand %vm1618_vm8, %vm497_vm5 }
  0x9b   : > { %v585_v5 = vsel %vm580_vm4, %v561_v61, %v582_v1  ;;  %vm675_vm4 = vmand %vm674_vm10, %vm499_vm7  ;;  %vm664_vm7 = vcmask 924672   ;;  %vm701_vm10 = vcmask 916480  }
  0x9c   : > { %v588_v8 = vcombine.low %v584_v4, %v585_v5  ;;  %v676_v31 = vsel %vm675_vm4, 1, %v1399_v0  ;;  %v665_v44 = vsel %vm664_vm7, %v1379_v40, %v1380_v39  ;;  %v669_v45 = vsel %vm664_vm7, %v1380_v39, %v1379_v40 }
  0x9d   : > { %v680_v36 = vrot.slane %v676_v31, %v1550_v22  ;;  %v684_v20 = vrot.slane %v676_v31, %v1552_v23  ;;  %v702_v56 = vsel %vm701_vm10, %v1384_v52, %v1385_v51  ;;  %v706_v57 = vsel %vm701_vm10, %v1385_v51, %v1384_v52 }
  0x9e   : > { %v590_v10 = vmax.f32 %v554_v58, %v588_v8  ;;  %v1388_v58 = vpop.permute.xlu1 %1387 }
  0x9f   : > { %vm685_vm3 = vcmp.eq.s32.totalorder %v680_v36, 1  ;;  %v1390_v1 = vunpack.i.h.bf16 %v1388_v58  ;;  %v1389_v25 = vunpack.i.l.bf16 %v1388_v58 }
  0xa0   : > { %v618_v17 = vcombine.high %v590_v10, %v590_v10  ;;  %v620_v24 = vsel %vm615_vm1, %v600_v15, %v590_v10  ;;  %vm686_vm1 = vcmp.eq.s32.totalorder %v684_v20, 1  ;;  %v830_v15 = vld [vmem:[%s1726_s4] sm:$0xf] }
  0xa2   : > { %v621_v26 = vsel %vm616_vm0, %v597_v12, %v618_v17  ;;  %vm707_vm0 = vmand %vm1618_vm8, %vm530_vm9 }
  0xa3   : > { %v624_v29 = vcombine.low %v620_v24, %v621_v26  ;;  %vm708_vm5 = vmand %vm707_vm0, %vm532_vm11 }
  0xa4   : > { %v709_v43 = vsel %vm708_vm5, 1, %v1399_v0  ;;  %vm740_vm9 = vmand %vm1618_vm8, %vm566_vm13  ;;  %vm734_vm13 = vcmask 908288   ;;  %vm1750_vm5 = vcmask 31744  }
  0xa5   : > { %v626_v30 = vmax.f32 %v590_v10, %v624_v29  ;;  %v713_v48 = vrot.slane %v709_v43, %v1550_v22  ;;  %v717_v18 = vrot.slane %v709_v43, %v1552_v23  ;;  %vm741_vm11 = vmand %vm740_vm9, %vm568_vm15  ;;  %v735_v4 = vsel %vm734_vm13, %v1389_v25, %v1390_v1 }
  0xa6   : > { %v742_v55 = vsel %vm741_vm11, 1, %v1399_v0  ;;  %v739_v5 = vsel %vm734_vm13, %v1390_v1, %v1389_v25  ;;  %vm1751_vm7 = vmmov %vm1750_vm5 }
  0xa7   : > { %v651_v35 = vcombine.high %v626_v30, %v626_v30  ;;  %v653_v37 = vsel %vm648_vm14, %v632_v32, %v626_v30  ;;  %vm718_vm4 = vcmp.eq.s32.totalorder %v713_v48, 1  ;;  %vm719_vm12 = vcmp.eq.s32.totalorder %v717_v18, 1 }
  0xa8   : > { %v746_v60 = vrot.slane %v742_v55, %v1550_v22  ;;  %v750_v61 = vrot.slane %v742_v55, %v1552_v23  ;;  %vm1747_vm14 = vcmask 1041408  }
  0xa9   : > { %v654_v38 = vsel %vm649_vm2, %v636_v33, %v651_v35  ;;  %vm1748_vm2 = vmmov %vm1747_vm14 }
  0xaa   : > { %v657_v41 = vcombine.low %v653_v37, %v654_v38  ;;  %vm751_vm15 = vcmp.eq.s32.totalorder %v746_v60, 1  ;;  %vm752_vm8 = vcmp.eq.s32.totalorder %v750_v61, 1  ;;  %vm1749_vm0 = vmmov %vm1748_vm2 }
  0xac   : > { %v659_v42 = vmax.f32 %v626_v30, %v657_v41 }
  0xae   : > { %v688_v47 = vcombine.high %v659_v42, %v659_v42  ;;  %v690_v49 = vsel %vm685_vm3, %v665_v44, %v659_v42  ;;  %vm1023_vm3 = vcmask 1043456  }
  0xb0   : > { %v691_v50 = vsel %vm686_vm1, %v669_v45, %v688_v47 }
  0xb1   : > { %v694_v53 = vcombine.low %v690_v49, %v691_v50 }
  0xb3   : > { %v696_v54 = vmax.f32 %v659_v42, %v694_v53 }
  0xb5   : > { %v721_v59 = vcombine.high %v696_v54, %v696_v54  ;;  %v723_v62 = vsel %vm718_vm4, %v702_v56, %v696_v54 }
  0xb7   : > { %v724_v63 = vsel %vm719_vm12, %v706_v57, %v721_v59 }
  0xb8   : > { %v727_v2 = vcombine.low %v723_v62, %v724_v63 }
  0xba   : > { %v729_v3 = vmax.f32 %v696_v54, %v727_v2 }
  0xbc   : > { %v754_v6 = vcombine.high %v729_v3, %v729_v3  ;;  %v756_v7 = vsel %vm751_vm15, %v735_v4, %v729_v3 }
  0xbe   : > { %v757_v8 = vsel %vm752_vm8, %v739_v5, %v754_v6 }
  0xbf   : > { %v760_v9 = vcombine.low %v756_v7, %v757_v8 }
  0xc1   : > { %v762_v10 = vmax.f32 %v729_v3, %v760_v9 }
  0xc3   : > { %v764_v22 = vcombine.high %v762_v10, %v762_v10  ;;  %v766_v23 = vpack.c.bf16 %v762_v10, %v762_v10 }
  0xc5   : > { %v767_v11 = vpack.c.bf16 %v764_v22, %v764_v22  ;;  %v835_v12 = vsel %vm1748_vm2, %v766_v23, 0 }
  0xc7   : > { %1311 = vmatprep.subr.msk.bf16.mxu1 %vm1747_vm14, %v767_v11 }
  0xc8   : > { %841 = vmatpush1.bf16.msra.mxu1 %v835_v12 }
  0xc9   : > { %1315 = vmatprep.subr.msk.bf16.mxu1 %vm1749_vm0, %v1503_v13 }
  0xcb   : > { %1312 = vmatmul.mubr.msk.bf16.vlgmr.msra.gmra.mrb[0].mxu1 %vm1750_vm5, %v830_v15 }
  0xcc   : > { %931 = vmatpush1.bf16.msra.mxu1 %v1508_v14  ;;  %962 = vmatprep.mubr.bf16.mxu1 %v1399_v0 }
  0xd3   : > { %1316 = vmatmul.mubr.msk.bf16.vlgmr.msra.gmra.mrb[4].mxu1 %vm1751_vm7, %v926_v16 }
  0xec   : > { %v823_v17 = vpop.f32.mrb[0].mxu0 }
  0xed   : > { %v825_v13 = vpop.f32.mrb[1].mxu0  ;;  %v1041_v26 = vmul.f32 %v823_v17, %v823_v17 }
  0xee   : > { %v1330_v19 = vpack.c.bf16 %v825_v13, %v823_v17  ;;  %v827_v21 = vpop.f32.mrb[2].mxu0  ;;  %v1017_v14 = vadd.f32 %v825_v13, %v823_v17  ;;  %v1042_v27 = vmul.f32 %v825_v13, %v825_v13 }
  0xef   : > { %v828_v24 = vpop.f32.mrb[3].mxu0 }
  0xf0   : > { %979 = vst [vmem:[%s449_s17] sm:$0xff] %v1330_v19  ;;  %1018 = vadd.xlane.f32.xlu1 %v1017_v14  ;;  %v1043_v35 = vadd.f32 %v1042_v27, %v1041_v26  ;;  %s474_s17 = scalar_lea.vmem %s1734_s12, %s1332_s24 }
  0xf4   : > { %v919_v0 = vpop.f32.mrb[4].mxu0 }
  0xf5   : > { %v1051_v28 = vmul.f32 %v919_v0, %v919_v0  ;;  %v921_v29 = vpop.f32.mrb[5].mxu0  ;;  %v1024_v30 = vsel %vm1023_vm3, %v919_v0, 0.0 }
  0xf6   : > { %v1319_v31 = vpack.c.bf16 %v921_v29, %v919_v0  ;;  %v1052_v32 = vmul.f32 %v921_v29, %v921_v29  ;;  %v1025_v33 = vsel %vm1023_vm3, %v921_v29, 0.0  ;;  %v923_v34 = vpop.f32.mrb[6].mxu0 }
  0xf7   : > { %v1026_v36 = vadd.f32 %v1025_v33, %v1024_v30  ;;  %v924_v20 = vpop.f32.mrb[7].mxu0  ;;  %v1053_v37 = vsel %vm1023_vm3, %v1051_v28, 0.0 }
  0xf8   : > { %1320 = vst.sshfl [vmem:[%s459_s20] sm:$0x33 pattern:$0x76325410] %v1319_v31  ;;  %v1054_v38 = vsel %vm1023_vm3, %v1052_v32, 0.0 }
  0xf9   : > { %1027 = vadd.xlane.f32.xlu0 %v1026_v36  ;;  %v1055_v39 = vadd.f32 %v1054_v38, %v1053_v37 }
  0xfd   : > { %1056 = vadd.xlane.f32.xlu0 %v1055_v39 }
 0x17d   : > { %v1019_v41 = vpop.xlane.xlu1 %1018 }
 0x17e   : > { %1038 = vst.msk [vmem:[%s1688_s27] sm:$0xff] %vm596_vm6, %v1019_v41 }
 0x186   : > { %v1028_v62 = vpop.xlane.xlu0 %1027 }
 0x18a   : > { %v1057_v63 = vpop.xlane.xlu0 %1056 }
 0x19e   : > { %v874_v40 = vpop.f32.mrb[0].mxu1 }
 0x19f   : > { %v876_v42 = vpop.f32.mrb[1].mxu1  ;;  %v1046_v43 = vmul.f32 %v874_v40, %v874_v40 }
 0x1a0   : > { %v1331_v44 = vpack.c.bf16 %v876_v42, %v874_v40  ;;  %v878_v45 = vpop.f32.mrb[2].mxu1  ;;  %v1020_v46 = vadd.f32 %v876_v42, %v874_v40  ;;  %v1047_v47 = vmul.f32 %v876_v42, %v876_v42 }
 0x1a1   : > { %v879_v48 = vpop.f32.mrb[3].mxu1 }
 0x1a2   : > { %988 = vst [vmem:[%s454_s30] sm:$0xff] %v1331_v44  ;;  %1021 = vadd.xlane.f32.xlu0 %v1020_v46  ;;  %v1048_v18 = vadd.f32 %v1047_v47, %v1046_v43 }
 0x1a6   : > { %v964_v49 = vpop.f32.mrb[4].mxu1 }
 0x1a7   : > { %v1058_v50 = vmul.f32 %v964_v49, %v964_v49  ;;  %v966_v51 = vpop.f32.mrb[5].mxu1  ;;  %v1029_v52 = vsel %vm1023_vm3, %v964_v49, 0.0 }
 0x1a8   : > { %v1321_v53 = vpack.c.bf16 %v966_v51, %v964_v49  ;;  %v1059_v54 = vmul.f32 %v966_v51, %v966_v51  ;;  %v968_v55 = vpop.f32.mrb[6].mxu1  ;;  %v1030_v56 = vsel %vm1023_vm3, %v966_v51, 0.0 }
 0x1a9   : > { %v969_v57 = vpop.f32.mrb[7].mxu1  ;;  %v1031_v58 = vadd.f32 %v1030_v56, %v1029_v52  ;;  %v1060_v59 = vsel %vm1023_vm3, %v1058_v50, 0.0 }
 0x1aa   : > { %1322 = vst.sshfl [vmem:[%s464_s16] sm:$0x33 pattern:$0x76325410] %v1321_v53  ;;  %v1061_v60 = vsel %vm1023_vm3, %v1059_v54, 0.0 }
 0x1ab   : > { %1032 = vadd.xlane.f32.xlu0 %v1031_v58  ;;  %v1062_v61 = vadd.f32 %v1061_v60, %v1060_v59 }
 0x1ad   : > { %1063 = vadd.xlane.f32.xlu1 %v1062_v61 }
 0x1af   : > { %1049 = vadd.xlane.f32.xlu0 %v1048_v18 }
 0x1b1   : > { %1044 = vadd.xlane.f32.xlu1 %v1043_v35 }
 0x22f   : > { %v1022_v1 = vpop.xlane.xlu0 %1021 }
 0x230   : > { %1039 = vst.msk [vmem:[%s1688_s27 + $0x8] sm:$0xff] %vm596_vm6, %v1022_v1 }
 0x238   : > { %v1033_v25 = vpop.xlane.xlu0 %1032 }
 0x239   : > { %v1035_v2 = vrot.slane %v1033_v25, 4 }
 0x23a   : > { %v1064_v3 = vpop.xlane.xlu1 %1063 }
 0x23b   : > { %v1037_v4 = vsel %vm1023_vm3, %v1028_v62, %v1035_v2  ;;  %v1066_v5 = vrot.slane %v1064_v3, 4 }
 0x23c   : > { %1040 = vst.msk [vmem:[%s1688_s27 + $0x10] sm:$0xff] %vm596_vm6, %v1037_v4  ;;  %v1050_v6 = vpop.xlane.xlu0 %1049 }
 0x23d   : > { %v1068_v7 = vsel %vm1023_vm3, %v1057_v63, %v1066_v5  ;;  %1070 = vst.msk [vmem:[%s474_s17 + $0x8] sm:$0xff] %vm596_vm6, %v1050_v6 }
 0x23e   : > { %1071 = vst.msk [vmem:[%s474_s17 + $0x10] sm:$0xff] %vm596_vm6, %v1068_v7  ;;  %v1045_v8 = vpop.xlane.xlu1 %1044 }
 0x23f   : > { %1069 = vst.msk [vmem:[%s474_s17] sm:$0xff] %vm596_vm6, %v1045_v8 }
 0x240 PF: > { %s23_s21 = sadd.s32 1, %s1397_s21  }
 0x241   : > { %p20_p4 = scmp.ge.s32.totalorder %s23_s21, 4  }
 0x243   :  { %22 = sbr.rel (!%p20_p4) target bundleno = 1 (0x1), region = 138 }

// kernel: se_inception_forward.7
= control target key start
LH: loop header
LB: loop body
LE: loop exit
PB: predicated region body
PF: predicated region fallthrough
CT: control target
= control target key end

     0   :  { %s1565_s27 = smov 0   ;;  %s2775_s0 = inlined_call_operand.vmem [shape: bf16[2,4,256], index: 0, kind: input, shape index: {}]   ;;  %s2776_s1 = inlined_call_operand.vmem [shape: s32[1,256], index: 1, kind: input, shape index: {}]   ;;  %s2777_s2 = inlined_call_operand.vmem [shape: s32[1,256], index: 2, kind: input, shape index: {}]   ;;  %s2778_s3 = inlined_call_operand.vmem [shape: bf16[8,100], index: 3, kind: input, shape index: {}]   ;;  %s2779_s4 = inlined_call_operand.vmem [shape: f32[4,1], index: 4, kind: input, shape index: {}]   ;;  %s2780_s5 = inlined_call_operand.vmem [shape: f32[4,1], index: 5, kind: input, shape index: {}]   ;;  %s2781_s6 = inlined_call_operand.vmem [shape: bf16[2,8,256], index: 6, kind: output, shape index: {0}]   ;;  %s2782_s7 = inlined_call_operand.vmem [shape: f32[2,8,1], index: 7, kind: output, shape index: {1}]   ;;  %s2783_s8 = inlined_call_operand.vmem [shape: f32[2,8,1], index: 8, kind: output, shape index: {2}]  }
   0x1 LB: > { %s1312_s28 = sadd.s32 4294967295, %s1492_s27   ;;  %p1316_p0 = scmp.ge.s32.totalorder %s1492_s27, 1  ;;  %s1492_s27 = sphi %s1565_s27, %s19_s27  }
   0x2   : > { %p267_p1 = scmp.lt.s32.totalorder %s1492_s27, 3 }
   0x4   : > { %p268_p2 = pnand %p1316_p0, %p267_p1 }
   0x5   : > { %v330_v0 = vld [vmem:[%s2779_s4] sm:$0xf] (!%p268_p2)  ;;  %v1494_v1 = vmov (!%p268_p2), 0   ;;  %p309_p3 = scmp.lt.s32.totalorder (!%p268_p2), %s1312_s28, 1  ;;  %v1495_v3 = vmov (!%p268_p2), 839922192   ;;  %v338_v5 = vlaneseq (!%p268_p2) }
   0x6   : > { %271 = sbr.rel (%p268_p2) target bundleno = 713 (0x2c9), region = 44  ;;  %1365 = vset.pattern.permute.xlu0 (!%p268_p2), %v1494_v1  ;;  %1167 = vmatprep.mubr.bf16.mxu0 (!%p268_p2), %v1494_v1  ;;  %v344_v2 = vld [vmem:[%s2780_s5] sm:$0xf] (!%p268_p2)  ;;  %v336_v4 = vunpack.c.l.s4 (!%p268_p2), %v1495_v3  ;;  %s1496_s19 = smov (!%p268_p2), 34   ;;  %v2795_v29 = vmov (!%p268_p2), 0  ;;  %v2797_v30 = vmov (!%p268_p2), 0 }
   0x7   : > { %333 = vperm.xlu0 (!%p268_p2), %1365, %v330_v0   ;;  %v339_v7 = vshrl.u32 (!%p268_p2), %v338_v5, 7  ;;  %v1596_v19 = vld [vmem:[%s2776_s1] sm:$0x3] (!%p268_p2)  ;;  %s1497_s20 = smov (!%p268_p2), 33   ;;  %s1498_s21 = smov (!%p268_p2), 18   ;;  %v2807_v43 = vmov (!%p268_p2), 0 }
   0x8   : > { %v337_v6 = vunpack.c.0.s8 (!%p268_p2), %v336_v4  ;;  %v1603_v21 = vld [vmem:[%s2777_s2] sm:$0x3] (!%p268_p2)  ;;  %vm645_vm0 = vcmp.ge.s32.totalorder (!%p268_p2), %v1596_v19, 0  ;;  %vm646_vm1 = vcmp.lt.s32.totalorder (!%p268_p2), %v1596_v19, 16  ;;  %s1499_s22 = smov (!%p268_p2), 31   ;;  %s1500_s23 = smov (!%p268_p2), 30  }
   0x9   : > { %vm2790_vm2 = vcmp.ge.s32.totalorder (!%p268_p2), %v1603_v21, 0  ;;  %vm1608_vm3 = vmand (!%p268_p2), %vm645_vm0, %vm646_vm1  ;;  %vm2785_vm4 = vcmp.lt.s32.totalorder (!%p268_p2), %v1603_v21, 16  ;;  %s1501_s24 = smov (!%p268_p2), 32   ;;  %v1619_v23 = vsub.s32 (!%p268_p2), 0, %v339_v7  ;;  %v1621_v24 = vsub.s32 (!%p268_p2), 1, %v339_v7  ;;  %s1502_s25 = smov (!%p268_p2), 14  }
   0xa   : > { %v340_v8 = vsub.s32 (!%p268_p2), %v337_v6, %v339_v7  ;;  %vm688_vm5 = vmand (!%p268_p2), %vm1608_vm3, %vm2790_vm2  ;;  %s1503_s26 = smov (!%p268_p2), 16   ;;  %s1504_s29 = smov (!%p268_p2), 15   ;;  %v373_v33 = vadd.s32 (!%p268_p2), 4294967294, %v1596_v19  ;;  %v516_v34 = vadd.s32 (!%p268_p2), 4294967295, %v1596_v19  ;;  %v1645_v35 = vadd.s32 (!%p268_p2), 4294967294, %v1603_v21 }
   0xb   : > { %347 = vperm.xlu0 (!%p268_p2), %1365, %v344_v2   ;;  %vm689_vm6 = vmand (!%p268_p2), %vm688_vm5, %vm2785_vm4  ;;  %s1505_s30 = smov (!%p268_p2), 17   ;;  %s1506_s9 = smov (!%p268_p2), 127   ;;  %v1648_v36 = vadd.s32 (!%p268_p2), 4294967295, %v1603_v21  ;;  %v1651_v37 = vadd.s32 (!%p268_p2), 1, %v1603_v21  ;;  %v1663_v40 = vadd.s32 (!%p268_p2), 2, %v1603_v21  ;;  %v764_v45 = vadd.s32 (!%p268_p2), 1, %v1596_v19 }
   0xc   : > { %v690_v25 = vsel (!%p268_p2), %vm689_vm6, 1, %v1494_v1  ;;  %s1507_s10 = smov (!%p268_p2), 1   ;;  %s1509_s12 = smov (!%p268_p2), 2   ;;  %vm374_vm9 = vcmp.ge.s32.totalorder (!%p268_p2), %v373_v33, 0  ;;  %vm375_vm10 = vcmp.lt.s32.totalorder (!%p268_p2), %v373_v33, 16  ;;  %vm517_vm11 = vcmp.ge.s32.totalorder (!%p268_p2), %v516_v34, 0 }
   0xd   : > { %s3138_s28 = smov (!%p309_p3, %s1312_s28), 1  ;;  %v698_v26 = vrot.slane %v690_v25, %v1621_v24  ;;  %v694_v27 = vrot.slane %v690_v25, %v1619_v23  ;;  %s1510_s13 = smov 110   ;;  %vm518_vm12 = vcmp.lt.s32.totalorder %v516_v34, 16  ;;  %vm2784_vm13 = vcmp.ge.s32.totalorder %v1645_v35, 0  ;;  %vm1654_vm14 = vmand %vm374_vm9, %vm375_vm10 }
   0xe   : > { %s1328_s11 = sshll.u32 %s3138_s28, 2  ;;  %s1512_s15 = smov 111   ;;  %vm1658_vm15 = vmand %vm517_vm11, %vm518_vm12  ;;  %vm2787_vm0 = vcmp.ge.s32.totalorder %v1648_v36, 0  ;;  %vm2786_vm5 = vcmp.ge.s32.totalorder %v1651_v37, 0  ;;  %vm2791_vm10 = vcmp.ge.s32.totalorder %v1663_v40, 0  ;;  %v2811_v46 = vmov 0 }
   0xf   : > { %s313_s14 = scalar_lea.vmem %s2775_s0, %s1328_s11  ;;  %vm1628_vm7 = vcmp.eq.s32.totalorder %v698_v26, 1  ;;  %vm1632_vm8 = vcmp.eq.s32.totalorder %v694_v27, 1  ;;  %s1508_s11 = smov 126   ;;  %vm1670_vm1 = vmand %vm1654_vm14, %vm2784_vm13  ;;  %v2813_v47 = vmov 0  ;;  %v2816_v48 = vmov 0 }
  0x10   : > { %v328_v9 = vld [vmem:[%s313_s14] sm:$0xf]  ;;  %v2796_v29 = vsel %vm1628_vm7, 4294967295, %v2795_v29  ;;  %v2798_v30 = vsel %vm1632_vm8, 4294967295, %v2797_v30  ;;  %s1511_s14 = smov 114   ;;  %s1513_s16 = smov 112   ;;  %vm520_vm6 = vmand %vm1658_vm15, %vm2784_vm13 }
  0x11   : > { %v329_v11 = vunpack.c.l.bf16 %v328_v9  ;;  %s1514_s17 = smov 95   ;;  %s1515_s18 = smov 113   ;;  %vm1683_vm9 = vmand %vm1654_vm14, %vm2787_vm0  ;;  %vm2815_vm8 = vcmp.ge.s32.totalorder %v1648_v36, 0  ;;  %vm765_vm4 = vcmp.ge.s32.totalorder %v764_v45, 0  ;;  %v893_v49 = vadd.s32 2, %v1596_v19 }
  0x12   : > { %vm1692_vm11 = vmand %vm1654_vm14, %vm2786_vm5  ;;  %v2819_v50 = vmov 0  ;;  %v2822_v51 = vmov 0  ;;  %v2825_v52 = vmov 0  ;;  %v2827_v53 = vmov 0 }
  0x13   : > { %v2808_v43 = vsel %vm1692_vm11, 4294967295, %v2807_v43  ;;  %vm1700_vm12 = vmand %vm1658_vm15, %vm2791_vm10  ;;  %vm766_vm11 = vcmp.lt.s32.totalorder %v764_v45, 16  ;;  %v2831_v54 = vmov 0  ;;  %v2836_v56 = vmov 0 }
  0x14   : > { %vm1709_vm13 = vmand %vm1654_vm14, %vm2790_vm2  ;;  %v2841_v57 = vmov 0  ;;  %v2845_v58 = vmov 0  ;;  %v2849_v59 = vmov 0  ;;  %v2853_v60 = vmov 0 }
  0x15   : > { %v2812_v46 = vsel %vm1709_vm13, 4294967295, %v2811_v46  ;;  %vm570_vm5 = vmand %vm1658_vm15, %vm2790_vm2  ;;  %vm2818_vm2 = vcmp.lt.s32.totalorder %v1645_v35, 16  ;;  %v2857_v61 = vmov 0  ;;  %v2863_v63 = vmov 0 }
  0x16   : > { %vm1722_vm0 = vmand %vm1654_vm14, %vm2791_vm10  ;;  %vm2792_vm14 = vcmp.lt.s32.totalorder %v1663_v40, 16 }
  0x17   : > { %v2814_v47 = vsel %vm1722_vm0, 4294967295, %v2813_v47  ;;  %vm1730_vm7 = vmand %vm1658_vm15, %vm2815_vm8  ;;  %vm2824_vm0 = vcmp.ge.s32.totalorder %v1651_v37, 0 }
  0x18   : > { %v2817_v48 = vsel %vm1730_vm7, 4294967295, %v2816_v48  ;;  %vm1737_vm13 = vmand %vm520_vm6, %vm2818_vm2 }
  0x19   : > { %v2820_v50 = vsel %vm1737_vm13, 4294967295, %v2819_v50  ;;  %vm2821_vm10 = vmmov %vm2818_vm2 }
  0x1a   : > { %vm1746_vm8 = vmand %vm1670_vm1, %vm2821_vm10  ;;  %vm895_vm1 = vcmp.lt.s32.totalorder %v893_v49, 16 }
  0x1b   : > { %v2823_v51 = vsel %vm1746_vm8, 4294967295, %v2822_v51  ;;  %vm1755_vm2 = vmand %vm1658_vm15, %vm2824_vm0  ;;  %vm2830_vm15 = vcmp.lt.s32.totalorder %v1603_v21, 16 }
  0x1c   : > { %v2826_v52 = vsel %vm1755_vm2, 4294967295, %v2825_v52  ;;  %vm1763_vm6 = vmand %vm1700_vm12, %vm2792_vm14  ;;  %vm2835_vm12 = vcmp.lt.s32.totalorder %v1648_v36, 16 }
  0x1d   : > { %v2828_v53 = vsel %vm1763_vm6, 4294967295, %v2827_v53  ;;  %vm2829_vm10 = vmmov %vm2824_vm0 }
  0x1e   : > { %vm714_vm7 = vmand %vm1608_vm3, %vm2829_vm10  ;;  %vm2838_vm10 = vcmp.ge.s32.totalorder %v1648_v36, 0 }
  0x1f   : > { %vm1774_vm0 = vmand %vm570_vm5, %vm2830_vm15  ;;  %vm894_vm15 = vcmp.ge.s32.totalorder %v893_v49, 0 }
  0x20   : > { %v2832_v54 = vsel %vm1774_vm0, 4294967295, %v2831_v54  ;;  %vm1778_vm8 = vmand %vm765_vm4, %vm766_vm11  ;;  %vm2839_vm4 = vcmp.lt.s32.totalorder %v1603_v21, 16  ;;  %vm2840_vm11 = vnez %v2812_v46 }
  0x21   : > { %vm1786_vm14 = vmand %vm1683_vm9, %vm2835_vm12  ;;  %vm2843_vm9 = vcmp.lt.s32.totalorder %v1651_v37, 16  ;;  %vm2844_vm12 = vnez %v2808_v43 }
  0x22   : > { %v2837_v56 = vsel %vm1786_vm14, 4294967295, %v2836_v56  ;;  %vm673_vm5 = vmand %vm1608_vm3, %vm2838_vm10  ;;  %vm2847_vm10 = vcmp.ge.s32.totalorder %v1645_v35, 0 }
  0x23   : > { %vm1798_vm0 = vmand %vm2840_vm11, %vm2839_vm4  ;;  %vm2851_vm4 = vcmp.ge.s32.totalorder %v1663_v40, 0 }
  0x24   : > { %v2842_v57 = vsel %vm1798_vm0, 4294967295, %v2841_v57  ;;  %vm1806_vm14 = vmand %vm2844_vm12, %vm2843_vm9 }
  0x25   : > { %v2846_v58 = vsel %vm1806_vm14, 4294967295, %v2845_v58  ;;  %vm648_vm6 = vmand %vm1608_vm3, %vm2847_vm10  ;;  %vm2855_vm14 = vcmp.lt.s32.totalorder %v1663_v40, 16  ;;  %vm2856_vm10 = vnez %v2814_v47 }
  0x26   : > { %vm2848_vm13 = vmmov %vm2843_vm9  ;;  %vm2852_vm9 = vcmp.lt.s32.totalorder %v1648_v36, 16 }
  0x27   : > { %vm1816_vm2 = vmand %vm714_vm7, %vm2848_vm13 }
  0x28   : > { %v2850_v59 = vsel %vm1816_vm2, 4294967295, %v2849_v59  ;;  %vm868_vm11 = vmand %vm1778_vm8, %vm2851_vm4  ;;  %vm2862_vm4 = vnez %v2817_v48 }
  0x29   : > { %vm1826_vm12 = vmand %vm673_vm5, %vm2852_vm9 }
  0x2a   : > { %v2854_v60 = vsel %vm1826_vm12, 4294967295, %v2853_v60  ;;  %vm1834_vm0 = vmand %vm2856_vm10, %vm2855_vm14  ;;  %vm2866_vm10 = vcmp.ge.s32.totalorder %v1603_v21, 0 }
  0x2b   : > { %v2858_v61 = vsel %vm1834_vm0, 4294967295, %v2857_v61  ;;  %vm1838_vm7 = vmand %vm894_vm15, %vm895_vm1  ;;  %vm2867_vm15 = vcmp.lt.s32.totalorder %v1651_v37, 16  ;;  %vm2868_vm0 = vnez %v2826_v52 }
  0x2c   : > { %vm2861_vm13 = vmmov %vm2852_vm9  ;;  %vm2865_vm9 = vcmp.ge.s32.totalorder %v1645_v35, 0 }
  0x2d   : > { %vm1846_vm5 = vmand %vm2862_vm4, %vm2861_vm13  ;;  %vm2871_vm13 = vcmp.lt.s32.totalorder %v1645_v35, 16 }
  0x2e   : > { %v2864_v63 = vsel %vm1846_vm5, 4294967295, %v2863_v63  ;;  %vm768_vm14 = vmand %vm1778_vm8, %vm2865_vm9  ;;  %vm2874_vm9 = vcmp.ge.s32.totalorder %v1651_v37, 0 }
  0x2f   : > { %vm818_vm1 = vmand %vm1778_vm8, %vm2866_vm10  ;;  %vm2875_vm10 = vcmp.lt.s32.totalorder %v1663_v40, 16 }
  0x30   : > { %vm1862_vm12 = vmand %vm2868_vm0, %vm2867_vm15 }
  0x31   : > { %vm1868_vm4 = vmand %vm648_vm6, %vm2871_vm13  ;;  %vm2881_vm6 = vcmp.ge.s32.totalorder %v1663_v40, 0  ;;  %v2034_v52 = vsel %vm1862_vm12, 1, %v1494_v1  ;;  %vm2920_vm12 = vcmp.ge.s32.totalorder %v1663_v40, 0 }
  0x32   : > { %vm972_vm5 = vmand %vm1838_vm7, %vm2874_vm9  ;;  %vm2882_vm9 = vnez %v2820_v50  ;;  %v605_v4 = vrot.slane %v2034_v52, %v1621_v24  ;;  %v601_v7 = vrot.slane %v2034_v52, %v1619_v23 }
  0x33   : > { %vm1878_vm2 = vmand %vm868_vm11, %vm2875_vm10  ;;  %v1895_v5 = vsel %vm2882_vm9, 1, %v1494_v1  ;;  %vm2883_vm11 = vnez %v2823_v51  ;;  %vm2891_vm9 = vnez %v2832_v54 }
  0x34   : > { %vm2878_vm0 = vmmov %vm2871_vm13  ;;  %v1900_v6 = vsel %vm2883_vm11, 1, %v1494_v1  ;;  %v530_v19 = vrot.slane %v1895_v5, %v1621_v24 }
  0x35   : > { %vm1884_vm15 = vmand %vm768_vm14, %vm2878_vm0  ;;  %vm2884_vm14 = vcmp.lt.s32.totalorder %v1603_v21, 16  ;;  %vm2887_vm0 = vnez %v2828_v53 }
  0x36   : > { %vm739_vm13 = vmand %vm1608_vm3, %vm2881_vm6  ;;  %vm2888_vm3 = vcmp.lt.s32.totalorder %v1651_v37, 16  ;;  %v2085_v0 = vsel %vm1884_vm15, 1, %v1494_v1 }
  0x37   : > { %vm1904_vm10 = vmand %vm818_vm1, %vm2884_vm14  ;;  %vm2892_vm1 = vcmp.lt.s32.totalorder %v1663_v40, 16  ;;  %vm2896_vm14 = vcmp.ge.s32.totalorder %v1648_v36, 0 }
  0x38   : > { %vm1915_vm6 = vmand %vm972_vm5, %vm2888_vm3  ;;  %vm2895_vm5 = vnez %v2837_v56  ;;  %vm2900_vm3 = vnez %v2846_v58  ;;  %v2100_v3 = vsel %vm1904_vm10, 1, %v1494_v1  ;;  %v2965_v58 = vmov 0 }
  0x39   : > { %vm1926_vm11 = vmand %vm739_vm13, %vm2892_vm1  ;;  %v1959_v25 = vsel %vm2900_vm3, 1, %v1494_v1  ;;  %vm2908_vm3 = vnez %v2854_v60  ;;  %v2125_v38 = vsel %vm1915_vm6, 1, %v1494_v1  ;;  %vm2938_vm6 = vcmp.lt.s32.totalorder %v1645_v35, 16 }
  0x3a   : > { %vm1943_vm13 = vmand %vm1838_vm7, %vm2896_vm14  ;;  %v1993_v42 = vsel %vm2908_vm3, 1, %v1494_v1  ;;  %v473_v46 = vrot.slane %v1959_v25, %v1621_v24  ;;  %v469_v50 = vrot.slane %v1959_v25, %v1619_v23  ;;  %v2130_v62 = vsel %vm1926_vm11, 1, %v1494_v1 }
  0x3b   : > { %v679_v55 = vrot.slane %v1993_v42, %v1619_v23  ;;  %v683_v60 = vrot.slane %v1993_v42, %v1621_v24 }
  0x86   : > { %v334_v10 = vpop.permute.xlu0 %333 }
  0x87   : > { %v341_v12 = vrot.slane %v334_v10, %v340_v8  ;;  %v1922_v10 = vsel %vm2891_vm9, 1, %v1494_v1  ;;  %vm2901_vm9 = vmmov %vm2896_vm14  ;;  %vm2905_vm14 = vcmp.ge.s32.totalorder %v1651_v37, 0 }
  0x88   : > { %vm1965_vm1 = vmand %vm1778_vm8, %vm2901_vm9  ;;  %v580_v33 = vrot.slane %v1922_v10, %v1621_v24  ;;  %vm2909_vm9 = vnez %v2858_v61 }
  0x89   : > { %v343_v14 = vmul.f32 %v341_v12, %v329_v11  ;;  %v526_v12 = vrot.slane %v1895_v5, %v1619_v23  ;;  %v1998_v43 = vsel %vm2909_vm9, 1, %v1494_v1 }
  0x8a   : > { %v348_v13 = vpop.permute.xlu0 %347  ;;  %v501_v56 = vrot.slane %v1998_v43, %v1621_v24 }
  0x8b   : > { %v355_v15 = vrot.slane %v348_v13, %v340_v8  ;;  %v1911_v8 = vsel %vm2887_vm0, 1, %v1494_v1  ;;  %v390_v13 = vrot.slane %v1900_v6, %v1621_v24  ;;  %vm2899_vm0 = vnez %v2842_v57 }
  0x8c   : > { %v1954_v22 = vsel %vm2899_vm0, 1, %v1494_v1  ;;  %v630_v27 = vrot.slane %v1911_v8, %v1621_v24  ;;  %vm1984_vm0 = vmand %vm1778_vm8, %vm2905_vm14  ;;  %vm2913_vm14 = vnez %v2864_v63  ;;  %v2080_v63 = vsel %vm1878_vm2, 1, %v1494_v1 }
  0x8d   : > { %v357_v16 = vadd.f32 %v355_v15, %v343_v14  ;;  %v410_v14 = vsel %vm2895_vm5, 1, %v1494_v1  ;;  %v386_v15 = vrot.slane %v1900_v6, %v1619_v23  ;;  %vm2904_vm5 = vnez %v2850_v59 }
  0x8e   : > { %v1978_v34 = vsel %vm2904_vm5, 1, %v1494_v1  ;;  %v418_v39 = vrot.slane %v410_v14, %v1621_v24  ;;  %v414_v41 = vrot.slane %v410_v14, %v1619_v23  ;;  %vm2910_vm5 = vcmp.lt.s32.totalorder %v1648_v36, 16 }
  0x8f   : > { %v1587_v17 = vmax.f32 %v357_v16, 0.0  ;;  %vm2004_vm8 = vmand %vm1943_vm13, %vm2910_vm5  ;;  %v445_v45 = vrot.slane %v1954_v22, %v1621_v24  ;;  %v441_v47 = vrot.slane %v1954_v22, %v1619_v23  ;;  %v2017_v48 = vsel %vm2913_vm14, 1, %v1494_v1 }
  0x90   : > { %vm2914_vm3 = vmmov %vm2910_vm5  ;;  %v720_v51 = vrot.slane %v1978_v34, %v1619_v23  ;;  %v2039_v36 = vsel %vm1868_vm4, 1, %v1494_v1  ;;  %vm400_vm5 = vcmask 269312   ;;  %v724_v54 = vrot.slane %v1978_v34, %v1621_v24 }
  0x91   : > { %v1591_v18 = vcombine.high %v1587_v17, %v1587_v17  ;;  %vm2023_vm13 = vmand %vm1965_vm1, %vm2914_vm3  ;;  %vm2917_vm1 = vcmp.lt.s32.totalorder %v1651_v37, 16  ;;  %v497_v37 = vrot.slane %v1998_v43, %v1619_v23  ;;  %vm2069_vm3 = vcmp.eq.s32.totalorder %v414_v41, 1 }
  0x92   : > { %vm2045_vm9 = vmand %vm1984_vm0, %vm2917_vm1  ;;  %vm2065_vm0 = vcmp.eq.s32.totalorder %v418_v39, 1  ;;  %v555_v61 = vrot.slane %v2017_v48, %v1621_v24  ;;  %vm2927_vm1 = vcmp.ge.s32.totalorder %v1645_v35, 0  ;;  %v551_v5 = vrot.slane %v2017_v48, %v1619_v23 }
  0x93   : > { %v1376_v20 = vpack.i.bf16 %v1587_v17, %v1591_v18  ;;  %v1426_v28 = vpack.i.bf16 %v1591_v18, %v1587_v17  ;;  %vm2061_vm4 = vmand %vm1838_vm7, %vm2920_vm12  ;;  %vm2930_vm2 = vcmp.ge.s32.totalorder %v1603_v21, 0  ;;  %vm2167_vm14 = vcmp.eq.s32.totalorder %v473_v46, 1 }
  0x94   : > { %vm2091_vm12 = vmand %vm1838_vm7, %vm2927_vm1  ;;  %vm2114_vm1 = vcmp.eq.s32.totalorder %v390_v13, 1  ;;  %v2963_v14 = vmov 0  ;;  %v2967_v59 = vmov 0 }
  0x95   : > { %1377 = vrot.lane.b32.xlu0 %v1376_v20, %s1496_s19  ;;  %1367 = vrot.lane.b32.xlu1 %v1376_v20, %s1497_s20  ;;  %s1516_s19 = smov 96   ;;  %s1517_s20 = smov 97   ;;  %vm2110_vm15 = vmand %vm1838_vm7, %vm2930_vm2  ;;  %vm2935_vm7 = vcmp.lt.s32.totalorder %v1663_v40, 16  ;;  %v2149_v40 = vsel %vm2004_vm8, 1, %v1494_v1  ;;  %vm2947_vm8 = vcmp.lt.s32.totalorder %v1603_v21, 16  ;;  %vm2193_vm2 = vcmp.eq.s32.totalorder %v386_v15, 1 }
  0x96   : > { %vm2136_vm10 = vmand %vm2061_vm4, %vm2935_vm7  ;;  %vm2159_vm4 = vcmp.eq.s32.totalorder %v526_v12, 1  ;;  %vm2163_vm7 = vcmp.eq.s32.totalorder %v530_v19, 1  ;;  %v2180_v19 = vsel %vm2023_vm13, 1, %v1494_v1  ;;  %vm2205_vm13 = vcmp.eq.s32.totalorder %v469_v50, 1 }
  0x97   : > { %vm2155_vm11 = vmand %vm2091_vm12, %vm2938_vm6  ;;  %v2214_v15 = vsel %vm2045_vm9, 1, %v1494_v1  ;;  %v2219_v21 = vsel %vm2136_vm10, 1, %v1494_v1  ;;  %vm2954_vm10 = vcmask 277504   ;;  %vm2972_vm6 = vcmask 146432  }
  0x98   : > { %vm2186_vm12 = vmand %vm2110_vm15, %vm2947_vm8  ;;  %v2224_v50 = vsel %vm2155_vm11, 1, %v1494_v1  ;;  %vm2251_vm11 = vcmp.eq.s32.totalorder %v445_v45, 1  ;;  %vm2258_vm8 = vcmp.eq.s32.totalorder %v441_v47, 1  ;;  %vm2971_vm15 = vcmask 277504  }
  0x99   : > { %1387 = vrot.lane.b32.xlu0 %v1376_v20, %s1498_s21  ;;  %1372 = vrot.lane.b32.xlu1 %v1376_v20, %s1499_s22  ;;  %s1518_s21 = smov 98   ;;  %s1519_s22 = smov 94   ;;  %v2235_v13 = vsel %vm2186_vm12, 1, %v1494_v1  ;;  %vm2272_vm12 = vcmp.eq.s32.totalorder %v497_v37, 1 }
  0x9a   : > { %v957_v43 = vrot.slane %v2235_v13, %v1621_v24 }
  0x9d   : > { %1397 = vrot.lane.b32.xlu0 %v1376_v20, %s1500_s23  ;;  %1382 = vrot.lane.b32.xlu1 %v1376_v20, %s1501_s24 }
  0xa1   : > { %1407 = vrot.lane.b32.xlu0 %v1376_v20, %s1502_s25  ;;  %1392 = vrot.lane.b32.xlu1 %v1376_v20, %s1503_s26  ;;  %s1329_s25 = sshll.u32 %s3138_s28, 3 }
  0xa2   : > { %s322_s28 = scalar_lea.vmem %s2782_s7, %s1329_s25 }
  0xa5   : > { %1417 = vrot.lane.b32.xlu0 %v1376_v20, %s1504_s29  ;;  %1402 = vrot.lane.b32.xlu1 %v1376_v20, %s1505_s30  ;;  %s318_s30 = scalar_lea.vmem %s2781_s6, %s1329_s25 }
  0xa9   : > { %1427 = vrot.lane.b32.xlu0 %v1426_v28, %s1506_s9  ;;  %1412 = vrot.lane.b32.xlu1 %v1376_v20, %s1507_s10 }
  0xad   : > { %1437 = vrot.lane.b32.xlu0 %v1426_v28, %s1508_s11  ;;  %1422 = vrot.lane.b32.xlu1 %v1376_v20, %s1509_s12  ;;  %v626_v20 = vrot.slane %v1911_v8, %v1619_v23 }
  0xaf   : > { %vm2289_vm9 = vcmp.eq.s32.totalorder %v626_v20, 1 }
  0xb0   : > { %v2964_v14 = vsel %vm2289_vm9, 4294967295, %v2963_v14 }
  0xb1   : > { %1447 = vrot.lane.b32.xlu0 %v1426_v28, %s1510_s13  ;;  %1432 = vrot.lane.b32.xlu1 %v1426_v28, %s1511_s14  ;;  %s326_s13 = scalar_lea.vmem %s2783_s8, %s1329_s25 }
  0xb5   : > { %1457 = vrot.lane.b32.xlu0 %v1426_v28, %s1512_s15  ;;  %1442 = vrot.lane.b32.xlu1 %v1426_v28, %s1513_s16 }
  0xb9   : > { %1467 = vrot.lane.b32.xlu0 %v1426_v28, %s1514_s17  ;;  %1452 = vrot.lane.b32.xlu1 %v1426_v28, %s1515_s18 }
  0xbd   : > { %1477 = vrot.lane.b32.xlu0 %v1426_v28, %s1516_s19  ;;  %1462 = vrot.lane.b32.xlu1 %v1426_v28, %s1517_s20 }
  0xc1   : > { %1472 = vrot.lane.b32.xlu1 %v1426_v28, %s1518_s21 }
  0xc5   : > { %1482 = vrot.lane.b32.xlu1 %v1426_v28, %s1519_s22  ;;  %v576_v28 = vrot.slane %v1922_v10, %v1619_v23 }
 0x107   : > { %v1378_v49 = vpop.permute.xlu0 %1377  ;;  %v1368_v12 = vpop.permute.xlu1 %1367 }
 0x108   : > { %v1380_v41 = vunpack.i.h.bf16 %v1378_v49  ;;  %v1379_v35 = vunpack.i.l.bf16 %v1378_v49  ;;  %v1370_v11 = vunpack.i.h.bf16 %v1368_v12  ;;  %v1369_v39 = vunpack.i.l.bf16 %v1368_v12 }
 0x10a   : > { %v401_v1 = vsel %vm400_vm5, %v1370_v11, %v1369_v39  ;;  %v404_v46 = vsel %vm400_vm5, %v1369_v39, %v1370_v11  ;;  %v369_v49 = vsel %vm2954_vm10, %v1380_v41, %v1379_v35  ;;  %vm2265_vm5 = vcmp.eq.s32.totalorder %v501_v56, 1 }
 0x10b   : > { %v1388_v47 = vpop.permute.xlu0 %1387  ;;  %v1373_v11 = vpop.permute.xlu1 %1372  ;;  %v422_v56 = vsel %vm2065_vm0, %v401_v1, 0.0  ;;  %v421_v16 = vsel %vm2069_vm3, %v404_v46, 0.0  ;;  %vm2296_vm0 = vcmp.eq.s32.totalorder %v630_v27, 1  ;;  %vm2303_vm3 = vcmp.eq.s32.totalorder %v576_v28, 1 }
 0x10c   : > { %v1390_v6 = vunpack.i.h.bf16 %v1388_v47  ;;  %v1389_v9 = vunpack.i.l.bf16 %v1388_v47  ;;  %v1375_v26 = vunpack.i.h.bf16 %v1373_v11  ;;  %v1374_v22 = vunpack.i.l.bf16 %v1373_v11 }
 0x10d   : > { %v2966_v58 = vsel %vm2296_vm0, 4294967295, %v2965_v58  ;;  %v2968_v59 = vsel %vm2303_vm3, 4294967295, %v2967_v59  ;;  %vm2310_vm10 = vcmp.eq.s32.totalorder %v580_v33, 1  ;;  %v394_v8 = vsel %vm2114_vm1, %v369_v49, 0.0  ;;  %vm2973_vm0 = vmmov %vm2972_vm6 }
 0x10e   : > { %v1015_v27 = vrot.slane %v422_v56, 4  ;;  %v372_v1 = vsel %vm2971_vm15, %v1379_v35, %v1380_v41  ;;  %v512_v28 = vsel %vm2972_vm6, %v1390_v6, %v1389_v9  ;;  %v515_v47 = vsel %vm2973_vm0, %v1389_v9, %v1390_v6 }
 0x10f   : > { %vm2974_vm3 = vcmask 252928   ;;  %v533_v33 = vsel %vm2159_vm4, %v515_v47, 0.0  ;;  %v534_v25 = vsel %vm2163_vm7, %v512_v28, 0.0  ;;  %v1398_v49 = vpop.permute.xlu0 %1397  ;;  %v1383_v56 = vpop.permute.xlu1 %1382  ;;  %v1014_v41 = vrot.slane %v421_v16, 4 }
 0x110   : > { %v456_v11 = vsel %vm2974_vm3, %v1375_v26, %v1374_v22  ;;  %vm2975_vm9 = vmmov %vm2974_vm3  ;;  %v1400_v37 = vunpack.i.h.bf16 %v1398_v49  ;;  %v1399_v46 = vunpack.i.l.bf16 %v1398_v49  ;;  %vm2976_vm15 = vcmask 1043456  }
 0x111   : > { %v459_v10 = vsel %vm2975_vm9, %v1374_v22, %v1375_v26  ;;  %v477_v35 = vsel %vm2167_vm14, %v456_v11, 0.0  ;;  %v2330_v9 = vsel %vm2976_vm15, %v394_v8, %v1015_v27  ;;  %v393_v26 = vsel %vm2193_vm2, %v372_v1, 0.0  ;;  %vm2985_vm0 = vmmov %vm2976_vm15 }
 0x112   : > { %v1026_v57 = vrot.slane %v533_v33, 4  ;;  %v1385_v6 = vunpack.i.h.bf16 %v1383_v56  ;;  %v1384_v32 = vunpack.i.l.bf16 %v1383_v56  ;;  %v476_v22 = vsel %vm2205_vm13, %v459_v10, 0.0 }
 0x113   : > { %v1027_v28 = vrot.slane %v534_v25, 4  ;;  %vm2977_vm4 = vcmask 244736   ;;  %v1021_v47 = vrot.slane %v477_v35, 4  ;;  %vm2341_vm7 = vcmp.eq.s32.totalorder %v555_v61, 1  ;;  %v1408_v2 = vpop.permute.xlu0 %1407  ;;  %v1393_v27 = vpop.permute.xlu1 %1392 }
 0x114   : > { %v484_v44 = vsel %vm2977_vm4, %v1400_v37, %v1399_v46  ;;  %vm2978_vm14 = vmmov %vm2977_vm4  ;;  %vm2348_vm2 = vcmp.eq.s32.totalorder %v551_v5, 1  ;;  %vm2983_vm13 = vcmask 261120   ;;  %v2355_v11 = vsel %vm2985_vm0, %v393_v26, %v1014_v41 }
 0x115   : > { %v487_v16 = vsel %vm2978_vm14, %v1399_v46, %v1400_v37  ;;  %v429_v1 = vsel %vm2983_vm13, %v1385_v6, %v1384_v32  ;;  %vm2984_vm9 = vmmov %vm2983_vm13  ;;  %v1020_v46 = vrot.slane %v476_v22, 4  ;;  %v1410_v61 = vunpack.i.h.bf16 %v1408_v2 }
 0x116   : > { %v432_v37 = vsel %vm2984_vm9, %v1384_v32, %v1385_v6  ;;  %v1409_v10 = vunpack.i.l.bf16 %v1408_v2  ;;  %v1395_v33 = vunpack.i.h.bf16 %v1393_v27  ;;  %v1394_v25 = vunpack.i.l.bf16 %v1393_v27 }
 0x117   : > { %vm2360_vm15 = vcmp.eq.s32.totalorder %v720_v51, 1  ;;  %vm2367_vm4 = vcmp.eq.s32.totalorder %v724_v54, 1  ;;  %v449_v49 = vsel %vm2251_vm11, %v429_v1, 0.0  ;;  %v448_v56 = vsel %vm2258_vm8, %v432_v37, 0.0  ;;  %v1418_v26 = vpop.permute.xlu0 %1417  ;;  %v1403_v6 = vpop.permute.xlu1 %1402 }
 0x118   : > { %vm2378_vm13 = vcmp.eq.s32.totalorder %v679_v55, 1  ;;  %vm2385_vm9 = vcmp.eq.s32.totalorder %v683_v60, 1  ;;  %v505_v54 = vsel %vm2265_vm5, %v484_v44, 0.0  ;;  %v504_v53 = vsel %vm2272_vm12, %v487_v16, 0.0 }
 0x119   : > { %vm2994_vm11 = vcmask 113664   ;;  %vm2996_vm0 = vcmask 130048   ;;  %vm2998_vm3 = vnez %v2964_v14  ;;  %vm2999_vm6 = vnez %v2966_v58 }
 0x11a   : > { %v616_v12 = vsel %vm2994_vm11, %v1410_v61, %v1409_v10  ;;  %vm2995_vm8 = vmmov %vm2994_vm11  ;;  %v566_v35 = vsel %vm2996_vm0, %v1395_v33, %v1394_v25  ;;  %vm3000_vm1 = vnez %v2968_v59  ;;  %vm3001_vm12 = vcmask 1043456  }
 0x11b   : > { %v619_v55 = vsel %vm2995_vm8, %v1409_v10, %v1410_v61  ;;  %vm2997_vm14 = vmmov %vm2996_vm0  ;;  %v634_v60 = vsel %vm2999_vm6, %v616_v12, 0.0  ;;  %v584_v45 = vsel %vm2310_vm10, %v566_v35, 0.0  ;;  %v2410_v44 = vsel %vm3001_vm12, %v505_v54, %v1027_v28 }
 0x11c   : > { %v569_v41 = vsel %vm2997_vm14, %v1394_v25, %v1395_v33  ;;  %v633_v42 = vsel %vm2998_vm3, %v619_v55, 0.0  ;;  %v2407_v22 = vrot.slane %v634_v60, 4  ;;  %vm3002_vm3 = vmmov %vm3001_vm12  ;;  %vm2425_vm10 = vcmp.eq.s32.totalorder %v601_v7, 1  ;;  %v1413_v25 = vpop.permute.xlu1 %1412 }
 0x11d   : > { %v583_v39 = vsel %vm3000_vm1, %v569_v41, 0.0  ;;  %v2405_v32 = vrot.slane %v633_v42, 4  ;;  %v2413_v14 = vsel %vm3002_vm3, %v504_v53, %v1026_v57  ;;  %vm2418_vm1 = vcmp.eq.s32.totalorder %v605_v4, 1  ;;  %vm3007_vm14 = vmmov %vm3002_vm3 }
 0x11e   : > { %v1420_v20 = vunpack.i.h.bf16 %v1418_v26  ;;  %v1419_v28 = vunpack.i.l.bf16 %v1418_v26  ;;  %v1405_v16 = vunpack.i.h.bf16 %v1403_v6  ;;  %v1404_v2 = vunpack.i.l.bf16 %v1403_v6  ;;  %vm3008_vm11 = vmmov %vm3002_vm3 }
 0x11f   : > { %v1032_v57 = vrot.slane %v583_v39, 4  ;;  %v1033_v27 = vrot.slane %v584_v45, 4  ;;  %v1064_v1 = vsel %vm3007_vm14, %v449_v49, %v1021_v47  ;;  %v1063_v4 = vsel %vm3008_vm11, %v448_v56, %v1020_v46  ;;  %v1428_v47 = vpop.permute.xlu0 %1427 }
 0x120   : > { %v3009_v37 = vrot.slane %v2039_v36, %v1621_v24  ;;  %vm3012_vm0 = vcmask 121856   ;;  %vm3014_vm3 = vcmask 138240   ;;  %v3016_v46 = vrot.slane %v2039_v36, %v1619_v23 }
 0x121   : > { %v2439_v7 = vsel %vm3012_vm0, %v1420_v20, %v1419_v28  ;;  %vm3013_vm12 = vmmov %vm3012_vm0  ;;  %v541_v10 = vsel %vm3014_vm3, %v1405_v16, %v1404_v2  ;;  %v1110_v56 = vpack.c.bf16 %v1064_v1, %v2330_v9  ;;  %v1109_v54 = vpack.c.bf16 %v1063_v4, %v2355_v11  ;;  %v1423_v4 = vpop.permute.xlu1 %1422 }
 0x122   : > { %vm2434_vm8 = vcmp.eq.s32.totalorder %v3009_v37, 1  ;;  %v2442_v61 = vsel %vm3013_vm12, %v1419_v28, %v1420_v20  ;;  %vm3015_vm6 = vmmov %vm3014_vm3  ;;  %vm2449_vm11 = vcmp.eq.s32.totalorder %v3016_v46, 1  ;;  %v1430_v53 = vunpack.i.h.bf16 %v1428_v47 }
 0x123   : > { %v544_v33 = vsel %vm3015_vm6, %v1404_v2, %v1405_v16  ;;  %v1429_v12 = vunpack.i.l.bf16 %v1428_v47  ;;  %v3019_v55 = vrot.slane %v2080_v63, %v1619_v23  ;;  %v3022_v36 = vrot.slane %v2080_v63, %v1621_v24  ;;  %1135 = vmatprep.subr.bf16.mxu0 %v1110_v56  ;;  %v1438_v1 = vpop.permute.xlu0 %1437 }
 0x124   : > { %v3023_v41 = vmov 0  ;;  %v1415_v9 = vunpack.i.h.bf16 %v1413_v25  ;;  %v1414_v42 = vunpack.i.l.bf16 %v1413_v25  ;;  %v559_v11 = vsel %vm2341_vm7, %v541_v10, 0.0  ;;  %1136 = vmatpush1.bf16.msra.mxu0 %v1109_v54 }
 0x125   : > { %vm2458_vm6 = vcmp.eq.s32.totalorder %v3019_v55, 1  ;;  %vm2465_vm0 = vcmp.eq.s32.totalorder %v3022_v36, 1  ;;  %v558_v60 = vsel %vm2348_vm2, %v544_v33, 0.0  ;;  %v3025_v39 = vrot.slane %v2085_v0, %v1619_v23 }
 0x126   : > { %v3024_v41 = vsel %vm2465_vm0, 4294967295, %v3023_v41  ;;  %v3026_v45 = vmov 0  ;;  %v3028_v63 = vrot.slane %v2085_v0, %v1621_v24  ;;  %vm3031_vm12 = vcmask 1039360  }
 0x127   : > { %vm2476_vm3 = vcmp.eq.s32.totalorder %v3025_v39, 1  ;;  %v709_v8 = vsel %vm3031_vm12, %v1429_v12, %v1430_v53  ;;  %vm3032_vm7 = vmmov %vm3031_vm12  ;;  %vm3033_vm2 = vcmask 1043456   ;;  %v3037_v5 = vrot.slane %v2130_v62, %v1621_v24 }
 0x128   : > { %v3027_v45 = vsel %vm2476_vm3, 4294967295, %v3026_v45  ;;  %vm2483_vm14 = vcmp.eq.s32.totalorder %v3028_v63, 1  ;;  %v713_v31 = vsel %vm3032_vm7, %v1430_v53, %v1429_v12  ;;  %v1068_v6 = vsel %vm3033_vm2, %v559_v11, %v1033_v27  ;;  %vm3034_vm5 = vmmov %vm3033_vm2 }
 0x129   : > { %v1067_v20 = vsel %vm3034_vm5, %v558_v60, %v1032_v57  ;;  %v727_v28 = vsel %vm2360_vm15, %v709_v8, 0.0  ;;  %v728_v0 = vsel %vm2367_vm4, %v713_v31, 0.0  ;;  %vm3035_vm3 = vcmask 7168  }
 0x12a   : > { %v669_v16 = vsel %vm3035_vm3, %v1415_v9, %v1414_v42  ;;  %vm3036_vm0 = vmmov %vm3035_vm3  ;;  %v2497_v37 = vrot.slane %v727_v28, 4  ;;  %v2499_v10 = vrot.slane %v728_v0, 4  ;;  %vm2508_vm4 = vcmp.eq.s32.totalorder %v3037_v5, 1 }
 0x12b   : > { %v672_v2 = vsel %vm3036_vm0, %v1414_v42, %v1415_v9  ;;  %v687_v48 = vsel %vm2385_vm9, %v669_v16, 0.0  ;;  %v1440_v25 = vunpack.i.h.bf16 %v1438_v1  ;;  %v1439_v46 = vunpack.i.l.bf16 %v1438_v1  ;;  %v1433_v42 = vpop.permute.xlu1 %1432 }
 0x12c   : > { %v686_v57 = vsel %vm2378_vm13, %v672_v2, 0.0  ;;  %v1045_v47 = vrot.slane %v687_v48, 4  ;;  %v1425_v56 = vunpack.i.h.bf16 %v1423_v4  ;;  %v1424_v54 = vunpack.i.l.bf16 %v1423_v4 }
 0x12d   : > { %v1044_v33 = vrot.slane %v686_v57, 4  ;;  %v1112_v51 = vpack.c.bf16 %v1068_v6, %v2410_v44  ;;  %v1111_v34 = vpack.c.bf16 %v1067_v20, %v2413_v14  ;;  %v3040_v53 = vrot.slane %v2100_v3, %v1619_v23  ;;  %v1448_v14 = vpop.permute.xlu0 %1447 }
 0x12e   : > { %v3043_v55 = vrot.slane %v2100_v3, %v1621_v24  ;;  %vm3046_vm0 = vcmask 1031168   ;;  %v609_v11 = vsel %vm2418_vm1, %v2439_v7, 0.0  ;;  %v608_v3 = vsel %vm2425_vm10, %v2442_v61, 0.0  ;;  %vm3053_vm1 = vmmov %vm3033_vm2 }
 0x12f   : > { %vm2517_vm13 = vcmp.eq.s32.totalorder %v3040_v53, 1  ;;  %v2529_v9 = vsel %vm3046_vm0, %v1439_v46, %v1440_v25  ;;  %vm3047_vm12 = vmmov %vm3046_vm0  ;;  %vm3048_vm3 = vcmask 15360   ;;  %1137 = vmatprep.subr.bf16.mxu0 %v1112_v51  ;;  %v1450_v63 = vunpack.i.h.bf16 %v1448_v14  ;;  %v1443_v5 = vpop.permute.xlu1 %1442 }
 0x130   : > { %vm2524_vm9 = vcmp.eq.s32.totalorder %v3043_v55, 1  ;;  %v2532_v44 = vsel %vm3047_vm12, %v1440_v25, %v1439_v46  ;;  %v641_v60 = vsel %vm3048_vm3, %v1425_v56, %v1424_v54  ;;  %vm3049_vm7 = vmmov %vm3048_vm3  ;;  %v1449_v8 = vunpack.i.l.bf16 %v1448_v14  ;;  %1138 = vmatpush1.bf16.msra.mxu0 %v1111_v34 }
 0x131   : > { %v644_v39 = vsel %vm3049_vm7, %v1424_v54, %v1425_v56  ;;  %v3050_v31 = vrot.slane %v2130_v62, %v1619_v23  ;;  %v1435_v58 = vunpack.i.h.bf16 %v1433_v42  ;;  %v1434_v7 = vunpack.i.l.bf16 %v1433_v42  ;;  %v1458_v48 = vpop.permute.xlu0 %1457 }
 0x132   : > { %v662_v59 = vsel %vm2434_vm8, %v641_v60, 0.0  ;;  %v1070_v61 = vsel %vm3053_vm1, %v609_v11, %v2407_v22  ;;  %v3054_v20 = vrot.slane %v2125_v38, %v1619_v23  ;;  %v3057_v62 = vrot.slane %v2125_v38, %v1621_v24 }
 0x133   : > { %vm2545_vm0 = vcmp.eq.s32.totalorder %v3050_v31, 1  ;;  %vm3060_vm7 = vcmask 900096   ;;  %v1072_v22 = vsel %vm3053_vm1, %v662_v59, %v1045_v47  ;;  %v661_v2 = vsel %vm2449_vm11, %v644_v39, 0.0 }
 0x134   : > { %vm2556_vm10 = vcmp.eq.s32.totalorder %v3054_v20, 1  ;;  %vm2563_vm12 = vcmp.eq.s32.totalorder %v3057_v62, 1  ;;  %v863_v52 = vsel %vm3060_vm7, %v1449_v8, %v1450_v63  ;;  %vm3061_vm8 = vmmov %vm3060_vm7  ;;  %vm3062_vm2 = vnez %v3024_v41 }
 0x135   : > { %v867_v16 = vsel %vm3061_vm8, %v1450_v63, %v1449_v8  ;;  %v881_v1 = vsel %vm2458_vm6, %v863_v52, 0.0  ;;  %vm3063_vm5 = vcmask 932864   ;;  %vm3065_vm7 = vnez %v3027_v45  ;;  %v1468_v63 = vpop.permute.xlu0 %1467  ;;  %v1453_v8 = vpop.permute.xlu1 %1452 }
 0x136   : > { %v882_v38 = vsel %vm3062_vm2, %v867_v16, 0.0  ;;  %v759_v4 = vsel %vm3063_vm5, %v1434_v7, %v1435_v58  ;;  %vm3064_vm15 = vmmov %vm3063_vm5  ;;  %v2578_v25 = vrot.slane %v881_v1, 4  ;;  %v3066_v41 = vrot.slane %v2180_v19, %v1621_v24 }
 0x137   : > { %v763_v57 = vsel %vm3064_vm15, %v1435_v58, %v1434_v7  ;;  %v2580_v46 = vrot.slane %v882_v38, 4  ;;  %v781_v49 = vsel %vm3065_vm7, %v759_v4, 0.0  ;;  %v3069_v56 = vrot.slane %v2214_v15, %v1621_v24 }
 0x138   : > { %v782_v35 = vsel %vm2483_vm14, %v763_v57, 0.0  ;;  %vm2589_vm11 = vcmp.eq.s32.totalorder %v3066_v41, 1  ;;  %v1056_v51 = vrot.slane %v781_v49, 4  ;;  %v1460_v34 = vunpack.i.h.bf16 %v1458_v48  ;;  %vm3072_vm14 = vmmov %vm3053_vm1 }
 0x139   : > { %vm2596_vm6 = vcmp.eq.s32.totalorder %v3069_v56, 1  ;;  %v1057_v45 = vrot.slane %v782_v35, 4  ;;  %v1459_v53 = vunpack.i.l.bf16 %v1458_v48  ;;  %v1445_v26 = vunpack.i.h.bf16 %v1443_v5  ;;  %v1478_v49 = vpop.permute.xlu0 %1477  ;;  %v1463_v35 = vpop.permute.xlu1 %1462 }
 0x13a   : > { %v1444_v55 = vunpack.i.l.bf16 %v1443_v5  ;;  %v1114_v14 = vpack.c.bf16 %v1072_v22, %v1070_v61  ;;  %v1069_v42 = vsel %vm3072_vm14, %v608_v3, %v2405_v32  ;;  %vm3073_vm2 = vcmask 908288  }
 0x13b   : > { %v2603_v11 = vsel %vm3073_vm2, %v1459_v53, %v1460_v34  ;;  %vm3074_vm8 = vmmov %vm3073_vm2  ;;  %v1071_v39 = vsel %vm3053_vm1, %v661_v2, %v1044_v33  ;;  %v753_v31 = vsel %vm2508_vm4, %v2532_v44, 0.0  ;;  %v3075_v58 = vrot.slane %v2149_v40, %v1619_v23 }
 0x13c   : > { %v2606_v60 = vsel %vm3074_vm8, %v1460_v34, %v1459_v53  ;;  %v3078_v3 = vrot.slane %v2149_v40, %v1621_v24  ;;  %vm3081_vm8 = vcmask 916480   ;;  %1139 = vmatprep.subr.bf16.mxu0 %v1114_v14  ;;  %v1113_v44 = vpack.c.bf16 %v1071_v39, %v1069_v42 }
 0x13d   : > { %vm2615_vm7 = vcmp.eq.s32.totalorder %v3075_v58, 1  ;;  %v813_v33 = vsel %vm3081_vm8, %v1444_v55, %v1445_v26  ;;  %vm3082_vm1 = vmmov %vm3081_vm8  ;;  %v1470_v59 = vunpack.i.h.bf16 %v1468_v63  ;;  %v3083_v61 = vrot.slane %v2180_v19, %v1619_v23 }
 0x13e   : > { %vm2622_vm14 = vcmp.eq.s32.totalorder %v3078_v3, 1  ;;  %v817_v27 = vsel %vm3082_vm1, %v1445_v26, %v1444_v55  ;;  %v831_v40 = vsel %vm2517_vm13, %v813_v33, 0.0  ;;  %v1469_v52 = vunpack.i.l.bf16 %v1468_v63  ;;  %1140 = vmatpush1.bf16.msra.mxu0 %v1113_v44 }
 0x13f   : > { %vm2631_vm4 = vcmp.eq.s32.totalorder %v3083_v61, 1  ;;  %v832_v62 = vsel %vm2524_vm9, %v817_v27, 0.0  ;;  %v1455_v16 = vunpack.i.h.bf16 %v1453_v8  ;;  %v3086_v22 = vrot.slane %v2214_v15, %v1619_v23 }
 0x140   : > { %v1079_v19 = vrot.slane %v831_v40, 4  ;;  %v1080_v1 = vrot.slane %v832_v62, 4  ;;  %v1454_v38 = vunpack.i.l.bf16 %v1453_v8  ;;  %vm3089_vm1 = vnez %v2796_v29 }
 0x141   : > { %vm2642_vm8 = vcmp.eq.s32.totalorder %v3086_v22, 1  ;;  %v3090_v12 = vsel %vm3089_vm1, %v1591_v18, 0.0  ;;  %vm3091_vm13 = vcmask 1043456   ;;  %v3092_v4 = vrot.slane %v2224_v50, %v1621_v24 }
 0x142   : > { %v1074_v36 = vsel %vm3091_vm13, %v3090_v12, %v2499_v10  ;;  %vm2662_vm2 = vcmp.eq.s32.totalorder %v957_v43, 1  ;;  %v3097_v29 = vrot.slane %v2224_v50, %v1619_v23  ;;  %v3098_v18 = vmov 0 }
 0x143   : > { %vm2655_vm9 = vcmp.eq.s32.totalorder %v3092_v4, 1  ;;  %vm3100_vm13 = vcmask 777216   ;;  %vm3102_vm15 = vcmask 1043456   ;;  %v752_v43 = vsel %vm2545_vm0, %v2529_v9, 0.0 }
 0x144   : > { %vm2669_vm1 = vcmp.eq.s32.totalorder %v3097_v29, 1  ;;  %v967_v10 = vsel %vm3100_vm13, %v1469_v52, %v1470_v59  ;;  %vm3101_vm5 = vmmov %vm3100_vm13  ;;  %v1076_v5 = vsel %vm3102_vm15, %v753_v31, %v1057_v45  ;;  %v3105_v45 = vrot.slane %v2219_v21, %v1621_v24 }
 0x145   : > { %v3099_v18 = vsel %vm2669_vm1, 4294967295, %v3098_v18  ;;  %v971_v48 = vsel %vm3101_vm5, %v1470_v59, %v1469_v52  ;;  %v985_v50 = vsel %vm2556_vm10, %v967_v10, 0.0  ;;  %vm3103_vm1 = vcmask 924672  }
 0x146   : > { %v986_v41 = vsel %vm2563_vm12, %v971_v48, 0.0  ;;  %v788_v56 = vsel %vm3103_vm1, %v1454_v38, %v1455_v16  ;;  %vm3104_vm13 = vmmov %vm3103_vm1  ;;  %vm2688_vm15 = vcmp.eq.s32.totalorder %v3105_v45, 1  ;;  %v3108_v9 = vrot.slane %v2235_v13, %v1619_v23 }
 0x147   : > { %v792_v34 = vsel %vm3104_vm13, %v1455_v16, %v1454_v38  ;;  %v1097_v28 = vrot.slane %v985_v50, 4  ;;  %v1098_v0 = vrot.slane %v986_v41, 4  ;;  %v1116_v26 = vpack.c.bf16 %v1076_v5, %v1074_v36  ;;  %v1123_v50 = vld [vmem:[%s2778_s3] sm:$0xf] }
 0x148   : > { %vm2695_vm0 = vcmp.eq.s32.totalorder %v3108_v9, 1  ;;  %vm3111_vm10 = vnez %v2798_v30  ;;  %vm3113_vm12 = vcmask 1043456   ;;  %v1480_v42 = vunpack.i.h.bf16 %v1478_v49  ;;  %v1473_v30 = vpop.permute.xlu1 %1472 }
 0x149   : > { %v3112_v55 = vsel %vm3111_vm10, %v1587_v17, 0.0  ;;  %vm3114_vm5 = vmmov %vm3113_vm12  ;;  %v1479_v39 = vunpack.i.l.bf16 %v1478_v49  ;;  %v1465_v63 = vunpack.i.h.bf16 %v1463_v35  ;;  %v3115_v13 = vrot.slane %v2219_v21, %v1619_v23  ;;  %1141 = vmatprep.subr.bf16.mxu0 %v1116_v26 }
 0x14a   : > { %v1073_v24 = vsel %vm3113_vm12, %v3112_v55, %v2497_v37  ;;  %v1075_v14 = vsel %vm3114_vm5, %v752_v43, %v1056_v51  ;;  %v3116_v8 = vmov 0  ;;  %v1464_v58 = vunpack.i.l.bf16 %v1463_v35 }
 0x14b   : > { %vm2709_vm1 = vcmp.eq.s32.totalorder %v3115_v13, 1  ;;  %v1115_v31 = vpack.c.bf16 %v1075_v14, %v1073_v24  ;;  %v807_v17 = vsel %vm2589_vm11, %v792_v34, 0.0  ;;  %v857_v37 = vsel %vm2596_vm6, %v2606_v60, 0.0 }
 0x14c   : > { %v3117_v8 = vsel %vm2709_vm1, 4294967295, %v3116_v8  ;;  %vm3118_vm13 = vcmask 785408   ;;  %v1475_v23 = vunpack.i.h.bf16 %v1473_v30  ;;  %v1474_v21 = vunpack.i.l.bf16 %v1473_v30  ;;  %v1483_v22 = vpop.permute.xlu1 %1482 }
 0x14d   : > { %v942_v51 = vsel %vm3118_vm13, %v1479_v39, %v1480_v42  ;;  %vm3119_vm10 = vmmov %vm3118_vm13  ;;  %1142 = vmatpush1.bf16.msra.mxu0 %v1115_v31  ;;  %vm3120_vm12 = vcmask 793600   ;;  %vm3122_vm3 = vcmask 1043456   ;;  %vm3124_vm11 = vcmask 801792  }
 0x14e   : > { %v946_v3 = vsel %vm3119_vm10, %v1480_v42, %v1479_v39  ;;  %v917_v33 = vsel %vm3120_vm12, %v1464_v58, %v1465_v63  ;;  %vm3121_vm5 = vmmov %vm3120_vm12  ;;  %v1102_v44 = vsel %vm3122_vm3, %v807_v17, %v1080_v1  ;;  %v888_v59 = vsel %vm3124_vm11, %v1474_v21, %v1475_v23 }
 0x14f   : > { %v921_v27 = vsel %vm3121_vm5, %v1465_v63, %v1464_v58  ;;  %vm3123_vm1 = vmmov %vm3122_vm3  ;;  %v935_v54 = vsel %vm2615_vm7, %v917_v33, 0.0  ;;  %v806_v16 = vsel %vm2631_vm4, %v788_v56, 0.0  ;;  %v1485_v1 = vunpack.i.h.bf16 %v1483_v22 }
 0x150   : > { %v1104_v47 = vsel %vm3123_vm1, %v857_v37, %v2580_v46  ;;  %v936_v60 = vsel %vm2622_vm14, %v921_v27, 0.0  ;;  %vm3125_vm6 = vmmov %vm3124_vm11  ;;  %v1091_v40 = vrot.slane %v935_v54, 4  ;;  %v856_v46 = vsel %vm2642_vm8, %v2603_v11, 0.0 }
 0x151   : > { %v892_v61 = vsel %vm3125_vm6, %v1475_v23, %v1474_v21  ;;  %v1092_v62 = vrot.slane %v936_v60, 4  ;;  %v1118_v52 = vpack.c.bf16 %v1104_v47, %v1102_v44  ;;  %vm3126_vm3 = vmmov %vm3123_vm1  ;;  %v1484_v7 = vunpack.i.l.bf16 %v1483_v22 }
 0x152   : > { %v1101_v32 = vsel %vm3126_vm3, %v806_v16, %v1079_v19  ;;  %vm3127_vm7 = vmmov %vm3123_vm1  ;;  %v911_v12 = vsel %vm2655_vm9, %v892_v61, 0.0  ;;  %v961_v20 = vsel %vm2662_vm2, %v946_v3, 0.0  ;;  %vm3128_vm14 = vnez %v3099_v18 }
 0x153   : > { %1143 = vmatprep.subr.bf16.mxu0 %v1118_v52  ;;  %v1103_v38 = vsel %vm3127_vm7, %v856_v46, %v2578_v25  ;;  %v910_v36 = vsel %vm3128_vm14, %v888_v59, 0.0  ;;  %vm3129_vm4 = vcmask 769024   ;;  %vm3130_vm8 = vmmov %vm3123_vm1  ;;  %v1108_v19 = vsel %vm3123_vm1, %v961_v20, %v1098_v0 }
 0x154   : > { %v1117_v4 = vpack.c.bf16 %v1103_v38, %v1101_v32  ;;  %v996_v11 = vsel %vm3129_vm4, %v1485_v1, %v1484_v7  ;;  %v1106_v2 = vsel %vm3130_vm8, %v911_v12, %v1092_v62  ;;  %v960_v15 = vsel %vm2695_vm0, %v942_v51, 0.0  ;;  %vm3131_vm9 = vmmov %vm3123_vm1 }
 0x155   : > { %v1011_v29 = vsel %vm2688_vm15, %v996_v11, 0.0  ;;  %v1120_v25 = vpack.c.bf16 %v1108_v19, %v1106_v2  ;;  %v1105_v57 = vsel %vm3131_vm9, %v910_v36, %v1091_v40  ;;  %vm3132_vm2 = vmmov %vm3123_vm1  ;;  %vm3134_vm10 = vnez %v3117_v8 }
 0x156   : > { %1144 = vmatpush1.bf16.msra.mxu0 %v1117_v4  ;;  %v1107_v18 = vsel %vm3132_vm2, %v960_v15, %v1097_v28  ;;  %vm3133_vm13 = vmmov %vm3129_vm4  ;;  %v1122_v5 = vpack.c.bf16 %v1011_v29, %v1011_v29  ;;  %vm1128_vm12 = vcmask 1041408   ;;  %vm1124_vm15 = vcmask 818176  }
 0x157   : > { %v992_v10 = vsel %vm3133_vm13, %v1484_v7, %v1485_v1  ;;  %1145 = vmatprep.subr.bf16.mxu0 %v1120_v25  ;;  %v1119_v48 = vpack.c.bf16 %v1107_v18, %v1105_v57  ;;  %vm3135_vm0 = vcmask 7168  }
 0x158   : > { %v1010_v43 = vsel %vm3134_vm10, %v992_v10, 0.0  ;;  %vm3136_vm5 = vmmov %vm3135_vm0 }
 0x159   : > { %v1121_v49 = vpack.c.bf16 %v1010_v43, %v1010_v43 }
 0x15a   : > { %1146 = vmatpush1.bf16.msra.mxu0 %v1119_v48 }
 0x15b   : > { %1323 = vmatprep.subr.msk.bf16.mxu0 %vm1128_vm12, %v1122_v5  ;;  %v1130_v35 = vsel %vm1128_vm12, %v1121_v49, 0 }
 0x15e   : > { %1148 = vmatpush1.bf16.msra.mxu0 %v1130_v35 }
 0x161   : > { %1324 = vmatmul.mubr.msk.bf16.vlgmr.msra.gmra.mrb[0].mxu0 %vm1124_vm15, %v1123_v50 }
 0x234   : > { %v1169_v41 = vpop.f32.mrb[0].mxu0 }
 0x235   : > { %v1171_v56 = vpop.f32.mrb[1].mxu0  ;;  %v1189_v34 = vmul.f32 %v1169_v41, %v1169_v41 }
 0x236   : > { %v1330_v45 = vpack.c.bf16 %v1171_v56, %v1169_v41  ;;  %v1173_v53 = vpop.f32.mrb[2].mxu0  ;;  %v1185_v9 = vadd.f32 %v1171_v56, %v1169_v41  ;;  %v1190_v6 = vmul.f32 %v1171_v56, %v1171_v56 }
 0x237   : > { %v1174_v28 = vpop.f32.mrb[3].mxu0 }
 0x238   : > { %1184 = vst [vmem:[%s318_s30] sm:$0xff] %v1330_v45  ;;  %1186 = vadd.xlane.f32.xlu0 %v1185_v9  ;;  %v1191_v0 = vadd.f32 %v1190_v6, %v1189_v34 }
 0x23a   : > { %1192 = vadd.xlane.f32.xlu1 %v1191_v0 }
 0x2c5   : > { %v1187_v26 = vpop.xlane.xlu0 %1186 }
 0x2c6   : > { %1188 = vst.msk [vmem:[%s322_s28] sm:$0xff] %vm3135_vm0, %v1187_v26 }
 0x2c7   : > { %v1193_v55 = vpop.xlane.xlu1 %1192 }
 0x2c8   : > { %1194 = vst.msk [vmem:[%s326_s13] sm:$0xff] %vm3136_vm5, %v1193_v55 }
 0x2c9 PF: > { %s19_s27 = sadd.s32 1, %s1492_s27  }
 0x2ca   : > { %p16_p4 = scmp.ge.s32.totalorder %s19_s27, 4  }
 0x2cc   :  { %18 = sbr.rel (!%p16_p4) target bundleno = 1 (0x1), region = 98 }

// kernel: se_inception_forward.9
= control target key start
LH: loop header
LB: loop body
LE: loop exit
PB: predicated region body
PF: predicated region fallthrough
CT: control target
= control target key end

     0   :  { %s880_s21 = smov 0   ;;  %s882_s22 = smov 0   ;;  %s966_s0 = inlined_call_operand.vmem [shape: f32[2,32,1], index: 0, kind: input, shape index: {}]   ;;  %s967_s1 = inlined_call_operand.vmem [shape: f32[10,32], index: 1, kind: input, shape index: {}]   ;;  %s968_s2 = inlined_call_operand.vmem [shape: f32[10,1], index: 2, kind: input, shape index: {}]   ;;  %s969_s3 = inlined_call_operand.vmem [shape: f32[32,10], index: 3, kind: input, shape index: {}]   ;;  %s970_s4 = inlined_call_operand.vmem [shape: f32[32,1], index: 4, kind: input, shape index: {}]   ;;  %s971_s5 = inlined_call_operand.vmem [shape: bf16[2,32,256], index: 5, kind: input, shape index: {}]   ;;  %s972_s6 = inlined_call_operand.vmem [shape: f32[2,32,256], index: 6, kind: output, shape index: {}]  }
   0x1   :  { %s884_s23 = smov 0  }
   0x2 LB: > { %s28_s24 = sadd.s32 1, %s837_s22  ;;  %p705_p0 = scmp.ge.s32.totalorder %s841_s23, 1  ;;  %s841_s23 = sphi %s884_s23, %s16_s23   ;;  %s837_s22 = sphi %s882_s22, %s974_s22   ;;  %s833_s21 = sphi %s880_s21, %s973_s21  }
   0x3   : > { %p30_p1 = scmp.ge.s32.totalorder %s28_s24, 2  ;;  %p243_p2 = scmp.lt.s32.totalorder %s841_s23, 3 }
   0x5   : > { %s976_s24 = smov (%p30_p1, %s28_s24), 0  ;;  %p244_p3 = pnand %p705_p0, %p243_p2 }
   0x6   : > { %p286_p4 = scmp.lt.s32.totalorder (!%p244_p3), %s833_s21, 1  ;;  %v323_v0 = vld [vmem:[%s967_s1] sm:$0xff] (!%p244_p3)  ;;  %vm327_vm0 = vcmask (!%p244_p3), 261120   ;;  %v324_v11 = vld [vmem:[%s967_s1 + $0x8] sm:$0x3] (!%p244_p3)  ;;  %vm419_vm1 = vcmask (!%p244_p3), 80896  }
   0x7   : > { %247 = sbr.rel (%p244_p3) target bundleno = 641 (0x281), region = 44  ;;  %748 = vmatprep.mubr.msk.f32.mxu0 (!%p244_p3), %vm327_vm0, %v323_v0  ;;  %v411_v12 = vld [vmem:[%s969_s3] sm:$0xff] (!%p244_p3)  ;;  %v326_v13 = vld [vmem:[%s968_s2 + $0x8] sm:$0x3] (!%p244_p3)  ;;  %vm432_vm2 = vcmask (!%p244_p3), 1041408   ;;  %vm843_vm3 = vmmov (!%p244_p3), 1  }
   0x8   : > { %755 = vmatprep.mubr.msk.f32.mxu1 (!%p244_p3), %vm419_vm1, %v411_v12  ;;  %v325_v14 = vld [vmem:[%s968_s2] sm:$0xff] (!%p244_p3)  ;;  %vm770_vm4 = vmpackc.low (!%p244_p3), %vm432_vm2, %vm843_vm3  ;;  %v412_v22 = vld [vmem:[%s969_s3 + $0x8] sm:$0xff] (!%p244_p3)  ;;  %v844_v25 = vmov (!%p244_p3), 0   ;;  %vm545_vm5 = vcmask (!%p244_p3), 7168  }
   0x9   : > { %v413_v23 = vld [vmem:[%s969_s3 + $0x10] sm:$0xff] (!%p244_p3)  ;;  %v414_v24 = vld [vmem:[%s969_s3 + $0x18] sm:$0xff] (!%p244_p3)  ;;  %801 = vset.pattern.permute.xlu0 (!%p244_p3), %v844_v25  ;;  %802 = vset.pattern.permute.xlu1 (!%p244_p3), %v844_v25  ;;  %v416_v26 = vld [vmem:[%s970_s4 + $0x8] sm:$0xff] (!%p244_p3) }
   0xa   : > { %v415_v27 = vld [vmem:[%s970_s4] sm:$0xff] (!%p244_p3)  ;;  %v418_v32 = vld [vmem:[%s970_s4 + $0x18] sm:$0xff] (!%p244_p3)  ;;  %v417_v34 = vld [vmem:[%s970_s4 + $0x10] sm:$0xff] (!%p244_p3) }
   0xe   : > { %s978_s21 = smov (!%p286_p4, %s833_s21), 1 }
   0xf   : > { %s725_s27 = sshll.u32 %s978_s21, 5  ;;  %s727_s13 = sshll.u32 %s978_s21, 6 }
  0x10   : > { %s290_s30 = scalar_lea.vmem %s966_s0, %s725_s27  ;;  %s299_s12 = scalar_lea.vmem %s971_s5, %s725_s27 }
  0x11   : > { %v315_v1 = vld [vmem:[%s290_s30] sm:$0xff]  ;;  %v316_v2 = vld [vmem:[%s290_s30 + $0x8] sm:$0xff]  ;;  %v317_v3 = vld [vmem:[%s290_s30 + $0x10] sm:$0xff]  ;;  %s309_s16 = scalar_lea.vmem %s972_s6, %s727_s13 }
  0x12   : > { %v319_v4 = vmul.f32 0.00390625, %v315_v1  ;;  %v320_v5 = vmul.f32 0.00390625, %v316_v2  ;;  %v318_v6 = vld [vmem:[%s290_s30 + $0x18] sm:$0xff]  ;;  %v321_v7 = vmul.f32 0.00390625, %v317_v3  ;;  %v550_v58 = vld [vmem:[%s299_s12] sm:$0xff]  ;;  %v552_v61 = vld [vmem:[%s299_s12 + $0x10] sm:$0xff] }
  0x13   : > { %v322_v8 = vmul.f32 0.00390625, %v318_v6  ;;  %v554_v59 = vunpack.c.l.bf16 %v550_v58  ;;  %v555_v60 = vunpack.c.h.bf16 %v550_v58  ;;  %v551_v62 = vld [vmem:[%s299_s12 + $0x8] sm:$0xff]  ;;  %v558_v0 = vunpack.c.l.bf16 %v552_v61  ;;  %v553_v6 = vld [vmem:[%s299_s12 + $0x18] sm:$0xff] }
  0x14   : > { %v761_v9 = vpack.c.bf16 %v320_v5, %v319_v4  ;;  %v559_v1 = vunpack.c.h.bf16 %v552_v61  ;;  %v556_v4 = vunpack.c.l.bf16 %v551_v62  ;;  %v557_v5 = vunpack.c.h.bf16 %v551_v62 }
  0x15   : > { %v765_v10 = vpack.c.bf16 %v322_v8, %v321_v7 }
  0x16   : > { %762 = vmatprep.subr.bf16.mxu0 %v761_v9 }
  0x17   : > { %764 = vmatpush3.bf16.msra.mxu0 %v761_v9  ;;  %v560_v9 = vunpack.c.l.bf16 %v553_v6 }
  0x18   : > { %766 = vmatprep.subr.bf16.mxu0 %v765_v10 }
  0x1b   : > { %768 = vmatpush3.bf16.msra.mxu0 %v765_v10  ;;  %v561_v10 = vunpack.c.h.bf16 %v553_v6 }
  0x1e   : > { %749 = vmatmul.mubr.msk.f32.vlgmr.msra.gmra.mrb[0].mxu0 %vm327_vm0, %v324_v11 }
  0xf1   : > { %v750_v15 = vpop.f32.mrb[0].mxu0 }
  0xf2   : > { %v406_v16 = vadd.f32 %v750_v15, %v326_v13  ;;  %v400_v17 = vpop.f32.mrb[1].mxu0 }
  0xf3   : > { %v401_v18 = vadd.f32 %v400_v17, %v325_v14 }
  0xf4   : > { %v410_v19 = vmax.f32 %v406_v16, 0.0 }
  0xf5   : > { %v409_v20 = vmax.f32 %v401_v18, 0.0 }
  0xf7   : > { %v769_v21 = vpack.c.bf16 %v410_v19, %v409_v20 }
  0xf9   : > { %771 = vmatprep.subr.msk.bf16.mxu1 %vm770_vm4, %v769_v21 }
  0xfa   : > { %774 = vmatpush3.bf16.msk.msra.mxu1 %vm770_vm4, %v769_v21 }
  0xfd   : > { %756 = vmatmul.mubr.msk.f32.vlgmr.msra.gmra.mrb[0].mxu1 %vm419_vm1, %v412_v22 }
  0xfe   : > { %758 = vmatprep.mubr.msk.f32.mxu1 %vm419_vm1, %v413_v23 }
 0x101   : > { %759 = vmatmul.mubr.msk.f32.gmra.mrb[2].mxu1 %vm419_vm1, %v414_v24 }
 0x1d0   : > { %v757_v28 = vpop.f32.mrb[0].mxu1 }
 0x1d1   : > { %v508_v29 = vadd.f32 %v757_v28, %v416_v26  ;;  %v502_v30 = vpop.f32.mrb[1].mxu1 }
 0x1d2   : > { %v503_v31 = vadd.f32 %v502_v30, %v415_v27 }
 0x1d3   : > { %v720_v33 = vmul.f32 -1.442695, %v508_v29 }
 0x1d4   : > { %v719_v35 = vmul.f32 -1.442695, %v503_v31  ;;  %v760_v36 = vpop.f32.mrb[2].mxu1 }
 0x1d5   : > { %803 = vpow2.f32 %v720_v33  ;;  %v518_v37 = vadd.f32 %v760_v36, %v418_v32  ;;  %v512_v38 = vpop.f32.mrb[3].mxu1 }
 0x1d6   : > { %805 = vpow2.f32 %v719_v35  ;;  %v513_v39 = vadd.f32 %v512_v38, %v417_v34 }
 0x1d7   : > { %v722_v40 = vmul.f32 -1.442695, %v518_v37 }
 0x1d8   : > { %v721_v41 = vmul.f32 -1.442695, %v513_v39 }
 0x1d9   : > { %807 = vpow2.f32 %v722_v40 }
 0x1da   : > { %809 = vpow2.f32 %v721_v41 }
 0x1df   : > { %v804_v42 = vpop.eup %803 }
 0x1e0   : > { %v806_v43 = vpop.eup %805  ;;  %v534_v44 = vadd.f32 1.0, %v804_v42 }
 0x1e1   : > { %v533_v45 = vadd.f32 1.0, %v806_v43 }
 0x1e2   : > { %811 = vrcp.f32 %v534_v44 }
 0x1e3   : > { %v808_v46 = vpop.eup %807  ;;  %813 = vrcp.f32 %v533_v45 }
 0x1e4   : > { %v810_v47 = vpop.eup %809  ;;  %v536_v48 = vadd.f32 1.0, %v808_v46 }
 0x1e5   : > { %v535_v49 = vadd.f32 1.0, %v810_v47 }
 0x1e6   : > { %815 = vrcp.f32 %v536_v48 }
 0x1e7   : > { %817 = vrcp.f32 %v535_v49 }
 0x1ec   : > { %v812_v50 = vpop.eup %811 }
 0x1ed   : > { %v814_v51 = vpop.eup %813  ;;  %547 = vst.msk [vmem:[#allocation2 + $0x8] sm:$0xff] %vm545_vm5, %v812_v50 }
 0x1ee   : > { %546 = vst.msk [vmem:[#allocation2] sm:$0xff] %vm545_vm5, %v814_v51 }
 0x1f0   : > { %v816_v52 = vpop.eup %815 }
 0x1f1   : > { %v818_v53 = vpop.eup %817  ;;  %549 = vst.msk [vmem:[#allocation2 + $0x18] sm:$0xff] %vm545_vm5, %v816_v52 }
 0x1f2   : > { %548 = vst.msk [vmem:[#allocation2 + $0x10] sm:$0xff] %vm545_vm5, %v818_v53 }
 0x1f4   : > { %v563_v56 = vld [vmem:[#allocation2 + $0x8] sm:$0xff] }
 0x1f5   : > { %v562_v54 = vld [vmem:[#allocation2] sm:$0xff] }
 0x1f6   : > { %568 = vperm.xlu0 %801, %v562_v54  }
 0x1f8   : > { %v565_v57 = vld [vmem:[#allocation2 + $0x18] sm:$0xff] }
 0x1f9   : > { %v564_v55 = vld [vmem:[#allocation2 + $0x10] sm:$0xff] }
 0x1fa   : > { %578 = vperm.xlu1 %802, %v564_v55   ;;  %573 = vperm.xlu0 %801, %v563_v56  }
 0x1fe   : > { %583 = vperm.xlu1 %802, %v565_v57  }
 0x275   : > { %v569_v63 = vpop.permute.xlu0 %568 }
 0x276   : > { %v586_v2 = vmul.f32 %v569_v63, %v554_v59  ;;  %v587_v3 = vmul.f32 %v569_v63, %v555_v60 }
 0x278   : > { %594 = vst [vmem:[%s309_s16] sm:$0xff] %v586_v2  ;;  %595 = vst [vmem:[%s309_s16 + $0x8] sm:$0xff] %v587_v3 }
 0x279   : > { %v579_v7 = vpop.permute.xlu1 %578  ;;  %v574_v8 = vpop.permute.xlu0 %573 }
 0x27a   : > { %v590_v11 = vmul.f32 %v579_v7, %v558_v0  ;;  %v591_v12 = vmul.f32 %v579_v7, %v559_v1  ;;  %v588_v13 = vmul.f32 %v574_v8, %v556_v4  ;;  %v589_v14 = vmul.f32 %v574_v8, %v557_v5 }
 0x27c   : > { %598 = vst [vmem:[%s309_s16 + $0x20] sm:$0xff] %v590_v11  ;;  %599 = vst [vmem:[%s309_s16 + $0x28] sm:$0xff] %v591_v12 }
 0x27d   : > { %596 = vst [vmem:[%s309_s16 + $0x10] sm:$0xff] %v588_v13  ;;  %597 = vst [vmem:[%s309_s16 + $0x18] sm:$0xff] %v589_v14  ;;  %v584_v15 = vpop.permute.xlu1 %583 }
 0x27e   : > { %v592_v16 = vmul.f32 %v584_v15, %v560_v9  ;;  %v593_v17 = vmul.f32 %v584_v15, %v561_v10 }
 0x280   : > { %600 = vst [vmem:[%s309_s16 + $0x30] sm:$0xff] %v592_v16  ;;  %601 = vst [vmem:[%s309_s16 + $0x38] sm:$0xff] %v593_v17 }
 0x281 PF: > { %s16_s23 = sadd.s32 1, %s841_s23   ;;  %s973_s21 = smov %s837_s22 }
 0x282   : > { %p13_p5 = scmp.ge.s32.totalorder %s16_s23, 4   ;;  %s974_s22 = smov %s976_s24 }
 0x284   :  { %15 = sbr.rel (!%p13_p5) target bundleno = 2 (0x2), region = 81 }

</bundles_post_ra>
